<compile_context>
chip_gen: v7x
topology: tpu7x:2x2x1
jax: 0.10.0
libtpu: 0.0.40
codegen_flags: <defaults>
</compile_context>

<pallas_src>
import jax
import jax.numpy as jnp
from jax.experimental import pallas as pl
from jax.experimental.pallas import tpu as pltpu


_LANE = 128


def _round_up(n, m):
    return ((n + m - 1) // m) * m


# ---------------------------------------------------------------------------
# Pallas kernel
# ---------------------------------------------------------------------------

def _make_temporal_block_kernel(kernel_size, dilation, has_downsample):
    K = kernel_size
    pad = (K - 1) * dilation

    def kernel(*refs):
        if has_downsample:
            (x_ref, w1_ref, b1_ref, w2_ref, b2_ref, wd_ref, bd_ref,
             o_ref, h_ref, stk_ref) = refs
        else:
            (x_ref, w1_ref, b1_ref, w2_ref, b2_ref,
             o_ref, h_ref, stk_ref) = refs

        bt, L, cout_p = o_ref.shape
        cin_p = x_ref.shape[2]

        # ---- conv1: gather K dilated taps of the (pre-padded, bf16) input into
        #      the shared stacking scratch, then one wide MXU matmul ----
        for k in range(K):
            stk_ref[:, k * cin_p:(k + 1) * cin_p] = (
                x_ref[:, k * dilation:k * dilation + L, :].reshape(bt * L, cin_p))
        acc1 = jnp.dot(stk_ref[:, :K * cin_p], w1_ref[...],
                       preferred_element_type=jnp.float32)
        h = jnp.maximum(acc1 + b1_ref[...], 0.0)      # relu1 (dropout1 = identity)

        # causal history buffer for conv2: zero the first `pad` rows, then write
        # conv1's output (bf16) into rows [pad:].  No concat copies.
        if pad > 0:
            h_ref[:, :pad, :] = jnp.zeros((bt, pad, cout_p), jnp.bfloat16)
        h_ref[:, pad:, :] = h.astype(jnp.bfloat16).reshape(bt, L, cout_p)

        # ---- conv2 (same stacking scratch, reused) ----
        for k in range(K):
            stk_ref[:, k * cout_p:(k + 1) * cout_p] = (
                h_ref[:, k * dilation:k * dilation + L, :].reshape(bt * L, cout_p))
        acc2 = jnp.dot(stk_ref[:, :K * cout_p], w2_ref[...],
                       preferred_element_type=jnp.float32)
        out = jnp.maximum(acc2 + b2_ref[...], 0.0)    # relu2 (dropout2 = identity)

        # ---- residual (1x1 conv when Cin != Cout, else identity) + final ReLU ----
        x_res = x_ref[:, pad:, :].reshape(bt * L, cin_p)   # original (unshifted) x
        if has_downsample:
            res = (jnp.dot(x_res, wd_ref[...], preferred_element_type=jnp.float32)
                   + bd_ref[...])
        else:
            res = x_res.astype(jnp.float32)

        o_ref[...] = jnp.maximum(out + res, 0.0).reshape(
            bt, L, cout_p).astype(o_ref.dtype)

    return kernel


# ---------------------------------------------------------------------------
# Host-side prep / wrapper
# ---------------------------------------------------------------------------

def weight_norm_effective(v, g):
    """PyTorch weight_norm on Conv1d: w = g * v / ||v||_2, norm over (Cin, K)."""
    norm = jnp.sqrt(jnp.sum(v * v, axis=(1, 2), keepdims=True))
    return g.reshape(-1, 1, 1) * v / norm


def _prep_conv_weight(w, cin_p, cout_p):
    # torch (Cout, Cin, K) -> stacked (K*Cin_p, Cout_p) bf16, rows [k*Cin_p + cin]
    cout, cin, k = w.shape
    wt = jnp.transpose(w, (2, 1, 0))                           # (K, Cin, Cout)
    wt = jnp.pad(wt, ((0, 0), (0, cin_p - cin), (0, cout_p - cout)))
    return wt.reshape(k * cin_p, cout_p).astype(jnp.bfloat16)


def _prep_bias(b, cout_p):
    return jnp.pad(b, (0, cout_p - b.shape[0])).reshape(1, cout_p).astype(jnp.float32)


def _tpu_vmem_and_cores():
    """Generation-aware (vmem_limit_bytes, num_tensorcores)."""
    cap = None
    try:
        cap = int(pltpu.get_tpu_info().vmem_capacity_bytes)
    except Exception:
        cap = None
    kind = ""
    try:
        kind = jax.devices()[0].device_kind.lower()
    except Exception:
        pass
    is_v7 = "v7" in kind or (cap is not None and cap <= 64 * 1024 * 1024)
    num_cores = 2 if is_v7 else 1
    if cap is None:
        cap = 64 * 1024 * 1024 if is_v7 else 128 * 1024 * 1024
    if is_v7:
        cap = min(cap, 64 * 1024 * 1024)     # per-TensorCore VMEM on v7x
    # leave ~20% headroom for Mosaic internal scratch / regalloc
    return int(cap * 0.80), num_cores


def _choose_batch_tile(B, L, pad, cin_p, cout_p, K, vmem_limit, num_cores):
    cmax = max(cin_p, cout_p)
    # per-batch-row VMEM (bytes): double-buffered bf16 x / out blocks, bf16 h and
    # tap-stack scratches, f32 matmul/ReLU/residual temporaries.
    per_b = ((L + pad) * cin_p * 2 * 2        # x block (bf16, double-buffered)
             + L * cout_p * 2 * 2             # out block (bf16, double-buffered)
             + (L + pad) * cout_p * 2         # h scratch (bf16)
             + L * K * cmax * 2               # shared tap-stack scratch (bf16)
             + L * cout_p * 4 * 3             # f32 acc1/acc2/res temporaries
             + L * cin_p * 4)                 # residual slice upcast temp
    # resident weights & biases (double-buffered by default pipelining)
    fixed = ((K * cin_p * cout_p + K * cout_p * cout_p + cin_p * cout_p) * 2 * 2
             + 3 * cout_p * 4 * 2)
    budget = max(vmem_limit - fixed, per_b)
    bt = max(1, min(B, budget // per_b))
    if num_cores > 1:
        # each TensorCore should get >= 2 grid steps when possible
        target_steps = min(B, 2 * num_cores)
        bt = min(bt, max(1, B // target_steps))
    # bt must divide B; on multi-core chips keep the grid a multiple of num_cores
    while bt > 1 and (B % bt != 0 or
                      (num_cores > 1 and (B // bt) % num_cores != 0)):
        bt -= 1
    return bt


def temporal_block_forward(x_ncl, w1, b1, w2, b2, wd=None, bd=None, *, dilation):
    """TemporalBlock forward. x_ncl: (B, Cin, L) (PyTorch NCL). Returns (B, Cout, L) f32."""
    B, Cin, L = x_ncl.shape
    Cout, _, K = w1.shape
    has_down = wd is not None
    if not has_down:
        assert Cin == Cout, "identity residual requires Cin == Cout"

    pad = (K - 1) * dilation
    cin_p = _round_up(Cin, _LANE)
    cout_p = _round_up(Cout, _LANE)
    cmax = max(cin_p, cout_p)

    # channels-last, lane-dense channel padding, causal FRONT time-padding hoisted
    # to HBM, bf16 DMA (halves HBM->VMEM traffic for the activation).
    x = jnp.transpose(x_ncl, (0, 2, 1))
    x = jnp.pad(x, ((0, 0), (pad, 0), (0, cin_p - Cin))).astype(jnp.bfloat16)

    w1s = _prep_conv_weight(w1, cin_p, cout_p)
    w2s = _prep_conv_weight(w2, cout_p, cout_p)
    b1p = _prep_bias(b1, cout_p)
    b2p = _prep_bias(b2, cout_p)

    vmem_limit, num_cores = _tpu_vmem_and_cores()
    bt = _choose_batch_tile(B, L, pad, cin_p, cout_p, K, vmem_limit, num_cores)

    args = [x, w1s, b1p, w2s, b2p]
    # TODO(synk): pipeline_mode=pl.Buffered(1) on the constant-index weight/bias
    # specs would drop their second VMEM buffer; left at default for portability.
    in_specs = [
        pl.BlockSpec((bt, L + pad, cin_p), lambda b: (b, 0, 0)),
        pl.BlockSpec((K * cin_p, cout_p), lambda b: (0, 0)),
        pl.BlockSpec((1, cout_p), lambda b: (0, 0)),
        pl.BlockSpec((K * cout_p, cout_p), lambda b: (0, 0)),
        pl.BlockSpec((1, cout_p), lambda b: (0, 0)),
    ]
    if has_down:
        wds = jnp.pad(wd[:, :, 0].T,
                      ((0, cin_p - Cin), (0, cout_p - Cout))).astype(jnp.bfloat16)
        bdp = _prep_bias(bd, cout_p)
        args += [wds, bdp]
        in_specs += [pl.BlockSpec((cin_p, cout_p), lambda b: (0, 0)),
                     pl.BlockSpec((1, cout_p), lambda b: (0, 0))]

    out_pad = pl.pallas_call(
        _make_temporal_block_kernel(K, dilation, has_down),
        out_shape=jax.ShapeDtypeStruct((B, L, cout_p), jnp.bfloat16),
        grid=(B // bt,),
        in_specs=in_specs,
        out_specs=pl.BlockSpec((bt, L, cout_p), lambda b: (b, 0, 0)),
        scratch_shapes=[
            pltpu.VMEM((bt, L + pad, cout_p), jnp.bfloat16),   # h (conv1 out, causal-padded)
            pltpu.VMEM((bt * L, K * cmax), jnp.bfloat16),      # shared K-tap stacking buffer
        ],
        compiler_params=pltpu.CompilerParams(
            dimension_semantics=("parallel",),
            vmem_limit_bytes=vmem_limit),
    )(*args)

    # TODO(synk): add time (L) tiling with a 2*(K-1)*dilation halo for long sequences.
    return jnp.transpose(out_pad[:, :, :Cout], (0, 2, 1)).astype(jnp.float32)


# ---------------------------------------------------------------------------
# Pure-JAX f32 reference (lax.conv_general_dilated) for correctness check
# ---------------------------------------------------------------------------

def _ref_temporal_block(x_ncl, w1, b1, w2, b2, wd=None, bd=None, *, dilation):
    K = w1.shape[-1]
    pad = (K - 1) * dilation

    def conv(a, w, b):
        o = jax.lax.conv_general_dilated(
            a, w, window_strides=(1,), padding=[(pad, pad)],
            rhs_dilation=(dilation,), dimension_numbers=("NCH", "OIH", "NCH"))
        return o[:, :, : a.shape[2]] + b[None, :, None]           # chomp + bias

    h1 = jax.nn.relu(conv(x_ncl, w1, b1))
    h2 = jax.nn.relu(conv(h1, w2, b2))
    if wd is not None:
        res = jnp.einsum("oc,bcl->bol", wd[:, :, 0], x_ncl) + bd[None, :, None]
    else:
        res = x_ncl
    return jax.nn.relu(h2 + res)


# ---------------------------------------------------------------------------
# Main
# ---------------------------------------------------------------------------

if __name__ == "__main__":
    key = jax.random.PRNGKey(0)
    B, L, K = 8, 32, 3
    cin, cout = 16, 32
    scale = 0.1
    ks = jax.random.split(key, 12)

    x = jax.random.normal(ks[0], (B, cin, L), jnp.float32)

    def mk_conv(kk, co, ci):
        v = scale * jax.random.normal(kk, (co, ci, K), jnp.float32)
        g = jnp.sqrt(jnp.sum(v * v, axis=(1, 2)))   # PyTorch init: g = ||v||
        return weight_norm_effective(v, g)

    # ---- block 1: Cin != Cout -> 1x1 downsample residual, dilation=2 ----
    w1 = mk_conv(ks[1], cout, cin)
    b1 = scale * jax.random.normal(ks[2], (cout,), jnp.float32)
    w2 = mk_conv(ks[3], cout, cout)
    b2 = scale * jax.random.normal(ks[4], (cout,), jnp.float32)
    wd = scale * jax.random.normal(ks[5], (cout, cin, 1), jnp.float32)
    bd = scale * jax.random.normal(ks[6], (cout,), jnp.float32)

    y1 = jax.block_until_ready(
        temporal_block_forward(x, w1, b1, w2, b2, wd, bd, dilation=2))
    r1 = jax.block_until_ready(
        _ref_temporal_block(x, w1, b1, w2, b2, wd, bd, dilation=2))
    assert y1.shape == (B, cout, L), y1.shape
    # bf16 activation I/O + bf16 MXU operands (f32 accumulation) -> loose tolerance
    assert float(jnp.max(jnp.abs(y1 - r1))) < 5e-2, float(jnp.max(jnp.abs(y1 - r1)))

    # ---- block 2: Cin == Cout -> identity residual, dilation=4 ----
    w1b = mk_conv(ks[7], cout, cout)
    b1b = scale * jax.random.normal(ks[8], (cout,), jnp.float32)
    w2b = mk_conv(ks[9], cout, cout)
    b2b = scale * jax.random.normal(ks[10], (cout,), jnp.float32)

    y2 = jax.block_until_ready(
        temporal_block_forward(r1, w1b, b1b, w2b, b2b, dilation=4))
    r2 = jax.block_until_ready(
        _ref_temporal_block(r1, w1b, b1b, w2b, b2b, dilation=4))
    assert y2.shape == (B, cout, L), y2.shape
    assert float(jnp.max(jnp.abs(y2 - r2))) < 5e-2, float(jnp.max(jnp.abs(y2 - r2)))

    print("KERNEL_OK")
</pallas_src>

<mosaic_0001>
module attributes {stable_mosaic.version = 11 : i64} {
  func.func @kernel(%arg0: i32, %arg1: memref<8x36x128xbf16, #tpu.memory_space<vmem>>, %arg2: memref<384x128xbf16, #tpu.memory_space<vmem>>, %arg3: memref<1x128xf32, #tpu.memory_space<vmem>>, %arg4: memref<384x128xbf16, #tpu.memory_space<vmem>>, %arg5: memref<1x128xf32, #tpu.memory_space<vmem>>, %arg6: memref<128x128xbf16, #tpu.memory_space<vmem>>, %arg7: memref<1x128xf32, #tpu.memory_space<vmem>>, %arg8: memref<8x32x128xbf16, #tpu.memory_space<vmem>>, %arg9: memref<8x36x128xbf16, #tpu.memory_space<vmem>>, %arg10: memref<256x384xbf16, #tpu.memory_space<vmem>>) attributes {dimension_semantics = [#tpu.dimension_semantics<parallel>], iteration_bounds = array<i64: 1>, scalar_prefetch = 0 : i64, scratch_operands = 2 : i64, tpu.core_type = #tpu.core_type<tc>, window_params = [{transform_indices = @transform_0, window_bounds = array<i64: 8, 36, 128>}, {pipeline_mode = #tpu.pipeline_mode<synchronous>, transform_indices = @transform_1, window_bounds = array<i64: 384, 128>}, {pipeline_mode = #tpu.pipeline_mode<synchronous>, transform_indices = @transform_2, window_bounds = array<i64: 1, 128>}, {pipeline_mode = #tpu.pipeline_mode<synchronous>, transform_indices = @transform_3, window_bounds = array<i64: 384, 128>}, {pipeline_mode = #tpu.pipeline_mode<synchronous>, transform_indices = @transform_4, window_bounds = array<i64: 1, 128>}, {pipeline_mode = #tpu.pipeline_mode<synchronous>, transform_indices = @transform_5, window_bounds = array<i64: 128, 128>}, {pipeline_mode = #tpu.pipeline_mode<synchronous>, transform_indices = @transform_6, window_bounds = array<i64: 1, 128>}, {transform_indices = @transform_7, window_bounds = array<i64: 8, 32, 128>}]} {
    %c0 = arith.constant 0 : index
    %c0_0 = arith.constant 0 : index
    %c0_1 = arith.constant 0 : index
    %0 = vector.load %arg1[%c0, %c0_0, %c0_1] : memref<8x36x128xbf16, #tpu.memory_space<vmem>>, vector<8x32x128xbf16>
    %1 = vector.shape_cast %0 : vector<8x32x128xbf16> to vector<256x128xbf16>
    %c0_2 = arith.constant 0 : index
    %c0_3 = arith.constant 0 : index
    %2 = vector.load %arg10[%c0_2, %c0_3] : memref<256x384xbf16, #tpu.memory_space<vmem>>, vector<256x128xbf16>
    tpu.vector_store %arg10[%c0_2, %c0_3], %1 {strides = array<i32>} : memref<256x384xbf16, #tpu.memory_space<vmem>>, vector<256x128xbf16>,
    %c0_4 = arith.constant 0 : index
    %c2 = arith.constant 2 : index
    %c0_5 = arith.constant 0 : index
    %3 = vector.load %arg1[%c0_4, %c2, %c0_5] : memref<8x36x128xbf16, #tpu.memory_space<vmem>>, vector<8x32x128xbf16>
    %4 = vector.shape_cast %3 : vector<8x32x128xbf16> to vector<256x128xbf16>
    %c0_6 = arith.constant 0 : index
    %c128 = arith.constant 128 : index
    %5 = vector.load %arg10[%c0_6, %c128] : memref<256x384xbf16, #tpu.memory_space<vmem>>, vector<256x128xbf16>
    tpu.vector_store %arg10[%c0_6, %c128], %4 {strides = array<i32>} : memref<256x384xbf16, #tpu.memory_space<vmem>>, vector<256x128xbf16>,
    %c0_7 = arith.constant 0 : index
    %c4 = arith.constant 4 : index
    %c0_8 = arith.constant 0 : index
    %6 = vector.load %arg1[%c0_7, %c4, %c0_8] : memref<8x36x128xbf16, #tpu.memory_space<vmem>>, vector<8x32x128xbf16>
    %7 = vector.shape_cast %6 : vector<8x32x128xbf16> to vector<256x128xbf16>
    %c0_9 = arith.constant 0 : index
    %c256 = arith.constant 256 : index
    %8 = vector.load %arg10[%c0_9, %c256] : memref<256x384xbf16, #tpu.memory_space<vmem>>, vector<256x128xbf16>
    tpu.vector_store %arg10[%c0_9, %c256], %7 {strides = array<i32>} : memref<256x384xbf16, #tpu.memory_space<vmem>>, vector<256x128xbf16>,
    %c0_10 = arith.constant 0 : index
    %c0_11 = arith.constant 0 : index
    %9 = vector.load %arg10[%c0_10, %c0_11] : memref<256x384xbf16, #tpu.memory_space<vmem>>, vector<256x384xbf16>
    %c0_12 = arith.constant 0 : index
    %c0_13 = arith.constant 0 : index
    %10 = vector.load %arg2[%c0_12, %c0_13] : memref<384x128xbf16, #tpu.memory_space<vmem>>, vector<384x128xbf16>
    %cst = arith.constant dense<0.000000e+00> : vector<256x128xf32>
    %11 = tpu.matmul %9, %10, %cst {dimension_numbers = #tpu.dot_dimension_numbers<[1], [0], [0], [1], [0, 0, 1, 1], [], []>} : vector<256x384xbf16>, vector<384x128xbf16>, vector<256x128xf32> -> vector<256x128xf32>
    %c0_14 = arith.constant 0 : index
    %c0_15 = arith.constant 0 : index
    %12 = vector.load %arg3[%c0_14, %c0_15] : memref<1x128xf32, #tpu.memory_space<vmem>>, vector<1x128xf32>
    %13 = vector.broadcast %12 : vector<1x128xf32> to vector<256x128xf32>
    %14 = arith.addf %11, %13 : vector<256x128xf32>
    %cst_16 = arith.constant 0.000000e+00 : f32
    %15 = vector.broadcast %cst_16 : f32 to vector<256x128xf32>
    %16 = arith.maximumf %14, %15 : vector<256x128xf32>
    %cst_17 = arith.constant 0.000000e+00 : bf16
    %17 = vector.broadcast %cst_17 : bf16 to vector<8x4x128xbf16>
    %c0_18 = arith.constant 0 : index
    %c0_19 = arith.constant 0 : index
    %c0_20 = arith.constant 0 : index
    %18 = vector.load %arg9[%c0_18, %c0_19, %c0_20] : memref<8x36x128xbf16, #tpu.memory_space<vmem>>, vector<8x4x128xbf16>
    tpu.vector_store %arg9[%c0_18, %c0_19, %c0_20], %17 {strides = array<i32>} : memref<8x36x128xbf16, #tpu.memory_space<vmem>>, vector<8x4x128xbf16>,
    %19 = arith.truncf %16 : vector<256x128xf32> to vector<256x128xbf16>
    %20 = vector.shape_cast %19 : vector<256x128xbf16> to vector<8x32x128xbf16>
    %c0_21 = arith.constant 0 : index
    %c4_22 = arith.constant 4 : index
    %c0_23 = arith.constant 0 : index
    %21 = vector.load %arg9[%c0_21, %c4_22, %c0_23] : memref<8x36x128xbf16, #tpu.memory_space<vmem>>, vector<8x32x128xbf16>
    tpu.vector_store %arg9[%c0_21, %c4_22, %c0_23], %20 {strides = array<i32>} : memref<8x36x128xbf16, #tpu.memory_space<vmem>>, vector<8x32x128xbf16>,
    %c0_24 = arith.constant 0 : index
    %c0_25 = arith.constant 0 : index
    %c0_26 = arith.constant 0 : index
    %22 = vector.load %arg9[%c0_24, %c0_25, %c0_26] : memref<8x36x128xbf16, #tpu.memory_space<vmem>>, vector<8x32x128xbf16>
    %23 = vector.shape_cast %22 : vector<8x32x128xbf16> to vector<256x128xbf16>
    %c0_27 = arith.constant 0 : index
    %c0_28 = arith.constant 0 : index
    %24 = vector.load %arg10[%c0_27, %c0_28] : memref<256x384xbf16, #tpu.memory_space<vmem>>, vector<256x128xbf16>
    tpu.vector_store %arg10[%c0_27, %c0_28], %23 {strides = array<i32>} : memref<256x384xbf16, #tpu.memory_space<vmem>>, vector<256x128xbf16>,
    %c0_29 = arith.constant 0 : index
    %c2_30 = arith.constant 2 : index
    %c0_31 = arith.constant 0 : index
    %25 = vector.load %arg9[%c0_29, %c2_30, %c0_31] : memref<8x36x128xbf16, #tpu.memory_space<vmem>>, vector<8x32x128xbf16>
    %26 = vector.shape_cast %25 : vector<8x32x128xbf16> to vector<256x128xbf16>
    %c0_32 = arith.constant 0 : index
    %c128_33 = arith.constant 128 : index
    %27 = vector.load %arg10[%c0_32, %c128_33] : memref<256x384xbf16, #tpu.memory_space<vmem>>, vector<256x128xbf16>
    tpu.vector_store %arg10[%c0_32, %c128_33], %26 {strides = array<i32>} : memref<256x384xbf16, #tpu.memory_space<vmem>>, vector<256x128xbf16>,
    %c0_34 = arith.constant 0 : index
    %c4_35 = arith.constant 4 : index
    %c0_36 = arith.constant 0 : index
    %28 = vector.load %arg9[%c0_34, %c4_35, %c0_36] : memref<8x36x128xbf16, #tpu.memory_space<vmem>>, vector<8x32x128xbf16>
    %29 = vector.shape_cast %28 : vector<8x32x128xbf16> to vector<256x128xbf16>
    %c0_37 = arith.constant 0 : index
    %c256_38 = arith.constant 256 : index
    %30 = vector.load %arg10[%c0_37, %c256_38] : memref<256x384xbf16, #tpu.memory_space<vmem>>, vector<256x128xbf16>
    tpu.vector_store %arg10[%c0_37, %c256_38], %29 {strides = array<i32>} : memref<256x384xbf16, #tpu.memory_space<vmem>>, vector<256x128xbf16>,
    %c0_39 = arith.constant 0 : index
    %c0_40 = arith.constant 0 : index
    %31 = vector.load %arg10[%c0_39, %c0_40] : memref<256x384xbf16, #tpu.memory_space<vmem>>, vector<256x384xbf16>
    %c0_41 = arith.constant 0 : index
    %c0_42 = arith.constant 0 : index
    %32 = vector.load %arg4[%c0_41, %c0_42] : memref<384x128xbf16, #tpu.memory_space<vmem>>, vector<384x128xbf16>
    %cst_43 = arith.constant dense<0.000000e+00> : vector<256x128xf32>
    %33 = tpu.matmul %31, %32, %cst_43 {dimension_numbers = #tpu.dot_dimension_numbers<[1], [0], [0], [1], [0, 0, 1, 1], [], []>} : vector<256x384xbf16>, vector<384x128xbf16>, vector<256x128xf32> -> vector<256x128xf32>
    %c0_44 = arith.constant 0 : index
    %c0_45 = arith.constant 0 : index
    %34 = vector.load %arg5[%c0_44, %c0_45] : memref<1x128xf32, #tpu.memory_space<vmem>>, vector<1x128xf32>
    %35 = vector.broadcast %34 : vector<1x128xf32> to vector<256x128xf32>
    %36 = arith.addf %33, %35 : vector<256x128xf32>
    %cst_46 = arith.constant 0.000000e+00 : f32
    %37 = vector.broadcast %cst_46 : f32 to vector<256x128xf32>
    %38 = arith.maximumf %36, %37 : vector<256x128xf32>
    %c0_47 = arith.constant 0 : index
    %c4_48 = arith.constant 4 : index
    %c0_49 = arith.constant 0 : index
    %39 = vector.load %arg1[%c0_47, %c4_48, %c0_49] : memref<8x36x128xbf16, #tpu.memory_space<vmem>>, vector<8x32x128xbf16>
    %40 = vector.shape_cast %39 : vector<8x32x128xbf16> to vector<256x128xbf16>
    %c0_50 = arith.constant 0 : index
    %c0_51 = arith.constant 0 : index
    %41 = vector.load %arg6[%c0_50, %c0_51] : memref<128x128xbf16, #tpu.memory_space<vmem>>, vector<128x128xbf16>
    %cst_52 = arith.constant dense<0.000000e+00> : vector<256x128xf32>
    %42 = tpu.matmul %40, %41, %cst_52 {dimension_numbers = #tpu.dot_dimension_numbers<[1], [0], [0], [1], [0, 0, 1, 1], [], []>} : vector<256x128xbf16>, vector<128x128xbf16>, vector<256x128xf32> -> vector<256x128xf32>
    %c0_53 = arith.constant 0 : index
    %c0_54 = arith.constant 0 : index
    %43 = vector.load %arg7[%c0_53, %c0_54] : memref<1x128xf32, #tpu.memory_space<vmem>>, vector<1x128xf32>
    %44 = vector.broadcast %43 : vector<1x128xf32> to vector<256x128xf32>
    %45 = arith.addf %42, %44 : vector<256x128xf32>
    %46 = arith.addf %38, %45 : vector<256x128xf32>
    %cst_55 = arith.constant 0.000000e+00 : f32
    %47 = vector.broadcast %cst_55 : f32 to vector<256x128xf32>
    %48 = arith.maximumf %46, %47 : vector<256x128xf32>
    %49 = vector.shape_cast %48 : vector<256x128xf32> to vector<8x32x128xf32>
    %50 = arith.truncf %49 : vector<8x32x128xf32> to vector<8x32x128xbf16>
    %c0_56 = arith.constant 0 : index
    %c0_57 = arith.constant 0 : index
    %c0_58 = arith.constant 0 : index
    %51 = vector.load %arg8[%c0_56, %c0_57, %c0_58] : memref<8x32x128xbf16, #tpu.memory_space<vmem>>, vector<8x32x128xbf16>
    tpu.vector_store %arg8[%c0_56, %c0_57, %c0_58], %50 {strides = array<i32>} : memref<8x32x128xbf16, #tpu.memory_space<vmem>>, vector<8x32x128xbf16>,
    return
  }
  func.func @transform_0(%arg0: i32) -> (i32, i32, i32) {
    %c0_i32 = arith.constant 0 : i32
    %c0_i32_0 = arith.constant 0 : i32
    %c0_i32_1 = arith.constant 0 : i32
    return %arg0, %c0_i32, %c0_i32_0 : i32, i32, i32
  }
  func.func @transform_1(%arg0: i32) -> (i32, i32) {
    %c0_i32 = arith.constant 0 : i32
    %c0_i32_0 = arith.constant 0 : i32
    %c0_i32_1 = arith.constant 0 : i32
    return %c0_i32, %c0_i32_0 : i32, i32
  }
  func.func @transform_2(%arg0: i32) -> (i32, i32) {
    %c0_i32 = arith.constant 0 : i32
    %c0_i32_0 = arith.constant 0 : i32
    %c0_i32_1 = arith.constant 0 : i32
    return %c0_i32, %c0_i32_0 : i32, i32
  }
  func.func @transform_3(%arg0: i32) -> (i32, i32) {
    %c0_i32 = arith.constant 0 : i32
    %c0_i32_0 = arith.constant 0 : i32
    %c0_i32_1 = arith.constant 0 : i32
    return %c0_i32, %c0_i32_0 : i32, i32
  }
  func.func @transform_4(%arg0: i32) -> (i32, i32) {
    %c0_i32 = arith.constant 0 : i32
    %c0_i32_0 = arith.constant 0 : i32
    %c0_i32_1 = arith.constant 0 : i32
    return %c0_i32, %c0_i32_0 : i32, i32
  }
  func.func @transform_5(%arg0: i32) -> (i32, i32) {
    %c0_i32 = arith.constant 0 : i32
    %c0_i32_0 = arith.constant 0 : i32
    %c0_i32_1 = arith.constant 0 : i32
    return %c0_i32, %c0_i32_0 : i32, i32
  }
  func.func @transform_6(%arg0: i32) -> (i32, i32) {
    %c0_i32 = arith.constant 0 : i32
    %c0_i32_0 = arith.constant 0 : i32
    %c0_i32_1 = arith.constant 0 : i32
    return %c0_i32, %c0_i32_0 : i32, i32
  }
  func.func @transform_7(%arg0: i32) -> (i32, i32, i32) {
    %c0_i32 = arith.constant 0 : i32
    %c0_i32_0 = arith.constant 0 : i32
    %c0_i32_1 = arith.constant 0 : i32
    return %arg0, %c0_i32, %c0_i32_0 : i32, i32, i32
  }
}

</mosaic_0001>

<bundles_post_ra>
// kernel: tpu_custom_call.1
= control target key start
LH: loop header
LB: loop body
LE: loop exit
PB: predicated region body
PF: predicated region fallthrough
CT: control target
= control target key end

     0   :  { %12 = vsyncpa [#allocation5], 0  ;;  %s5970_s0 = inlined_call_operand.hbm [shape: bf16[8,36,128], index: 0, kind: input, shape index: {}]   ;;  %s5971_s1 = inlined_call_operand.hbm [shape: bf16[384,128], index: 1, kind: input, shape index: {}]   ;;  %s5972_s2 = inlined_call_operand.hbm [shape: f32[1,128], index: 2, kind: input, shape index: {}]   ;;  %s5973_s3 = inlined_call_operand.hbm [shape: bf16[384,128], index: 3, kind: input, shape index: {}]   ;;  %s5974_s4 = inlined_call_operand.hbm [shape: f32[1,128], index: 4, kind: input, shape index: {}]   ;;  %s5975_s5 = inlined_call_operand.hbm [shape: bf16[128,128], index: 5, kind: input, shape index: {}]   ;;  %s5976_s6 = inlined_call_operand.hbm [shape: f32[1,128], index: 6, kind: input, shape index: {}]   ;;  %s5977_s7 = inlined_call_operand.hbm [shape: bf16[8,32,128], index: 7, kind: output, shape index: {}]  }
   0x1   :  { %13 = vsyncpa [#allocation8], 0 }
   0x2   :  { %14 = vsyncpa [#allocation11], 0 }
   0x3   :  { %15 = vsyncpa [#allocation14], 0 }
   0x4   :  { %16 = vsyncpa [#allocation6], 0  ;;  %s4840_s24 = smov [#allocation7]   ;;  %s4841_s26 = smov [#allocation10]  }
   0x5   :  { %s34_s25 = sshll.u32 %s4840_s24, 4  ;;  %s56_s27 = sshll.u32 %s4841_s26, 4  ;;  %s35_s25 = int_to_ptr.vmem [resolvable:$true] %s34_s25  ;;  %s4891_s27 = int_to_ptr.vmem [resolvable:$true] %s56_s27 }
   0x6   :  { %s4654_s30 = scalar_lea.hbm %s5971_s1, 3072 }
   0x7   :  { %p4655_p0 = scmp.ne.s32.totalorder %s5971_s1, %s4654_s30  ;;  %p4658_p1 = scmp.lt.u32.totalorder %s4654_s30, %s5971_s1 }
   0x9   :  { %p4660_p2 = pnand %p4658_p1, %p4655_p0 }
   0xb   :  { %4663 = shalt.err (!%p4660_p2)
}
   0xc   :  { %s4664_s12 = scalar_lea.vmem %s35_s25, 3072  ;;  %p4669_p4 = scmp.lt.s32.totalorder %s35_s25, %s35_s25 }
   0xd   :  { %p4665_p3 = scmp.ne.s32.totalorder %s35_s25, %s4664_s12  ;;  %p4670_p5 = scmp.lt.s32.totalorder %s4664_s12, %s4664_s12 }
   0xf   :  { %p4671_p6 = por %p4670_p5, %p4669_p4 }
  0x11   :  { %p4672_p7 = pnand %p4671_p6, %p4665_p3 }
  0x13   :  { %4675 = shalt.err (!%p4672_p7)
}
  0x14   :  { %s4842_s13 = smov 64   ;;  %s4843_s14 = smov 4  }
  0x15   :  { %40 = dma.hbm_to_vmem [thread:$0]  %s5971_s1, 3072, %s35_s25, [#allocation8], %s4842_s13, %s4842_s13, %s4843_s14  }
  0x16   :  { %s4676_s19 = scalar_lea.hbm %s5973_s3, 3072 }
  0x17   :  { %p4677_p8 = scmp.ne.s32.totalorder %s5973_s3, %s4676_s19  ;;  %p4680_p9 = scmp.lt.u32.totalorder %s4676_s19, %s5973_s3 }
  0x19   :  { %p4682_p10 = pnand %p4680_p9, %p4677_p8 }
  0x1b   :  { %4685 = shalt.err (!%p4682_p10)
}
  0x1c   :  { %s4686_s24 = scalar_lea.vmem %s4891_s27, 3072  ;;  %p4691_p12 = scmp.lt.s32.totalorder %s4891_s27, %s4891_s27 }
  0x1d   :  { %p4687_p11 = scmp.ne.s32.totalorder %s4891_s27, %s4686_s24  ;;  %p4692_p13 = scmp.lt.s32.totalorder %s4686_s24, %s4686_s24 }
  0x1f   :  { %p4693_p0 = por %p4692_p13, %p4691_p12 }
  0x21   :  { %p4694_p1 = pnand %p4693_p0, %p4687_p11 }
  0x23   :  { %4697 = shalt.err (!%p4694_p1)
}
  0x24   :  { %62 = dma.hbm_to_vmem [thread:$0]  %s5973_s3, 3072, %s4891_s27, [#allocation11], %s4842_s13, %s4842_s13, %s4843_s14  }
  0x25   :  { %s4844_s26 = smov [#allocation13]   ;;  %s4845_s29 = smov [#allocation4]  }
  0x26   :  { %s78_s28 = sshll.u32 %s4844_s26, 4  ;;  %s22_s30 = sshll.u32 %s4845_s29, 4  ;;  %s79_s28 = int_to_ptr.vmem [resolvable:$true] %s78_s28  ;;  %s4928_s30 = int_to_ptr.vmem [resolvable:$true] %s22_s30 }
  0x27   :  { %s4698_s10 = scalar_lea.hbm %s5975_s5, 1024 }
  0x28   :  { %p4699_p2 = scmp.ne.s32.totalorder %s5975_s5, %s4698_s10  ;;  %p4702_p3 = scmp.lt.u32.totalorder %s4698_s10, %s5975_s5 }
  0x2a   :  { %p4704_p4 = pnand %p4702_p3, %p4699_p2 }
  0x2c   :  { %4707 = shalt.err (!%p4704_p4)
}
  0x2d   :  { %s4708_s3 = scalar_lea.vmem %s79_s28, 1024  ;;  %p4713_p6 = scmp.lt.s32.totalorder %s79_s28, %s79_s28 }
  0x2e   :  { %p4709_p5 = scmp.ne.s32.totalorder %s79_s28, %s4708_s3  ;;  %p4714_p7 = scmp.lt.s32.totalorder %s4708_s3, %s4708_s3 }
  0x30   :  { %p4715_p8 = por %p4714_p7, %p4713_p6 }
  0x32   :  { %p4716_p9 = pnand %p4715_p8, %p4709_p5 }
  0x34   :  { %4719 = shalt.err (!%p4716_p9)
}
  0x35   :  { %84 = dma.hbm_to_vmem [thread:$0]  %s5975_s5, 1024, %s79_s28, [#allocation14], %s4842_s13, %s4842_s13, %s4843_s14  }
  0x36   :  { %s4720_s20 = scalar_lea.hbm %s5970_s0, 2560 }
  0x37   :  { %p4721_p10 = scmp.ne.s32.totalorder %s5970_s0, %s4720_s20  ;;  %p4724_p11 = scmp.lt.u32.totalorder %s4720_s20, %s5970_s0 }
  0x39   :  { %p4726_p12 = pnand %p4724_p11, %p4721_p10 }
  0x3b   :  { %4729 = shalt.err (!%p4726_p12)
}
  0x3c   :  { %s4730_s1 = scalar_lea.vmem %s4928_s30, 2560  ;;  %p4735_p0 = scmp.lt.s32.totalorder %s4928_s30, %s4928_s30 }
  0x3d   :  { %p4731_p13 = scmp.ne.s32.totalorder %s4928_s30, %s4730_s1  ;;  %p4736_p1 = scmp.lt.s32.totalorder %s4730_s1, %s4730_s1 }
  0x3f   :  { %p4737_p2 = por %p4736_p1, %p4735_p0 }
  0x41   :  { %p4738_p3 = pnand %p4737_p2, %p4731_p13 }
  0x43   :  { %4741 = shalt.err (!%p4738_p3)
}
  0x44   :  { %28 = dma.hbm_to_vmem [thread:$0]  %s5970_s0, 2560, %s4928_s30, [#allocation5], %s4842_s13, %s4842_s13, %s4843_s14  }
  0x45   :  { %s4846_s26 = smov [#allocation9]   ;;  %s4847_s29 = smov [#allocation12]  }
  0x46   :  { %s47_s28 = sshll.u32 %s4846_s26, 4  ;;  %s69_s8 = sshll.u32 %s4847_s29, 4  ;;  %s48_s28 = int_to_ptr.vmem [resolvable:$true] %s47_s28  ;;  %s70_s8 = int_to_ptr.vmem [resolvable:$true] %s69_s8 }
  0x47   :  { %s4742_s11 = scalar_lea.hbm %s5972_s2, 16 }
  0x48   :  { %p4743_p4 = scmp.ne.s32.totalorder %s5972_s2, %s4742_s11  ;;  %p4746_p5 = scmp.lt.u32.totalorder %s4742_s11, %s5972_s2 }
  0x4a   :  { %p4748_p6 = pnand %p4746_p5, %p4743_p4 }
  0x4c   :  { %4751 = shalt.err (!%p4748_p6)
}
  0x4d   :  { %s4752_s0 = scalar_lea.vmem %s48_s28, 16  ;;  %s4756_s30 = scalar_lea.vmem %s48_s28, 32 }
  0x4e   :  { %p4753_p7 = scmp.ne.s32.totalorder %s48_s28, %s4752_s0  ;;  %p4757_p8 = scmp.lt.s32.totalorder %s48_s28, %s48_s28 }
  0x4f   :  { %p4758_p9 = scmp.lt.s32.totalorder %s4756_s30, %s4752_s0 }
  0x51   :  { %p4759_p10 = por %p4758_p9, %p4757_p8 }
  0x53   :  { %p4760_p11 = pnand %p4759_p10, %p4753_p7 }
  0x55   :  { %4763 = shalt.err (!%p4760_p11)
}
  0x56   :  { %50 = dma.hbm_to_vmem [thread:$0]  %s5972_s2, 16, %s48_s28, [#allocation8]  }
  0x57   :  { %s4764_s20 = scalar_lea.hbm %s5974_s4, 16 }
  0x58   :  { %p4765_p12 = scmp.ne.s32.totalorder %s5974_s4, %s4764_s20  ;;  %p4768_p13 = scmp.lt.u32.totalorder %s4764_s20, %s5974_s4 }
  0x5a   :  { %p4770_p0 = pnand %p4768_p13, %p4765_p12 }
  0x5c   :  { %4773 = shalt.err (!%p4770_p0)
}
  0x5d   :  { %s4774_s1 = scalar_lea.vmem %s70_s8, 16  ;;  %s4778_s5 = scalar_lea.vmem %s70_s8, 32 }
  0x5e   :  { %p4775_p1 = scmp.ne.s32.totalorder %s70_s8, %s4774_s1  ;;  %p4779_p2 = scmp.lt.s32.totalorder %s70_s8, %s70_s8 }
  0x5f   :  { %p4780_p3 = scmp.lt.s32.totalorder %s4778_s5, %s4774_s1 }
  0x61   :  { %p4781_p4 = por %p4780_p3, %p4779_p2 }
  0x63   :  { %p4782_p5 = pnand %p4781_p4, %p4775_p1 }
  0x65   :  { %4785 = shalt.err (!%p4782_p5)
}
  0x66   :  { %72 = dma.hbm_to_vmem [thread:$0]  %s5974_s4, 16, %s70_s8, [#allocation11]  }
  0x67   :  { %s4848_s26 = smov [#allocation15]   ;;  %s4786_s10 = scalar_lea.hbm %s5976_s6, 16 }
  0x68   :  { %s91_s28 = sshll.u32 %s4848_s26, 4  ;;  %p4787_p6 = scmp.ne.s32.totalorder %s5976_s6, %s4786_s10  ;;  %s92_s28 = int_to_ptr.vmem [resolvable:$true] %s91_s28 }
  0x69   :  { %p4790_p7 = scmp.lt.u32.totalorder %s4786_s10, %s5976_s6 }
  0x6b   :  { %p4792_p8 = pnand %p4790_p7, %p4787_p6 }
  0x6d   :  { %4795 = shalt.err (!%p4792_p8)
}
  0x6e   :  { %s4796_s3 = scalar_lea.vmem %s92_s28, 16  ;;  %s4800_s4 = scalar_lea.vmem %s92_s28, 32 }
  0x6f   :  { %p4797_p9 = scmp.ne.s32.totalorder %s92_s28, %s4796_s3  ;;  %p4801_p10 = scmp.lt.s32.totalorder %s92_s28, %s92_s28 }
  0x70   :  { %p4802_p11 = scmp.lt.s32.totalorder %s4800_s4, %s4796_s3 }
  0x72   :  { %p4803_p12 = por %p4802_p11, %p4801_p10 }
  0x74   :  { %p4804_p13 = pnand %p4803_p12, %p4797_p9 }
  0x76   :  { %4807 = shalt.err (!%p4804_p13)
}
  0x77   :  { %94 = dma.hbm_to_vmem [thread:$0]  %s5976_s6, 16, %s92_s28, [#allocation14]  }
  0x78   :  { %4830 = dma.done.wait [#allocation5], 2560  }
  0x79   :  { %4831 = vsyncadd [#allocation5], 4294964736 }
  0x7a   :  { %4832 = dma.done.wait [#allocation8], 3088  }
  0x7b   :  { %4833 = vsyncadd [#allocation8], 4294964208 }
  0x7c   :  { %4834 = dma.done.wait [#allocation11], 3088  }
  0x7d   :  { %4835 = vsyncadd [#allocation11], 4294964208 }
  0x7e   :  { %4836 = dma.done.wait [#allocation14], 1040  }
  0x7f   :  { %4837 = vsyncadd [#allocation14], 4294966256  ;;  %v4566_v0 = vld [vmem:[#allocation7 + $0x40] sm:$0xff]   ;;  %v4568_v2 = vld [vmem:[#allocation7 + $0x48] sm:$0xff]   ;;  %vm341_vm0 = vcmask 1042432   ;;  %vm342_vm1 = vcmask 1046532  }
  0x80   :  { %v4567_v1 = vld [vmem:[#allocation7] sm:$0xff]   ;;  %4099 = vmatprep.subr.bf16.mxu0 %v4566_v0  ;;  %4539 = vmatprep.subr.bf16.mxu1 %v4566_v0  ;;  %v4569_v3 = vld [vmem:[#allocation7 + $0x8] sm:$0xff]   ;;  %v4570_v4 = vld [vmem:[#allocation7 + $0x50] sm:$0xff]   ;;  %vm608_vm3 = vcmask 1041408   ;;  %vm609_vm4 = vcmask 1045508   ;;  %s4850_s6 = smov [#allocation16]  }
  0x81   :  { %4100 = vmatpush3.bf16.msra.mxu0 %v4567_v1  ;;  %4547 = vmatpush3.bf16.msra.mxu1 %v4567_v1  ;;  %v4571_v5 = vld [vmem:[#allocation7 + $0x10] sm:$0xff]   ;;  %v4572_v6 = vld [vmem:[#allocation7 + $0x58] sm:$0xff]   ;;  %v4574_v8 = vld [vmem:[#allocation7 + $0x60] sm:$0xff]   ;;  %s3650_s30 = sshll.u32 %s4850_s6, 4  ;;  %s3651_s30 = int_to_ptr.vmem [resolvable:$true] %s3650_s30 }
  0x82   :  { %4101 = vmatprep.subr.bf16.mxu0 %v4568_v2  ;;  %4540 = vmatprep.subr.bf16.mxu1 %v4568_v2  ;;  %v4573_v7 = vld [vmem:[#allocation7 + $0x18] sm:$0xff]   ;;  %vm5001_vm2 = vmor %vm341_vm0, %vm342_vm1  ;;  %v4575_v10 = vld [vmem:[#allocation7 + $0x20] sm:$0xff]   ;;  %s4808_s27 = scalar_lea.vmem %s3651_s30, 2048  ;;  %p4813_p1 = scmp.lt.s32.totalorder %s3651_s30, %s3651_s30 }
  0x83   :  { %v4576_v11 = vld [vmem:[#allocation7 + $0x68] sm:$0xff]   ;;  %v261_v12 = vld [vmem:[#allocation4] sm:$0xe]  ;;  %v262_v13 = vld [vmem:[#allocation4 + $0x4] sm:$0xf]  ;;  %p4809_p0 = scmp.ne.s32.totalorder %s3651_s30, %s4808_s27  ;;  %p4814_p2 = scmp.lt.s32.totalorder %s4808_s27, %s4808_s27 }
  0x84   :  { %v263_v14 = vld [vmem:[#allocation4 + $0x8] sm:$0xf]  ;;  %v3681_v15 = vrot.slane %v261_v12, 9  ;;  %v346_v16 = vrot.slane %v262_v13, 5  ;;  %v291_v18 = vld [vmem:[#allocation4 + $0x78] sm:$0xe]  ;;  %vm5039_vm5 = vmor %vm608_vm3, %vm609_vm4 }
  0x85   :  { %4102 = vmatpush3.bf16.msra.mxu0 %v4569_v3  ;;  %4548 = vmatpush3.bf16.msra.mxu1 %v4569_v3  ;;  %v349_v17 = vrot.slane %v263_v14, 5  ;;  %v292_v19 = vld [vmem:[#allocation4 + $0x7c] sm:$0xf]  ;;  %v293_v20 = vld [vmem:[#allocation4 + $0x80] sm:$0xf]  ;;  %v3687_v21 = vrot.slane %v291_v18, 9  ;;  %p4815_p3 = por %p4814_p2, %p4813_p1 }
  0x86   :  { %4103 = vmatprep.subr.bf16.mxu0 %v4570_v4  ;;  %4541 = vmatprep.subr.bf16.mxu1 %v4570_v4  ;;  %v4577_v22 = vld [vmem:[#allocation7 + $0x28] sm:$0xff]   ;;  %v347_v23 = vsel %vm5001_vm2, %v3681_v15, %v346_v16  ;;  %v348_v24 = vrot.slane %v346_v16, 4  ;;  %v424_v25 = vrot.slane %v292_v19, 5  ;;  %v4578_v26 = vld [vmem:[#allocation7 + $0x70] sm:$0xff]   ;;  %v427_v27 = vrot.slane %v293_v20, 5  ;;  %v4580_v32 = vld [vmem:[#allocation7 + $0x78] sm:$0xff]  }
  0x87   :  { %v4579_v28 = vld [vmem:[#allocation7 + $0x30] sm:$0xff]   ;;  %v351_v33 = vrot.slane %v349_v17, 4  ;;  %v264_v37 = vld [vmem:[#allocation4 + $0xc] sm:$0xf]  ;;  %v294_v42 = vld [vmem:[#allocation4 + $0x84] sm:$0xf]  ;;  %p4816_p4 = pnand %p4815_p3, %p4809_p0 }
  0x88   :  { %v350_v29 = vsel %vm5001_vm2, %v348_v24, %v349_v17  ;;  %v425_v30 = vsel %vm5001_vm2, %v3687_v21, %v424_v25  ;;  %v426_v31 = vrot.slane %v424_v25, 4  ;;  %v429_v35 = vrot.slane %v427_v27, 4  ;;  %v265_v38 = vld [vmem:[#allocation4 + $0x10] sm:$0x1]  ;;  %v295_v43 = vld [vmem:[#allocation4 + $0x88] sm:$0x1] }
  0x89   :  { %4104 = vmatpush3.bf16.msra.mxu0 %v4571_v5  ;;  %4549 = vmatpush3.bf16.msra.mxu1 %v4571_v5  ;;  %v3689_v34 = vcombine.low %v347_v23, %v350_v29  ;;  %v352_v40 = vrot.slane %v264_v37, 5  ;;  %v355_v41 = vrot.slane %v265_v38, 5  ;;  %v430_v44 = vrot.slane %v294_v42, 5  ;;  %v4581_v46 = vld [vmem:[#allocation7 + $0x38] sm:$0xff]   ;;  %v4584_v48 = vld [vmem:[#allocation7 + $0x80] sm:$0xff]   ;;  %v4585_v59 = vld [vmem:[#allocation7 + $0x88] sm:$0xff]  }
  0x8a   :  { %4105 = vmatprep.subr.bf16.mxu0 %v4572_v6  ;;  %4542 = vmatprep.subr.bf16.mxu1 %v4572_v6  ;;  %v428_v36 = vsel %vm5001_vm2, %v426_v31, %v427_v27  ;;  %v433_v45 = vrot.slane %v295_v43, 5  ;;  %v4582_v50 = vld [vmem:[#allocation4] sm:$0xff]   ;;  %v266_v53 = vld [vmem:[#allocation4 + $0x14] sm:$0xe]  ;;  %v4583_v54 = vld [vmem:[#allocation4 + $0x78] sm:$0xff]  }
  0x8b   :  { %v3701_v39 = vcombine.low %v425_v30, %v428_v36  ;;  %1074 = vmatprep.mubr.bf16.mxu0 %v3689_v34  ;;  %v354_v47 = vrot.slane %v352_v40, 4  ;;  %v432_v49 = vrot.slane %v430_v44, 4  ;;  %v353_v51 = vsel %vm5001_vm2, %v351_v33, %v352_v40  ;;  %v267_v57 = vld [vmem:[#allocation4 + $0x18] sm:$0xf]  ;;  %v268_v58 = vld [vmem:[#allocation4 + $0x1c] sm:$0xf] }
  0x8c   :  { %v431_v55 = vsel %vm5001_vm2, %v429_v35, %v430_v44  ;;  %v3682_v60 = vrot.slane %v266_v53, 9  ;;  %v359_v61 = vrot.slane %v267_v57, 5  ;;  %v296_v62 = vld [vmem:[#allocation4 + $0x8c] sm:$0xe]  ;;  %v297_v63 = vld [vmem:[#allocation4 + $0x90] sm:$0xf] }
  0x8d   :  { %4106 = vmatpush3.bf16.msra.mxu0 %v4573_v7  ;;  %4550 = vmatpush3.bf16.msra.mxu1 %v4573_v7  ;;  %v356_v52 = vsel %vm5001_vm2, %v354_v47, %v355_v41  ;;  %v434_v56 = vsel %vm5001_vm2, %v432_v49, %v433_v45  ;;  %v362_v1 = vrot.slane %v268_v58, 5  ;;  %v298_v2 = vld [vmem:[#allocation4 + $0x94] sm:$0xf]  ;;  %v437_v3 = vrot.slane %v297_v63, 5  ;;  %v270_v14 = vld [vmem:[#allocation4 + $0x24] sm:$0x1] }
  0x8e   :  { %4107 = vmatprep.subr.bf16.mxu0 %v4574_v8  ;;  %4543 = vmatprep.subr.bf16.mxu1 %v4574_v8  ;;  %v3690_v0 = vcombine.low %v353_v51, %v356_v52  ;;  %v3702_v4 = vcombine.low %v431_v55, %v434_v56  ;;  %v361_v5 = vrot.slane %v359_v61, 4  ;;  %v3688_v6 = vrot.slane %v296_v62, 9  ;;  %v299_v16 = vld [vmem:[#allocation4 + $0x98] sm:$0xf]  ;;  %v4586_v17 = vld [vmem:[#allocation4 + $0x8] sm:$0xff]   ;;  %v4587_v18 = vld [vmem:[#allocation4 + $0x80] sm:$0xff]  }
  0x8f   :  { %1170 = vmatprep.mubr.bf16.mxu1 %v3701_v39  ;;  %v439_v7 = vrot.slane %v437_v3, 4  ;;  %v440_v8 = vrot.slane %v298_v2, 5  ;;  %v360_v12 = vsel %vm5001_vm2, %v3682_v60, %v359_v61  ;;  %v364_v21 = vrot.slane %v362_v1, 4  ;;  %v300_v23 = vld [vmem:[#allocation4 + $0x9c] sm:$0x1]  ;;  %v4592_v40 = vld [vmem:[#allocation7 + $0xa0] sm:$0xff]  }
  0x90   :  { %v363_v13 = vsel %vm5001_vm2, %v361_v5, %v362_v1  ;;  %v438_v19 = vsel %vm5001_vm2, %v3688_v6, %v437_v3  ;;  %v4589_v27 = vld [vmem:[#allocation7 + $0x98] sm:$0xff]   ;;  %v446_v31 = vrot.slane %v300_v23, 5  ;;  %v272_v33 = vld [vmem:[#allocation4 + $0x2c] sm:$0xf]  ;;  %v273_v34 = vld [vmem:[#allocation4 + $0x30] sm:$0xf] }
  0x91   :  { %4108 = vmatpush3.bf16.msra.mxu0 %v4575_v10  ;;  %4551 = vmatpush3.bf16.msra.mxu1 %v4575_v10  ;;  %v269_v10 = vld [vmem:[#allocation4 + $0x20] sm:$0xf]  ;;  %v441_v20 = vsel %vm5001_vm2, %v439_v7, %v440_v8  ;;  %v3691_v24 = vcombine.low %v360_v12, %v363_v13  ;;  %v442_v29 = vrot.slane %v440_v8, 4  ;;  %v372_v37 = vrot.slane %v272_v33, 5  ;;  %v529_v39 = vld [vmem:[#allocation4 + $0x4] sm:$0xf] }
  0x92   :  { %4109 = vmatprep.subr.bf16.mxu0 %v4576_v11  ;;  %4544 = vmatprep.subr.bf16.mxu1 %v4576_v11  ;;  %v4588_v11 = vld [vmem:[#allocation7 + $0x90] sm:$0xff]   ;;  %v365_v15 = vrot.slane %v269_v10, 5  ;;  %v528_v38 = vld [vmem:[#allocation4] sm:$0xc]  ;;  %v530_v41 = vld [vmem:[#allocation4 + $0x8] sm:$0xf] }
  0x93   :  { %v613_v42 = vrot.slane %v529_v39, 6  ;;  %v4590_v43 = vld [vmem:[#allocation4 + $0x14] sm:$0xff]   ;;  %v4591_v47 = vld [vmem:[#allocation4 + $0x8c] sm:$0xff]   ;;  %v375_v51 = vrot.slane %v273_v34, 5  ;;  %v374_v53 = vrot.slane %v372_v37, 4  ;;  %v616_v56 = vrot.slane %v530_v41, 6 }
  0x94   :  { %v367_v25 = vrot.slane %v365_v15, 4  ;;  %v366_v35 = vsel %vm5001_vm2, %v364_v21, %v365_v15  ;;  %v274_v52 = vld [vmem:[#allocation4 + $0x34] sm:$0xf]  ;;  %v532_v57 = vld [vmem:[#allocation4 + $0x10] sm:$0x3]  ;;  %v4594_v10 = vld [vmem:[#allocation4 + $0x1c] sm:$0xff]  }
  0x95   :  { %4110 = vmatpush3.bf16.msra.mxu0 %v4577_v22  ;;  %4552 = vmatpush3.bf16.msra.mxu1 %v4577_v22  ;;  %v443_v22 = vrot.slane %v299_v16, 5  ;;  %v615_v55 = vrot.slane %v613_v42, 4  ;;  %v275_v61 = vld [vmem:[#allocation4 + $0x38] sm:$0x1]  ;;  %v378_v62 = vrot.slane %v274_v52, 5  ;;  %v376_v5 = vsel %vm5001_vm2, %v374_v53, %v375_v51 }
  0x96   :  { %4111 = vmatprep.subr.bf16.mxu0 %v4578_v26  ;;  %4545 = vmatprep.subr.bf16.mxu1 %v4578_v26  ;;  %v368_v26 = vrot.slane %v270_v14, 5  ;;  %v534_v63 = vld [vmem:[#allocation4 + $0x18] sm:$0xf]  ;;  %v535_v1 = vld [vmem:[#allocation4 + $0x1c] sm:$0xf]  ;;  %v618_v7 = vrot.slane %v616_v56, 4 }
  0x97   :  { %v445_v30 = vrot.slane %v443_v22, 4  ;;  %v444_v44 = vsel %vm5001_vm2, %v442_v29, %v443_v22  ;;  %v626_v3 = vrot.slane %v534_v63, 6  ;;  %v622_v8 = vrot.slane %v532_v57, 6  ;;  %v4595_v21 = vld [vmem:[#allocation4 + $0x94] sm:$0xff]   ;;  %v5056_v23 = vld [vmem:[#allocation4 + $0x3c] sm:$0xe] }
  0x98   :  { %v369_v36 = vsel %vm5001_vm2, %v367_v25, %v368_v26  ;;  %v617_v12 = vsel %vm5039_vm5, %v615_v55, %v616_v56  ;;  %v377_v14 = vrot.slane %v375_v51, 4  ;;  %v381_v15 = vrot.slane %v275_v61, 5  ;;  %v5069_v33 = vld [vmem:[#allocation4 + $0x30] sm:$0xf]  ;;  %v5071_v34 = vld [vmem:[#allocation4 + $0x34] sm:$0xf] }
  0x99   :  { %4112 = vmatpush3.bf16.msra.mxu0 %v4579_v28  ;;  %4553 = vmatpush3.bf16.msra.mxu1 %v4579_v28  ;;  %v3703_v28 = vcombine.low %v438_v19, %v441_v20  ;;  %v447_v45 = vsel %vm5001_vm2, %v445_v30, %v446_v31  ;;  %v3692_v49 = vcombine.low %v366_v35, %v369_v36  ;;  %v380_v16 = vrot.slane %v378_v62, 4  ;;  %v5053_v19 = vld [vmem:[#allocation4 + $0x24] sm:$0x3]  ;;  %v5093_v52 = vld [vmem:[#allocation4 + $0x40] sm:$0xf] }
  0x9a   :  { %4113 = vmatprep.subr.bf16.mxu0 %v4580_v32  ;;  %4546 = vmatprep.subr.bf16.mxu1 %v4580_v32  ;;  %v271_v32 = vld [vmem:[#allocation4 + $0x28] sm:$0xe]  ;;  %v3704_v58 = vcombine.low %v444_v44, %v447_v45  ;;  %v628_v22 = vrot.slane %v626_v3, 4  ;;  %v379_v31 = vsel %vm5001_vm2, %v377_v14, %v378_v62  ;;  %v278_v39 = vld [vmem:[#allocation4 + $0x44] sm:$0xf] }
  0x9b   :  { %v382_v35 = vsel %vm5001_vm2, %v380_v16, %v381_v15  ;;  %v538_v44 = vld [vmem:[#allocation4 + $0x28] sm:$0xc]  ;;  %v5095_v56 = vld [vmem:[#allocation4 + $0x3c] sm:$0xc]  ;;  %v5097_v57 = vld [vmem:[#allocation4 + $0x44] sm:$0xf] }
  0x9c   :  { %v3707_v61 = vrot.slane %v538_v44, 10  ;;  %v5126_v16 = vld [vmem:[#allocation4 + $0x58] sm:$0xf] }
  0x9d   :  { %4114 = vmatpush3.bf16.msra.mxu0 %v4581_v46  ;;  %4554 = vmatpush3.bf16.msra.mxu1 %v4581_v46  ;;  %v531_v46 = vld [vmem:[#allocation4 + $0xc] sm:$0xf] }
  0x9e   :  { %4395 = vmatprep.subr.bf16.mxu1 %v4584_v48  ;;  %v619_v60 = vrot.slane %v531_v46, 6  ;;  %v642_v46 = vrot.slane %v5069_v33, 6  ;;  %v5157_v33 = vld [vmem:[#allocation4 + $0x60] sm:$0x3] }
  0xa0   :  { %1075 = vmatmul.mubr.bf16.vlgmr.msra.gmra.mrb[0].mxu0 %v4582_v50  ;;  %1171 = vmatmul.mubr.bf16.vlgmr.msra.gmra.mrb[0].mxu1 %v4583_v54  ;;  %v3683_v50 = vrot.slane %v271_v32, 9  ;;  %v3705_v54 = vrot.slane %v528_v38, 10  ;;  %v621_v13 = vrot.slane %v619_v60, 4  ;;  %v620_v29 = vsel %vm5039_vm5, %v618_v7, %v619_v60 }
  0xa1   :  { %4396 = vmatpush3.bf16.msra.mxu1 %v4584_v48  ;;  %1082 = vmatprep.mubr.bf16.mxu0 %v3690_v0  ;;  %v4593_v48 = vld [vmem:[#allocation7 + $0xa8] sm:$0xff]   ;;  %v533_v0 = vld [vmem:[#allocation4 + $0x14] sm:$0xc]  ;;  %v635_v32 = vrot.slane %v5053_v19, 6  ;;  %v3708_v7 = vrot.slane %v5095_v56, 10 }
  0xa2   :  { %4397 = vmatprep.subr.bf16.mxu1 %v4585_v59  ;;  %1178 = vmatprep.mubr.bf16.mxu1 %v3702_v4  ;;  %v373_v2 = vsel %vm5001_vm2, %v3683_v50, %v372_v37  ;;  %v5045_v4 = vld [vmem:[#allocation4 + $0x20] sm:$0xf]  ;;  %v614_v6 = vsel %vm5039_vm5, %v3705_v54, %v613_v42  ;;  %v623_v30 = vsel %vm5039_vm5, %v621_v13, %v622_v8  ;;  %v3684_v42 = vrot.slane %v5056_v23, 9  ;;  %v5118_v13 = vld [vmem:[#allocation4 + $0x54] sm:$0xf] }
  0xa3   :  { %v632_v20 = vrot.slane %v5045_v4, 6  ;;  %v3693_v25 = vcombine.low %v373_v2, %v376_v5  ;;  %v3713_v26 = vcombine.low %v614_v6, %v617_v12  ;;  %v388_v50 = vrot.slane %v278_v39, 5  ;;  %v5116_v12 = vld [vmem:[#allocation4 + $0x54] sm:$0xf]  ;;  %v5162_v39 = vld [vmem:[#allocation4 + $0x64] sm:$0xc] }
  0xa4   :  { %v3714_v53 = vcombine.low %v620_v29, %v623_v30  ;;  %v3694_v54 = vcombine.low %v379_v31, %v382_v35  ;;  %v655_v8 = vrot.slane %v5097_v57, 6  ;;  %v4599_v23 = vld [vmem:[#allocation4 + $0x30] sm:$0xff]   ;;  %v5149_v29 = vld [vmem:[#allocation4 + $0x5c] sm:$0xf]  ;;  %v665_v31 = vrot.slane %v5118_v13, 6 }
  0xa5   :  { %4398 = vmatpush3.bf16.msra.mxu1 %v4585_v59  ;;  %v634_v38 = vrot.slane %v632_v20, 4  ;;  %v390_v63 = vrot.slane %v388_v50, 4  ;;  %v404_v44 = vrot.slane %v5149_v29, 5 }
  0xa6   :  { %4399 = vmatprep.subr.bf16.mxu1 %v4588_v11  ;;  %v5153_v30 = vrot.slane %v655_v8, 4 }
  0xa7   :  { %v636_v15 = vsel %vm5039_vm5, %v634_v38, %v635_v32  ;;  %v668_v32 = vrot.slane %v5126_v16, 6  ;;  %v5160_v38 = vld [vmem:[#allocation4 + $0x60] sm:$0x1] }
  0xa8   :  { %1083 = vmatmul.mubr.bf16.gmra.mrb[4].mxu0 %v4586_v17  ;;  %1179 = vmatmul.mubr.bf16.gmra.mrb[4].mxu1 %v4587_v18  ;;  %v3706_v17 = vrot.slane %v533_v0, 10  ;;  %v629_v18 = vrot.slane %v535_v1, 6  ;;  %v5100_v1 = vrot.slane %v642_v46, 4 }
  0xa9   :  { %4400 = vmatpush3.bf16.msra.mxu1 %v4588_v11  ;;  %1090 = vmatprep.mubr.bf16.mxu0 %v3691_v24  ;;  %v4596_v11 = vld [vmem:[#allocation7 + $0xb0] sm:$0xff]   ;;  %v5058_v24 = vld [vmem:[#allocation4 + $0x40] sm:$0xf] }
  0xaa   :  { %4401 = vmatprep.subr.bf16.mxu1 %v4589_v27  ;;  %1186 = vmatprep.mubr.bf16.mxu1 %v3703_v28  ;;  %v4597_v28 = vld [vmem:[#allocation7 + $0xb8] sm:$0xff]   ;;  %v627_v36 = vsel %vm5039_vm5, %v3706_v17, %v626_v3  ;;  %v631_v37 = vrot.slane %v629_v18, 4  ;;  %v630_v41 = vsel %vm5039_vm5, %v628_v22, %v629_v18  ;;  %v652_v3 = vrot.slane %v5093_v52, 6 }
  0xab   :  { %v3715_v55 = vcombine.low %v627_v36, %v630_v41  ;;  %v5139_v22 = vld [vmem:[#allocation4 + $0x5c] sm:$0xf] }
  0xac   :  { %v633_v14 = vsel %vm5039_vm5, %v631_v37, %v632_v20  ;;  %v654_v19 = vrot.slane %v652_v3, 4  ;;  %v5137_v20 = vld [vmem:[#allocation4 + $0x58] sm:$0xf]  ;;  %v671_v35 = vrot.slane %v5139_v22, 6 }
  0xad   :  { %4402 = vmatpush3.bf16.msra.mxu1 %v4589_v27  ;;  %v5060_v27 = vld [vmem:[#allocation4 + $0x2c] sm:$0xf]  ;;  %v3716_v36 = vcombine.low %v633_v14, %v636_v15  ;;  %v5253_v14 = vld [vmem:[#allocation4 + $0x78] sm:$0xc] }
  0xae   :  { %4403 = vmatprep.subr.bf16.mxu1 %v4592_v40  ;;  %v639_v45 = vrot.slane %v5060_v27, 6  ;;  %v398_v27 = vrot.slane %v5116_v12, 5 }
  0xb0   :  { %1091 = vmatmul.mubr.bf16.gmra.mrb[8].mxu0 %v4590_v43  ;;  %1187 = vmatmul.mubr.bf16.gmra.mrb[8].mxu1 %v4591_v47  ;;  %v385_v43 = vrot.slane %v5058_v24, 5  ;;  %v5087_v47 = vld [vmem:[#allocation4 + $0x38] sm:$0x3]  ;;  %v641_v0 = vrot.slane %v639_v45, 4  ;;  %v640_v24 = vsel %vm5039_vm5, %v3707_v61, %v639_v45  ;;  %v5195_v61 = vld [vmem:[#allocation4 + $0x70] sm:$0xf] }
  0xb1   :  { %4404 = vmatpush3.bf16.msra.mxu1 %v4592_v40  ;;  %1098 = vmatprep.mubr.bf16.mxu0 %v3692_v49  ;;  %v5079_v40 = vld [vmem:[#allocation4 + $0x48] sm:$0xf]  ;;  %v5090_v49 = vld [vmem:[#allocation4 + $0x4c] sm:$0x1]  ;;  %v648_v62 = vrot.slane %v5087_v47, 6 }
  0xb2   :  { %4405 = vmatprep.subr.bf16.mxu1 %v4593_v48  ;;  %1194 = vmatprep.mubr.bf16.mxu1 %v3704_v58  ;;  %v391_v51 = vrot.slane %v5079_v40, 5  ;;  %v4598_v58 = vld [vmem:[#allocation4 + $0x28] sm:$0xff]   ;;  %v387_v60 = vrot.slane %v385_v43, 4  ;;  %v394_v6 = vrot.slane %v5090_v49, 5  ;;  %v386_v17 = vsel %vm5001_vm2, %v3684_v42, %v385_v43  ;;  %v5239_v49 = vld [vmem:[#allocation4 + $0x7c] sm:$0xf] }
  0xb3   :  { %v5164_v40 = vld [vmem:[#allocation4 + $0x68] sm:$0xf]  ;;  %v691_v57 = vrot.slane %v5239_v49, 6  ;;  %v5276_v49 = vld [vmem:[#allocation4 + $0x74] sm:$0x1] }
  0xb4   :  { %v5107_v5 = vrot.slane %v391_v51, 4  ;;  %v389_v18 = vsel %vm5001_vm2, %v387_v60, %v388_v50  ;;  %v5168_v42 = vsel %vm5001_vm2, %v390_v63, %v391_v51  ;;  %v401_v50 = vrot.slane %v5137_v20, 5 }
  0xb5   :  { %4406 = vmatpush3.bf16.msra.mxu1 %v4593_v48  ;;  %v645_v48 = vrot.slane %v5071_v34, 6  ;;  %v3695_v37 = vcombine.low %v386_v17, %v389_v18  ;;  %v5184_v51 = vrot.slane %v665_v31, 4  ;;  %v674_v60 = vrot.slane %v5157_v33, 6  ;;  %v4606_v17 = vld [vmem:[#allocation10 + $0x80] sm:$0xff]  }
  0xb6   :  { %4407 = vmatprep.subr.bf16.mxu1 %v4596_v11  ;;  %v5197_v63 = vrot.slane %v401_v50, 4  ;;  %v5978_v15 = vrot.slane %v5164_v40, 6  ;;  %v4600_v34 = vld [vmem:[#allocation4 + $0x3c] sm:$0xff]   ;;  %v395_v47 = vsel %vm5001_vm2, %v5107_v5, %v394_v6  ;;  %4443 = vmatprep.subr.bf16.mxu0 %v4606_v17  ;;  %v4607_v5 = vld [vmem:[#allocation10 + $0x88] sm:$0xff]   ;;  %v693_v13 = vrot.slane %v691_v57, 4 }
  0xb7   :  { %v5104_v2 = vrot.slane %v645_v48, 4  ;;  %v646_v18 = vsel %vm5039_vm5, %v5100_v1, %v645_v48  ;;  %v653_v48 = vsel %vm5039_vm5, %v3708_v7, %v652_v3  ;;  %v684_v1 = vrot.slane %v5195_v61, 6  ;;  %v5241_v6 = vld [vmem:[#allocation4 + $0x80] sm:$0xf]  ;;  %4444 = vmatpush3.bf16.msra.mxu0 %v4606_v17  ;;  %v5246_v3 = vld [vmem:[#allocation4 + $0x6c] sm:$0xf] }
  0xb8   :  { %1099 = vmatmul.mubr.bf16.gmra.mrb[12].mxu0 %v4594_v10  ;;  %1195 = vmatmul.mubr.bf16.gmra.mrb[12].mxu1 %v4595_v21  ;;  %v5112_v10 = vld [vmem:[#allocation4 + $0x48] sm:$0xf]  ;;  %v5135_v21 = vld [vmem:[#allocation4 + $0x50] sm:$0xe]  ;;  %v680_v56 = vrot.slane %v5978_v15, 4  ;;  %v694_v15 = vrot.slane %v5241_v6, 6 }
  0xb9   :  { %4408 = vmatpush3.bf16.msra.mxu1 %v4596_v11  ;;  %1106 = vmatprep.mubr.bf16.mxu0 %v3693_v25  ;;  %v5114_v11 = vld [vmem:[#allocation4 + $0x4c] sm:$0x3]  ;;  %v658_v4 = vrot.slane %v5112_v10, 6  ;;  %v643_v25 = vsel %vm5039_vm5, %v641_v0, %v642_v46  ;;  %v3685_v45 = vrot.slane %v5135_v21, 9  ;;  %v5176_v46 = vrot.slane %v398_v27, 4 }
  0xba   :  { %4409 = vmatprep.subr.bf16.mxu1 %v4597_v28  ;;  %4411 = vmatprep.mubr.bf16.mxu1 %v3713_v26  ;;  %v661_v26 = vrot.slane %v5114_v11, 6  ;;  %v3717_v41 = vcombine.low %v640_v24, %v643_v25  ;;  %v407_v0 = vrot.slane %v5160_v38, 5  ;;  %v649_v20 = vsel %vm5039_vm5, %v5104_v2, %v648_v62  ;;  %v5217_v25 = vld [vmem:[#allocation4 + $0x74] sm:$0x3]  ;;  %v5237_v2 = vld [vmem:[#allocation4 + $0x68] sm:$0xf] }
  0xbb   :  { %v660_v43 = vrot.slane %v658_v4, 4  ;;  %v656_v62 = vsel %vm5039_vm5, %v654_v19, %v655_v8  ;;  %v3718_v52 = vcombine.low %v646_v18, %v649_v20  ;;  %v5248_v7 = vld [vmem:[#allocation4 + $0x84] sm:$0xf]  ;;  %4445 = vmatprep.subr.bf16.mxu0 %v4607_v5  ;;  %v3696_v8 = vcombine.low %v5168_v42, %v395_v47  ;;  %v5255_v17 = vld [vmem:[#allocation4 + $0x70] sm:$0xf] }
  0xbc   :  { %v3719_v19 = vcombine.low %v653_v48, %v656_v62  ;;  %v686_v20 = vrot.slane %v684_v1, 4  ;;  %v5263_v42 = vld [vmem:[#allocation4 + $0x88] sm:$0x3]  ;;  %v659_v47 = vsel %vm5039_vm5, %v5153_v30, %v658_v4  ;;  %v414_v62 = vrot.slane %v5246_v3, 5  ;;  %v5278_v6 = vld [vmem:[#allocation4 + $0x90] sm:$0xf]  ;;  %4446 = vmatpush3.bf16.msra.mxu0 %v4607_v5 }
  0xbd   :  { %4410 = vmatpush3.bf16.msra.mxu1 %v4597_v28  ;;  %v5147_v28 = vld [vmem:[#allocation4 + $0x50] sm:$0xc]  ;;  %v662_v48 = vsel %vm5039_vm5, %v660_v43, %v661_v26  ;;  %v399_v10 = vsel %vm5001_vm2, %v3685_v45, %v398_v27  ;;  %v402_v11 = vsel %vm5001_vm2, %v5176_v46, %v401_v50  ;;  %v3711_v4 = vrot.slane %v5253_v14, 10  ;;  %v563_v30 = vld [vmem:[#allocation4 + $0x8c] sm:$0xc]  ;;  %v4601_v46 = vld [vmem:[#allocation4 + $0x44] sm:$0xff]  }
  0xbe   :  { %v417_v26 = vrot.slane %v5255_v17, 5  ;;  %v669_v21 = vsel %vm5039_vm5, %v5184_v51, %v668_v32  ;;  %v565_v43 = vld [vmem:[#allocation4 + $0x94] sm:$0xf]  ;;  %v704_v45 = vrot.slane %v5278_v6, 6  ;;  %v696_v50 = vrot.slane %v694_v15, 4 }
  0xbf   :  { %v416_v14 = vrot.slane %v414_v62, 4  ;;  %v3712_v51 = vrot.slane %v563_v30, 10  ;;  %v707_v5 = vrot.slane %v565_v43, 6  ;;  %v4602_v17 = vld [vmem:[#allocation4 + $0x50] sm:$0xff]   ;;  %v5984_v33 = vrot.slane %v5162_v39, 10  ;;  %v4609_v30 = vld [vmem:[#allocation10 + $0x40] sm:$0xff]  }
  0xc0   :  { %1107 = vmatmul.mubr.bf16.gmra.mrb[16].mxu0 %v4598_v58  ;;  %4412 = vmatmul.mubr.bf16.vlgmr.msra.gmra.mrb[16].mxu1 %v3714_v53  ;;  %v3709_v53 = vrot.slane %v5147_v28, 10  ;;  %v5192_v58 = vrot.slane %v671_v35, 4  ;;  %v700_v28 = vrot.slane %v5263_v42, 6  ;;  %v405_v42 = vsel %vm5001_vm2, %v5197_v63, %v404_v44  ;;  %v4610_v43 = vld [vmem:[#allocation10] sm:$0xff]  }
  0xc1   :  { %1114 = vmatprep.mubr.bf16.mxu0 %v3694_v54  ;;  %4415 = vmatprep.mubr.bf16.mxu1 %v3715_v55  ;;  %v5180_v54 = vld [vmem:[#allocation4 + $0x6c] sm:$0xf]  ;;  %v5188_v55 = vrot.slane %v668_v32, 4  ;;  %v419_v32 = vrot.slane %v417_v26, 4  ;;  %v5985_v39 = vrot.slane %v5217_v25, 6  ;;  %v692_v61 = vsel %vm5039_vm5, %v3711_v4, %v691_v57 }
  0xc2   :  { %v681_v24 = vrot.slane %v5180_v54, 6  ;;  %v666_v12 = vsel %vm5039_vm5, %v3709_v53, %v665_v31  ;;  %v3720_v31 = vcombine.low %v659_v47, %v662_v48  ;;  %v420_v53 = vrot.slane %v5276_v49, 5  ;;  %v4603_v54 = vld [vmem:[#allocation4 + $0x58] sm:$0xff]   ;;  %4235 = vmatprep.subr.bf16.mxu1 %v4609_v30 }
  0xc3   :  { %v3721_v3 = vcombine.low %v666_v12, %v669_v21  ;;  %v418_v57 = vsel %vm5001_vm2, %v416_v14, %v417_v26  ;;  %v567_v47 = vld [vmem:[#allocation4 + $0x9c] sm:$0x3]  ;;  %v709_v6 = vrot.slane %v707_v5, 4  ;;  %v4605_v12 = vld [vmem:[#allocation4 + $0x6c] sm:$0xff]   ;;  %4236 = vmatpush3.bf16.msra.mxu1 %v4610_v43  ;;  %v4616_v14 = vld [vmem:[#allocation10 + $0xa0] sm:$0xff]  }
  0xc4   :  { %v683_v18 = vrot.slane %v681_v24, 4  ;;  %v682_v29 = vsel %vm5039_vm5, %v680_v56, %v681_v24  ;;  %v695_v24 = vsel %vm5039_vm5, %v693_v13, %v694_v15  ;;  %v421_v15 = vsel %vm5001_vm2, %v419_v32, %v420_v53  ;;  %v4613_v13 = vld [vmem:[#allocation10 + $0x98] sm:$0xff]   ;;  %v4619_v53 = vld [vmem:[#allocation10 + $0x60] sm:$0xff]  }
  0xc5   :  { %v4849_v32 = vmov 0  }
  0xc6   :  { %v685_v38 = vsel %vm5039_vm5, %v683_v18, %v684_v1  ;;  %v566_v1 = vld [vmem:[#allocation4 + $0x98] sm:$0xf]  ;;  %v3725_v18 = vcombine.low %v692_v61, %v695_v24  ;;  %1396 = vst [vmem:[#allocation2] sm:$0x3] %v4849_v32  ;;  %1397 = vst [vmem:[#allocation2 + $0x14] sm:$0x3] %v4849_v32 }
  0xc7   :  { %1398 = vst [vmem:[#allocation2 + $0x28] sm:$0x3] %v4849_v32  ;;  %1399 = vst [vmem:[#allocation2 + $0x3c] sm:$0x3] %v4849_v32 }
  0xc8   :  { %1115 = vmatmul.mubr.bf16.gmra.mrb[20].mxu0 %v4599_v23  ;;  %4416 = vmatmul.mubr.bf16.gmra.mrb[20].mxu1 %v3716_v36  ;;  %v5214_v23 = vrot.slane %v404_v44, 4  ;;  %v5219_v36 = vld [vmem:[#allocation4 + $0x64] sm:$0xe]  ;;  %1400 = vst [vmem:[#allocation2 + $0x50] sm:$0x3] %v4849_v32 }
  0xc9   :  { %1122 = vmatprep.mubr.bf16.mxu0 %v3695_v37  ;;  %4419 = vmatprep.mubr.bf16.mxu1 %v3717_v41  ;;  %v411_v41 = vrot.slane %v5237_v2, 5  ;;  %v697_v37 = vrot.slane %v5248_v7, 6  ;;  %v5986_v63 = vrot.slane %v5219_v36, 9  ;;  %1401 = vst [vmem:[#allocation2 + $0x64] sm:$0x3] %v4849_v32 }
  0xca   :  { %v408_v22 = vsel %vm5001_vm2, %v5214_v23, %v407_v0  ;;  %1402 = vst [vmem:[#allocation2 + $0x78] sm:$0x3] %v4849_v32  ;;  %1403 = vst [vmem:[#allocation2 + $0x8c] sm:$0x3] %v4849_v32 }
  0xcb   :  { %v413_v27 = vrot.slane %v411_v41, 4  ;;  %v699_v16 = vrot.slane %v697_v37, 4  ;;  %v3698_v44 = vcombine.low %v405_v42, %v408_v22  ;;  %v412_v0 = vsel %vm5001_vm2, %v5986_v63, %v411_v41  ;;  %v4628_v42 = vld [vmem:[#allocation10 + $0x38] sm:$0xff]  }
  0xcc   :  { %v698_v36 = vsel %vm5039_vm5, %v696_v50, %v697_v37  ;;  %v710_v41 = vrot.slane %v566_v1, 6  ;;  %v4604_v37 = vld [vmem:[#allocation4 + $0x64] sm:$0xff]   ;;  %v4614_v50 = vld [vmem:[#allocation10 + $0x50] sm:$0xff]   ;;  %v4629_v22 = vld [vmem:[#allocation10 + $0xb8] sm:$0xff]  }
  0xcd   :  { %v415_v23 = vsel %vm5001_vm2, %v413_v27, %v414_v62  ;;  %v701_v2 = vsel %vm5039_vm5, %v699_v16, %v700_v28  ;;  %v3700_v62 = vcombine.low %v418_v57, %v421_v15  ;;  %v4608_v27 = vld [vmem:[#allocation10 + $0x90] sm:$0xff]   ;;  %v4618_v16 = vld [vmem:[#allocation10 + $0x18] sm:$0xff]  }
  0xce   :  { %v3699_v56 = vcombine.low %v412_v0, %v415_v23  ;;  %v3726_v48 = vcombine.low %v698_v36, %v701_v2  ;;  %v711_v4 = vsel %vm5039_vm5, %v709_v6, %v710_v41  ;;  %4447 = vmatprep.subr.bf16.mxu0 %v4608_v27  ;;  %v4615_v28 = vld [vmem:[#allocation10 + $0x10] sm:$0xff]  }
  0xcf   :  { %4448 = vmatpush3.bf16.msra.mxu0 %v4608_v27 }
  0xd0   :  { %1123 = vmatmul.mubr.bf16.gmra.mrb[24].mxu0 %v4600_v34  ;;  %4420 = vmatmul.mubr.bf16.gmra.mrb[24].mxu1 %v3718_v52  ;;  %v706_v34 = vrot.slane %v704_v45, 4  ;;  %v3697_v52 = vcombine.low %v399_v10, %v402_v11  ;;  %v712_v10 = vrot.slane %v710_v41, 4  ;;  %v713_v11 = vrot.slane %v567_v47, 6 }
  0xd1   :  { %1130 = vmatprep.mubr.bf16.mxu0 %v3696_v8  ;;  %4423 = vmatprep.mubr.bf16.mxu1 %v3719_v19  ;;  %v672_v8 = vsel %vm5039_vm5, %v5188_v55, %v671_v35  ;;  %v675_v19 = vsel %vm5039_vm5, %v5192_v58, %v674_v60  ;;  %v5983_v35 = vrot.slane %v5164_v40, 6  ;;  %v688_v40 = vsel %vm5039_vm5, %v686_v20, %v5985_v39 }
  0xd2   :  { %v3722_v58 = vcombine.low %v672_v8, %v675_v19  ;;  %v3724_v25 = vcombine.low %v685_v38, %v688_v40  ;;  %v705_v20 = vsel %vm5039_vm5, %v3712_v51, %v704_v45  ;;  %v708_v7 = vsel %vm5039_vm5, %v706_v34, %v707_v5  ;;  %v4611_v45 = vld [vmem:[#allocation10 + $0x48] sm:$0xff]   ;;  %4449 = vmatprep.subr.bf16.mxu0 %v4613_v13  ;;  %v4620_v51 = vld [vmem:[#allocation10 + $0x20] sm:$0xff]   ;;  %v4625_v8 = vld [vmem:[#allocation10 + $0x30] sm:$0xff]  }
  0xd3   :  { %v679_v55 = vsel %vm5039_vm5, %v5984_v33, %v5983_v35  ;;  %v3727_v49 = vcombine.low %v705_v20, %v708_v7  ;;  %v714_v26 = vsel %vm5039_vm5, %v712_v10, %v713_v11  ;;  %4237 = vmatprep.subr.bf16.mxu1 %v4611_v45  ;;  %4450 = vmatpush3.bf16.msra.mxu0 %v4613_v13  ;;  %v4622_v34 = vld [vmem:[#allocation10 + $0x68] sm:$0xff]   ;;  %v4626_v19 = vld [vmem:[#allocation10 + $0xb0] sm:$0xff]  }
  0xd4   :  { %v3723_v60 = vcombine.low %v679_v55, %v682_v29  ;;  %v3728_v21 = vcombine.low %v711_v4, %v714_v26  ;;  %4451 = vmatprep.subr.bf16.mxu0 %v4616_v14  ;;  %v4621_v5 = vld [vmem:[#allocation10 + $0xa8] sm:$0xff]  }
  0xd5   :  { %v5377_v35 = vld [vmem:[#allocation13] sm:$0xff]  }
  0xd7   :  { %4452 = vmatpush3.bf16.msra.mxu0 %v4616_v14 }
  0xd8   :  { %1131 = vmatmul.mubr.bf16.gmra.mrb[28].mxu0 %v4601_v46  ;;  %4424 = vmatmul.mubr.bf16.gmra.mrb[28].mxu1 %v3720_v31  ;;  %v4612_v46 = vld [vmem:[#allocation10 + $0x8] sm:$0xff]   ;;  %v4617_v31 = vld [vmem:[#allocation10 + $0x58] sm:$0xff]  }
  0xd9   :  { %1138 = vmatprep.mubr.bf16.mxu0 %v3697_v52  ;;  %4427 = vmatprep.mubr.bf16.mxu1 %v3721_v3  ;;  %v4623_v52 = vld [vmem:[#allocation10 + $0x28] sm:$0xff]   ;;  %v4624_v3 = vld [vmem:[#allocation10 + $0x70] sm:$0xff]  }
  0xda   :  { %4238 = vmatpush3.bf16.msra.mxu1 %v4612_v46  ;;  %4453 = vmatprep.subr.bf16.mxu0 %v4621_v5 }
  0xdb   :  { %4239 = vmatprep.subr.bf16.mxu1 %v4614_v50  ;;  %4454 = vmatpush3.bf16.msra.mxu0 %v4621_v5 }
  0xdc   :  { %4455 = vmatprep.subr.bf16.mxu0 %v4626_v19 }
  0xde   :  { %4240 = vmatpush3.bf16.msra.mxu1 %v4615_v28 }
  0xdf   :  { %4241 = vmatprep.subr.bf16.mxu1 %v4617_v31  ;;  %4456 = vmatpush3.bf16.msra.mxu0 %v4626_v19 }
  0xe0   :  { %1139 = vmatmul.mubr.bf16.gmra.mrb[32].mxu0 %v4602_v17  ;;  %4428 = vmatmul.mubr.bf16.gmra.mrb[32].mxu1 %v3722_v58  ;;  %v4627_v17 = vld [vmem:[#allocation10 + $0x78] sm:$0xff]  }
  0xe1   :  { %1146 = vmatprep.mubr.bf16.mxu0 %v3698_v44  ;;  %4431 = vmatprep.mubr.bf16.mxu1 %v3723_v60 }
  0xe2   :  { %4242 = vmatpush3.bf16.msra.mxu1 %v4618_v16  ;;  %4457 = vmatprep.subr.bf16.mxu0 %v4629_v22  ;;  %v5388_v16 = vld [vmem:[#allocation9] ss:$0 sm:$0xff] }
  0xe3   :  { %4243 = vmatprep.subr.bf16.mxu1 %v4619_v53  ;;  %4458 = vmatpush3.bf16.msra.mxu0 %v4629_v22 }
  0xe4   :  { %4491 = vmatprep.subr.bf16.mxu0 %v5377_v35 }
  0xe6   :  { %4244 = vmatpush3.bf16.msra.mxu1 %v4620_v51 }
  0xe7   :  { %4245 = vmatprep.subr.bf16.mxu1 %v4622_v34 }
  0xe8   :  { %1147 = vmatmul.mubr.bf16.gmra.mrb[36].mxu0 %v4603_v54  ;;  %4432 = vmatmul.mubr.bf16.gmra.mrb[36].mxu1 %v3724_v25 }
  0xe9   :  { %1154 = vmatprep.mubr.bf16.mxu0 %v3699_v56  ;;  %4435 = vmatprep.mubr.bf16.mxu1 %v3725_v18 }
  0xea   :  { %4246 = vmatpush3.bf16.msra.mxu1 %v4623_v52 }
  0xeb   :  { %4247 = vmatprep.subr.bf16.mxu1 %v4624_v3 }
  0xee   :  { %4248 = vmatpush3.bf16.msra.mxu1 %v4625_v8 }
  0xef   :  { %4249 = vmatprep.subr.bf16.mxu1 %v4627_v17 }
  0xf0   :  { %1155 = vmatmul.mubr.bf16.gmra.mrb[40].mxu0 %v4604_v37  ;;  %4436 = vmatmul.mubr.bf16.gmra.mrb[40].mxu1 %v3726_v48 }
  0xf1   :  { %1162 = vmatprep.mubr.bf16.mxu0 %v3700_v62  ;;  %4439 = vmatprep.mubr.bf16.mxu1 %v3727_v49 }
  0xf2   :  { %4250 = vmatpush3.bf16.msra.mxu1 %v4628_v42 }
  0xf8   :  { %1163 = vmatmul.mubr.bf16.gmra.mrb[44].mxu0 %v4605_v12  ;;  %4440 = vmatmul.mubr.bf16.gmra.mrb[44].mxu1 %v3728_v21 }
 0x173   :  { %v4115_v33 = vpop.f32.mrb[0].mxu0  ;;  %v4187_v55 = vpop.f32.mrb[0].mxu1 }
 0x174   :  { %v4116_v29 = vpop.f32.mrb[1].mxu0  ;;  %v4188_v58 = vpop.f32.mrb[1].mxu1 }
 0x175   :  { %v4117_v44 = vadd.f32 %v4116_v29, %v4115_v33  ;;  %v4118_v60 = vpop.f32.mrb[2].mxu0  ;;  %v5380_v38 = vadd.f32 %v4188_v58, %v4187_v55  ;;  %v4190_v39 = vpop.f32.mrb[2].mxu1 }
 0x176   :  { %v4119_v40 = vpop.f32.mrb[3].mxu0  ;;  %v4191_v54 = vpop.f32.mrb[3].mxu1 }
 0x177   :  { %v4120_v63 = vadd.f32 %v4119_v40, %v4118_v60  ;;  %v4192_v0 = vadd.f32 %v4191_v54, %v4190_v39  ;;  %v1077_v34 = vadd.f32 %v4117_v44, %v5388_v16 }
 0x179   :  { %v1080_v33 = vadd.f32 %v4120_v63, %v5388_v16 }
 0x17b   :  { %v4121_v23 = vpop.f32.mrb[4].mxu0  ;;  %v4193_v61 = vpop.f32.mrb[4].mxu1 }
 0x17c   :  { %v4122_v24 = vpop.f32.mrb[5].mxu0  ;;  %v4194_v25 = vpop.f32.mrb[5].mxu1 }
 0x17d   :  { %v4123_v1 = vadd.f32 %v4122_v24, %v4121_v23  ;;  %v4124_v56 = vpop.f32.mrb[6].mxu0  ;;  %v4195_v18 = vadd.f32 %v4194_v25, %v4193_v61  ;;  %v4196_v36 = vpop.f32.mrb[6].mxu1  ;;  %v5400_v61 = vadd.f32 %v5380_v38, %v5388_v16  ;;  %v5403_v24 = vadd.f32 %v4192_v0, %v5388_v16 }
 0x17e   :  { %v4125_v2 = vpop.f32.mrb[7].mxu0  ;;  %v4197_v57 = vpop.f32.mrb[7].mxu1 }
 0x17f   :  { %v4126_v15 = vadd.f32 %v4125_v2, %v4124_v56  ;;  %v4198_v41 = vadd.f32 %v4197_v57, %v4196_v36  ;;  %v1085_v53 = vadd.f32 %v4123_v1, %v5388_v16  ;;  %v5406_v63 = vadd.f32 %v4195_v18, %v5388_v16 }
 0x181   :  { %v1088_v8 = vadd.f32 %v4126_v15, %v5388_v16  ;;  %v5409_v56 = vadd.f32 %v4198_v41, %v5388_v16 }
 0x183   :  { %v4127_v20 = vpop.f32.mrb[8].mxu0  ;;  %v4199_v7 = vpop.f32.mrb[8].mxu1 }
 0x184   :  { %v4128_v47 = vpop.f32.mrb[9].mxu0  ;;  %v4200_v37 = vpop.f32.mrb[9].mxu1 }
 0x185   :  { %v4129_v48 = vadd.f32 %v4128_v47, %v4127_v20  ;;  %v4130_v62 = vpop.f32.mrb[10].mxu0  ;;  %v4201_v49 = vadd.f32 %v4200_v37, %v4199_v7  ;;  %v4202_v6 = vpop.f32.mrb[10].mxu1 }
 0x186   :  { %v4131_v10 = vpop.f32.mrb[11].mxu0  ;;  %v4203_v11 = vpop.f32.mrb[11].mxu1 }
 0x187   :  { %v4132_v4 = vadd.f32 %v4131_v10, %v4130_v62  ;;  %v5382_v26 = vadd.f32 %v4203_v11, %v4202_v6  ;;  %v1093_v15 = vadd.f32 %v4129_v48, %v5388_v16  ;;  %v5415_v37 = vadd.f32 %v4201_v49, %v5388_v16 }
 0x189   :  { %v1096_v0 = vadd.f32 %v4132_v4, %v5388_v16 }
 0x18b   :  { %v4133_v12 = vpop.f32.mrb[12].mxu0  ;;  %v4205_v21 = vpop.f32.mrb[12].mxu1 }
 0x18c   :  { %v4134_v27 = vpop.f32.mrb[13].mxu0  ;;  %v4206_v30 = vpop.f32.mrb[13].mxu1 }
 0x18d   :  { %v4135_v43 = vadd.f32 %v4134_v27, %v4133_v12  ;;  %v4136_v45 = vpop.f32.mrb[14].mxu0  ;;  %v5384_v46 = vadd.f32 %v4206_v30, %v4205_v21  ;;  %v4208_v13 = vpop.f32.mrb[14].mxu1 }
 0x18e   :  { %v4137_v50 = vpop.f32.mrb[15].mxu0  ;;  %v4209_v28 = vpop.f32.mrb[15].mxu1 }
 0x18f   :  { %v4138_v14 = vadd.f32 %v4137_v50, %v4136_v45  ;;  %v5386_v31 = vadd.f32 %v4209_v28, %v4208_v13  ;;  %v1101_v57 = vadd.f32 %v4135_v43, %v5388_v16 }
 0x191   :  { %v1104_v11 = vadd.f32 %v4138_v14, %v5388_v16 }
 0x193   :  { %v4139_v32 = vpop.f32.mrb[16].mxu0  ;;  %v4413_v51 = vpop.f32.mrb[16].mxu1 }
 0x194   :  { %v1246_v5 = vadd.f32 %v4413_v51, %v1085_v53  ;;  %v4140_v52 = vpop.f32.mrb[17].mxu0  ;;  %v1237_v3 = vpop.f32.mrb[17].mxu1 }
 0x195   :  { %v5393_v19 = vadd.f32 %v4140_v52, %v4139_v32  ;;  %v1238_v17 = vadd.f32 %v1237_v3, %v1077_v34  ;;  %v4142_v42 = vpop.f32.mrb[18].mxu0  ;;  %v4414_v22 = vpop.f32.mrb[18].mxu1  ;;  %v5424_v3 = vadd.f32 %v5382_v26, %v5388_v16 }
 0x196   :  { %v1366_v55 = vmax.f32 %v1246_v5, 0.0  ;;  %v1249_v29 = vadd.f32 %v4414_v22, %v1088_v8  ;;  %v4143_v58 = vpop.f32.mrb[19].mxu0  ;;  %v1240_v60 = vpop.f32.mrb[19].mxu1  ;;  %v5434_v22 = vadd.f32 %v5386_v31, %v5388_v16 }
 0x197   :  { %v1364_v39 = vmax.f32 %v1238_v17, 0.0  ;;  %v5396_v40 = vadd.f32 %v4143_v58, %v4142_v42  ;;  %v1241_v44 = vadd.f32 %v1240_v60, %v1080_v33  ;;  %v5430_v42 = vadd.f32 %v5384_v46, %v5388_v16 }
 0x198   :  { %v3942_v54 = vpack.c.bf16 %v1366_v55, %v1366_v55  ;;  %v1367_v23 = vmax.f32 %v1249_v29, 0.0 }
 0x199   :  { %v3940_v25 = vpack.c.bf16 %v1364_v39, %v1364_v39  ;;  %v1365_v1 = vmax.f32 %v1241_v44, 0.0  ;;  %v1109_v44 = vadd.f32 %v5393_v19, %v5388_v16  ;;  %v1112_v46 = vadd.f32 %v5396_v40, %v5388_v16 }
 0x19a   :  { %v1505_v36 = vrot.slane %v3942_v54, 6  ;;  %v3943_v2 = vpack.c.bf16 %v1367_v23, %v1367_v23 }
 0x19b   :  { %v1500_v20 = vrot.slane %v3940_v25, 6  ;;  %v3941_v38 = vpack.c.bf16 %v1365_v1, %v1365_v1  ;;  %v4145_v7 = vpop.f32.mrb[20].mxu0  ;;  %v4417_v47 = vpop.f32.mrb[20].mxu1 }
 0x19c   :  { %v1507_v18 = vrot.slane %v1505_v36, 4  ;;  %v1508_v62 = vrot.slane %v3943_v2, 6  ;;  %v1262_v6 = vadd.f32 %v4417_v47, %v1101_v57  ;;  %v4146_v41 = vpop.f32.mrb[21].mxu0  ;;  %v1253_v10 = vpop.f32.mrb[21].mxu1 }
 0x19d   :  { %v1501_v12 = vrot.slane %v1500_v20, 4  ;;  %1628 = vst [vmem:[#allocation2] sm:$0xc] %v1500_v20  ;;  %v1502_v21 = vrot.slane %v3941_v38, 6  ;;  %v4147_v48 = vadd.f32 %v4146_v41, %v4145_v7  ;;  %v1254_v27 = vadd.f32 %v1253_v10, %v1093_v15  ;;  %v4148_v30 = vpop.f32.mrb[22].mxu0  ;;  %v4418_v43 = vpop.f32.mrb[22].mxu1 }
 0x19e   :  { %v1509_v4 = vsel %vm5039_vm5, %v1507_v18, %v1508_v62  ;;  %v1510_v45 = vrot.slane %v1508_v62, 4  ;;  %v1370_v49 = vmax.f32 %v1262_v6, 0.0  ;;  %v1265_v13 = vadd.f32 %v4418_v43, %v1104_v11  ;;  %v4149_v50 = vpop.f32.mrb[23].mxu0  ;;  %v1256_v28 = vpop.f32.mrb[23].mxu1 }
 0x19f   :  { %1631 = vst [vmem:[#allocation2 + $0xc] sm:$0xf] %v1509_v4  ;;  %v1503_v53 = vsel %vm5039_vm5, %v1501_v12, %v1502_v21  ;;  %v1504_v14 = vrot.slane %v1502_v21, 4  ;;  %v1368_v32 = vmax.f32 %v1254_v27, 0.0  ;;  %v4150_v51 = vadd.f32 %v4149_v50, %v4148_v30 }
 0x1a0   :  { %1632 = vst [vmem:[#allocation2 + $0x10] sm:$0x3] %v1510_v45  ;;  %1629 = vst [vmem:[#allocation2 + $0x4] sm:$0xf] %v1503_v53  ;;  %v3946_v34 = vpack.c.bf16 %v1370_v49, %v1370_v49  ;;  %v1371_v5 = vmax.f32 %v1265_v13, 0.0  ;;  %v1257_v52 = vadd.f32 %v1256_v28, %v1096_v0  ;;  %v1117_v58 = vadd.f32 %v4147_v48, %v5388_v16 }
 0x1a1   :  { %v1506_v8 = vsel %vm5039_vm5, %v1504_v14, %v1505_v36  ;;  %v3944_v17 = vpack.c.bf16 %v1368_v32, %v1368_v32  ;;  %v1120_v54 = vadd.f32 %v4150_v51, %v5388_v16 }
 0x1a2   :  { %1630 = vst [vmem:[#allocation2 + $0x8] sm:$0xf] %v1506_v8  ;;  %v1516_v33 = vrot.slane %v3946_v34, 6  ;;  %v3947_v55 = vpack.c.bf16 %v1371_v5, %v1371_v5  ;;  %v1369_v29 = vmax.f32 %v1257_v52, 0.0 }
 0x1a3   :  { %v1511_v26 = vrot.slane %v3944_v17, 6  ;;  %v4151_v60 = vpop.f32.mrb[24].mxu0  ;;  %v4421_v39 = vpop.f32.mrb[24].mxu1 }
 0x1a4   :  { %v1518_v23 = vrot.slane %v1516_v33, 4  ;;  %v1519_v31 = vrot.slane %v3947_v55, 6  ;;  %v3945_v25 = vpack.c.bf16 %v1369_v29, %v1369_v29  ;;  %v1278_v1 = vadd.f32 %v4421_v39, %v1117_v58  ;;  %v4152_v36 = vpop.f32.mrb[25].mxu0  ;;  %v1269_v2 = vpop.f32.mrb[25].mxu1  ;;  %v1812_v57 = vld [vmem:[#allocation2] sm:$0xe] }
 0x1a5   :  { %v1512_v15 = vrot.slane %v1511_v26, 4  ;;  %1633 = vst [vmem:[#allocation2 + $0x14] sm:$0xc] %v1511_v26  ;;  %v4153_v20 = vadd.f32 %v4152_v36, %v4151_v60  ;;  %v1270_v38 = vadd.f32 %v1269_v2, %v1109_v44  ;;  %v4154_v7 = vpop.f32.mrb[26].mxu0  ;;  %v4422_v47 = vpop.f32.mrb[26].mxu1  ;;  %v3802_v0 = vrot.slane %v1812_v57, 9 }
 0x1a6   :  { %v1520_v19 = vsel %vm5039_vm5, %v1518_v23, %v1519_v31  ;;  %v1521_v18 = vrot.slane %v1519_v31, 4  ;;  %v1513_v62 = vrot.slane %v3945_v25, 6  ;;  %v1374_v40 = vmax.f32 %v1278_v1, 0.0  ;;  %v4155_v6 = vpop.f32.mrb[27].mxu0  ;;  %v1272_v41 = vpop.f32.mrb[27].mxu1 }
 0x1a7   :  { %1636 = vst [vmem:[#allocation2 + $0x20] sm:$0xf] %v1520_v19  ;;  %v1372_v10 = vmax.f32 %v1270_v38, 0.0  ;;  %v1281_v11 = vadd.f32 %v4422_v47, %v1120_v54  ;;  %v4156_v12 = vadd.f32 %v4155_v6, %v4154_v7  ;;  %v1273_v21 = vadd.f32 %v1272_v41, %v1112_v46  ;;  %v1813_v48 = vld [vmem:[#allocation2 + $0x4] sm:$0xf] }
 0x1a8   :  { %v2076_v27 = vld [vmem:[#allocation2] sm:$0xc]  ;;  %1637 = vst [vmem:[#allocation2 + $0x24] sm:$0x3] %v1521_v18  ;;  %v1514_v30 = vsel %vm5039_vm5, %v1512_v15, %v1513_v62  ;;  %v1515_v43 = vrot.slane %v1513_v62, 4  ;;  %v3950_v4 = vpack.c.bf16 %v1374_v40, %v1374_v40  ;;  %v1125_v45 = vadd.f32 %v4153_v20, %v5388_v16 }
 0x1a9   :  { %1634 = vst [vmem:[#allocation2 + $0x18] sm:$0xf] %v1514_v30  ;;  %v3948_v49 = vpack.c.bf16 %v1372_v10, %v1372_v10  ;;  %v1375_v13 = vmax.f32 %v1281_v11, 0.0  ;;  %v1373_v50 = vmax.f32 %v1273_v21, 0.0  ;;  %v1128_v28 = vadd.f32 %v4156_v12, %v5388_v16  ;;  %v1814_v53 = vld [vmem:[#allocation2 + $0x8] sm:$0xf] }
 0x1aa   :  { %v2077_v14 = vld [vmem:[#allocation2 + $0x4] sm:$0xf]  ;;  %v1517_v32 = vsel %vm5039_vm5, %v1515_v43, %v1516_v33  ;;  %v1527_v51 = vrot.slane %v3950_v4, 6  ;;  %v1894_v34 = vrot.slane %v1813_v48, 5  ;;  %v1897_v5 = vrot.slane %v1814_v53, 5 }
 0x1ab   :  { %1635 = vst [vmem:[#allocation2 + $0x1c] sm:$0xf] %v1517_v32  ;;  %v1522_v52 = vrot.slane %v3948_v49, 6  ;;  %v3951_v8 = vpack.c.bf16 %v1375_v13, %v1375_v13  ;;  %v3949_v17 = vpack.c.bf16 %v1373_v50, %v1373_v50  ;;  %v4157_v55 = vpop.f32.mrb[28].mxu0  ;;  %v4425_v29 = vpop.f32.mrb[28].mxu1  ;;  %v3826_v58 = vrot.slane %v2076_v27, 10 }
 0x1ac   :  { %v1529_v26 = vrot.slane %v1527_v51, 4  ;;  %v4158_v60 = vpop.f32.mrb[29].mxu0  ;;  %v1285_v39 = vpop.f32.mrb[29].mxu1  ;;  %v1895_v44 = vsel %vm5001_vm2, %v3802_v0, %v1894_v34  ;;  %v1896_v54 = vrot.slane %v1894_v34, 4  ;;  %v2158_v46 = vrot.slane %v2077_v14, 6  ;;  %v4630_v13 = vld [vmem:[#allocation2] sm:$0xff]  }
 0x1ad   :  { %v1523_v23 = vrot.slane %v1522_v52, 4  ;;  %1638 = vst [vmem:[#allocation2 + $0x28] sm:$0xc] %v1522_v52  ;;  %v1530_v33 = vrot.slane %v3951_v8, 6  ;;  %v1524_v31 = vrot.slane %v3949_v17, 6  ;;  %v4159_v25 = vadd.f32 %v4158_v60, %v4157_v55  ;;  %v4160_v1 = vpop.f32.mrb[30].mxu0 }
 0x1ae   :  { %v4426_v36 = vpop.f32.mrb[30].mxu1  ;;  %v1286_v2 = vadd.f32 %v1285_v39, %v1125_v45  ;;  %v4161_v57 = vpop.f32.mrb[31].mxu0  ;;  %v1898_v20 = vsel %vm5001_vm2, %v1896_v54, %v1897_v5  ;;  %v2078_v38 = vld [vmem:[#allocation2 + $0x8] sm:$0xf]  ;;  %v2159_v7 = vsel %vm5039_vm5, %v3826_v58, %v2158_v46  ;;  %v2160_v47 = vrot.slane %v2158_v46, 4 }
 0x1af   :  { %v1288_v15 = vpop.f32.mrb[31].mxu1  ;;  %v1531_v0 = vsel %vm5039_vm5, %v1529_v26, %v1530_v33  ;;  %v1532_v19 = vrot.slane %v1530_v33, 4  ;;  %v1525_v18 = vsel %vm5039_vm5, %v1523_v23, %v1524_v31  ;;  %v1526_v62 = vrot.slane %v1524_v31, 4  ;;  %v1815_v40 = vld [vmem:[#allocation2 + $0xc] sm:$0xf] }
 0x1b0   :  { %1641 = vst [vmem:[#allocation2 + $0x34] sm:$0xf] %v1531_v0  ;;  %1639 = vst [vmem:[#allocation2 + $0x2c] sm:$0xf] %v1525_v18  ;;  %v1133_v6 = vadd.f32 %v4159_v25, %v5388_v16  ;;  %v1376_v41 = vmax.f32 %v1286_v2, 0.0  ;;  %v4162_v10 = vadd.f32 %v4161_v57, %v4160_v1  ;;  %v1289_v11 = vadd.f32 %v1288_v15, %v1128_v28 }
 0x1b1   :  { %v1816_v12 = vld [vmem:[#allocation2 + $0x10] sm:$0x1]  ;;  %1642 = vst [vmem:[#allocation2 + $0x38] sm:$0x3] %v1532_v19  ;;  %v1528_v21 = vsel %vm5039_vm5, %v1526_v62, %v1527_v51  ;;  %v3810_v48 = vcombine.low %v1895_v44, %v1898_v20  ;;  %v2161_v27 = vrot.slane %v2078_v38, 6  ;;  %v1899_v30 = vrot.slane %v1897_v5, 4 }
 0x1b2   :  { %1640 = vst [vmem:[#allocation2 + $0x30] sm:$0xf] %v1528_v21  ;;  %v1294_v43 = vadd.f32 %v4425_v29, %v1133_v6  ;;  %v3952_v4 = vpack.c.bf16 %v1376_v41, %v1376_v41  ;;  %v1136_v45 = vadd.f32 %v4162_v10, %v5388_v16  ;;  %v1377_v49 = vmax.f32 %v1289_v11, 0.0  ;;  %v2079_v50 = vld [vmem:[#allocation2 + $0xc] sm:$0xf] }
 0x1b3   :  { %2619 = vmatprep.mubr.bf16.mxu1 %v3810_v48  ;;  %v2162_v28 = vsel %vm5039_vm5, %v2160_v47, %v2161_v27  ;;  %v2163_v53 = vrot.slane %v2161_v27, 4  ;;  %v1900_v14 = vrot.slane %v1815_v40, 5  ;;  %v1903_v32 = vrot.slane %v1816_v12, 5  ;;  %v4163_v34 = vpop.f32.mrb[32].mxu0  ;;  %v5466_v51 = vpop.f32.mrb[32].mxu1  ;;  %v4631_v6 = vld [vmem:[#allocation2 + $0x8] sm:$0xff]  }
 0x1b4   :  { %v1378_v52 = vmax.f32 %v1294_v43, 0.0  ;;  %v1533_v5 = vrot.slane %v3952_v4, 6  ;;  %v1297_v8 = vadd.f32 %v4426_v36, %v1136_v45  ;;  %v3953_v17 = vpack.c.bf16 %v1377_v49, %v1377_v49  ;;  %2620 = vmatmul.mubr.bf16.vlgmr.msra.gmra.mrb[48].mxu1 %v4630_v13  ;;  %v2080_v55 = vld [vmem:[#allocation2 + $0x10] sm:$0x3]  ;;  %v4164_v29 = vpop.f32.mrb[33].mxu0  ;;  %v1301_v58 = vpop.f32.mrb[33].mxu1 }
 0x1b5   :  { %v3834_v26 = vcombine.low %v2159_v7, %v2162_v28  ;;  %v1901_v60 = vsel %vm5001_vm2, %v1899_v30, %v1900_v14  ;;  %v1902_v39 = vrot.slane %v1900_v14, 4  ;;  %v2164_v44 = vrot.slane %v2079_v50, 6  ;;  %v4166_v54 = vpop.f32.mrb[34].mxu0  ;;  %v5470_v46 = vpop.f32.mrb[34].mxu1  ;;  %v2081_v36 = vld [vmem:[#allocation2 + $0x14] sm:$0xc] }
 0x1b6   :  { %v3954_v23 = vpack.c.bf16 %v1378_v52, %v1378_v52  ;;  %v1534_v33 = vrot.slane %v1533_v5, 4  ;;  %1643 = vst [vmem:[#allocation2 + $0x3c] sm:$0xc] %v1533_v5  ;;  %v1379_v31 = vmax.f32 %v1297_v8, 0.0  ;;  %v1535_v25 = vrot.slane %v3953_v17, 6  ;;  %v4167_v1 = vpop.f32.mrb[35].mxu0 }
 0x1b7   :  { %v2082_v2 = vld [vmem:[#allocation2 + $0x18] sm:$0xf]  ;;  %4459 = vmatprep.mubr.bf16.mxu0 %v3834_v26  ;;  %v1904_v57 = vsel %vm5001_vm2, %v1902_v39, %v1903_v32  ;;  %v2165_v15 = vsel %vm5039_vm5, %v2163_v53, %v2164_v44  ;;  %v2166_v20 = vrot.slane %v2164_v44, 4  ;;  %v2167_v38 = vrot.slane %v2080_v55, 6  ;;  %v1817_v7 = vld [vmem:[#allocation2 + $0x14] sm:$0xe] }
 0x1b8   :  { %v5476_v47 = vpop.f32.mrb[35].mxu1  ;;  %v1538_v0 = vrot.slane %v3954_v23, 6  ;;  %v3955_v19 = vpack.c.bf16 %v1379_v31, %v1379_v31  ;;  %v1536_v18 = vsel %vm5039_vm5, %v1534_v33, %v1535_v25  ;;  %v1537_v62 = vrot.slane %v1535_v25, 4  ;;  %v2083_v40 = vld [vmem:[#allocation2 + $0x1c] sm:$0xf]  ;;  %v5480_v41 = vld [vmem:[#allocation13 + $0x8] sm:$0xff]  }
 0x1b9   :  { %1644 = vst [vmem:[#allocation2 + $0x40] sm:$0xf] %v1536_v18  ;;  %v3811_v10 = vcombine.low %v1901_v60, %v1904_v57  ;;  %v2168_v11 = vsel %vm5039_vm5, %v2166_v20, %v2167_v38  ;;  %v4165_v12 = vadd.f32 %v4164_v29, %v4163_v34  ;;  %v4168_v21 = vadd.f32 %v4167_v1, %v4166_v54  ;;  %v1818_v48 = vld [vmem:[#allocation2 + $0x18] sm:$0xf]  ;;  %v5484_v27 = vld [vmem:[#allocation2 + $0x1c] sm:$0xf] }
 0x1ba   :  { %v1540_v30 = vrot.slane %v1538_v0, 4  ;;  %v1541_v43 = vrot.slane %v3955_v19, 6  ;;  %v1539_v4 = vsel %vm5039_vm5, %v1537_v62, %v1538_v0  ;;  %v3835_v45 = vcombine.low %v2165_v15, %v2168_v11  ;;  %v2084_v49 = vld [vmem:[#allocation2 + $0x20] sm:$0xf]  ;;  %v2085_v13 = vld [vmem:[#allocation2 + $0x24] sm:$0x3] }
 0x1bb   :  { %1645 = vst [vmem:[#allocation2 + $0x44] sm:$0xf] %v1539_v4  ;;  %2627 = vmatprep.mubr.bf16.mxu1 %v3811_v10  ;;  %v3827_v50 = vrot.slane %v2081_v36, 10  ;;  %v2171_v28 = vrot.slane %v2082_v2, 6  ;;  %v2174_v53 = vrot.slane %v2083_v40, 6  ;;  %v1141_v14 = vadd.f32 %v4165_v12, %v5388_v16  ;;  %v4169_v32 = vpop.f32.mrb[36].mxu0 }
 0x1bc   :  { %v5489_v34 = vpop.f32.mrb[36].mxu1  ;;  %v1542_v52 = vsel %vm5039_vm5, %v1540_v30, %v1541_v43  ;;  %v1543_v5 = vrot.slane %v1541_v43, 4  ;;  %4460 = vmatmul.mubr.bf16.vlgmr.msra.gmra.mrb[48].mxu0 %v3835_v45  ;;  %2628 = vmatmul.mubr.bf16.gmra.mrb[52].mxu1 %v4631_v6  ;;  %v3803_v8 = vrot.slane %v1817_v7, 9  ;;  %v1907_v17 = vrot.slane %v1818_v48, 5  ;;  %v4170_v55 = vpop.f32.mrb[37].mxu0  ;;  %v4632_v48 = vld [vmem:[#allocation2 + $0x14] sm:$0xff]  }
 0x1bd   :  { %v5493_v29 = vpop.f32.mrb[37].mxu1  ;;  %1646 = vst [vmem:[#allocation2 + $0x48] sm:$0xf] %v1542_v52  ;;  %v2172_v26 = vsel %vm5039_vm5, %v3827_v50, %v2171_v28  ;;  %v2173_v60 = vrot.slane %v2171_v28, 4  ;;  %v1302_v39 = vadd.f32 %v1301_v58, %v1141_v14  ;;  %v1910_v44 = vrot.slane %v5484_v27, 5  ;;  %v4172_v54 = vpop.f32.mrb[38].mxu0  ;;  %4492 = vmatpush3.bf16.msra.mxu0 %v5377_v35 }
 0x1be   :  { %v2086_v23 = vld [vmem:[#allocation2 + $0x28] sm:$0xc]  ;;  %v5498_v33 = vpop.f32.mrb[38].mxu1  ;;  %1647 = vst [vmem:[#allocation2 + $0x4c] sm:$0x3] %v1543_v5  ;;  %v1908_v31 = vsel %vm5001_vm2, %v3803_v8, %v1907_v17  ;;  %v1909_v25 = vrot.slane %v1907_v17, 4  ;;  %4493 = vmatprep.subr.bf16.mxu0 %v5480_v41  ;;  %v1144_v35 = vadd.f32 %v4168_v21, %v5388_v16  ;;  %v4171_v11 = vadd.f32 %v4170_v55, %v4169_v32 }
 0x1bf   :  { %v2176_v1 = vrot.slane %v2174_v53, 4  ;;  %v2177_v36 = vrot.slane %v2084_v49, 6  ;;  %v4173_v2 = vpop.f32.mrb[39].mxu0  ;;  %v5503_v57 = vpop.f32.mrb[39].mxu1  ;;  %v4637_v58 = vld [vmem:[#allocation13 + $0x10] sm:$0xff]   ;;  %v2175_v15 = vsel %vm5039_vm5, %v2173_v60, %v2174_v53  ;;  %v1380_v20 = vmax.f32 %v1302_v39, 0.0 }
 0x1c0   :  { %v2180_v38 = vrot.slane %v2085_v13, 6  ;;  %v2087_v7 = vld [vmem:[#allocation2 + $0x2c] sm:$0xf]  ;;  %v3836_v0 = vcombine.low %v2172_v26, %v2175_v15  ;;  %v1911_v19 = vsel %vm5001_vm2, %v1909_v25, %v1910_v44  ;;  %v1305_v10 = vadd.f32 %v5476_v47, %v1144_v35  ;;  %v2088_v12 = vld [vmem:[#allocation2 + $0x30] sm:$0xf]  ;;  %v4639_v21 = vld [vmem:[#allocation13 + $0x18] sm:$0xff]  }
 0x1c1   :  { %v2178_v18 = vsel %vm5039_vm5, %v2176_v1, %v2177_v36  ;;  %v2179_v62 = vrot.slane %v2177_v36, 4  ;;  %v3956_v40 = vpack.c.bf16 %v1380_v20, %v1380_v20  ;;  %v3812_v6 = vcombine.low %v1908_v31, %v1911_v19  ;;  %v1820_v27 = vld [vmem:[#allocation2 + $0x20] sm:$0xf]  ;;  %4494 = vmatpush3.bf16.msra.mxu0 %v5480_v41  ;;  %v1821_v49 = vld [vmem:[#allocation2 + $0x24] sm:$0x1] }
 0x1c2   :  { %4463 = vmatprep.mubr.bf16.mxu0 %v3836_v0  ;;  %v4174_v43 = vadd.f32 %v4173_v2, %v4172_v54  ;;  %v3828_v4 = vrot.slane %v2086_v23, 10  ;;  %v2184_v45 = vrot.slane %v2087_v7, 6  ;;  %4495 = vmatprep.subr.bf16.mxu0 %v4637_v58  ;;  %v1381_v47 = vmax.f32 %v1305_v10, 0.0  ;;  %v2089_v54 = vld [vmem:[#allocation2 + $0x34] sm:$0xf] }
 0x1c3   :  { %v2181_v30 = vsel %vm5039_vm5, %v2179_v62, %v2180_v38  ;;  %v1544_v13 = vrot.slane %v3956_v40, 6  ;;  %2635 = vmatprep.mubr.bf16.mxu1 %v3812_v6  ;;  %v1149_v28 = vadd.f32 %v4171_v11, %v5388_v16  ;;  %v4175_v53 = vpop.f32.mrb[40].mxu0  ;;  %v4437_v14 = vpop.f32.mrb[40].mxu1  ;;  %v2187_v5 = vrot.slane %v2088_v12, 6  ;;  %v2090_v15 = vld [vmem:[#allocation2 + $0x38] sm:$0x3] }
 0x1c4   :  { %v3837_v50 = vcombine.low %v2178_v18, %v2181_v30  ;;  %v1152_v41 = vadd.f32 %v4174_v43, %v5388_v16  ;;  %v2185_v32 = vsel %vm5039_vm5, %v3828_v4, %v2184_v45  ;;  %v2186_v52 = vrot.slane %v2184_v45, 4  ;;  %2636 = vmatmul.mubr.bf16.gmra.mrb[56].mxu1 %v4632_v48  ;;  %v4176_v8 = vpop.f32.mrb[41].mxu0  ;;  %v1333_v17 = vpop.f32.mrb[41].mxu1 }
 0x1c5   :  { %v1545_v55 = vrot.slane %v1544_v13, 4  ;;  %1648 = vst [vmem:[#allocation2 + $0x50] sm:$0xc] %v1544_v13  ;;  %v3957_v26 = vpack.c.bf16 %v1381_v47, %v1381_v47  ;;  %v1310_v60 = vadd.f32 %v5466_v51, %v1149_v28  ;;  %v1912_v39 = vrot.slane %v1910_v44, 4  ;;  %v5522_v23 = vpop.f32.mrb[42].mxu0  ;;  %v4438_v31 = vpop.f32.mrb[42].mxu1  ;;  %4496 = vmatpush3.bf16.msra.mxu0 %v4637_v58 }
 0x1c6   :  { %4464 = vmatmul.mubr.bf16.gmra.mrb[52].mxu0 %v3837_v50  ;;  %v1313_v25 = vadd.f32 %v5470_v46, %v1152_v41  ;;  %v2188_v1 = vsel %vm5039_vm5, %v2186_v52, %v2187_v5  ;;  %v1913_v36 = vrot.slane %v1820_v27, 5  ;;  %v1916_v2 = vrot.slane %v1821_v49, 5  ;;  %v4179_v20 = vpop.f32.mrb[43].mxu0  ;;  %v1336_v38 = vpop.f32.mrb[43].mxu1  ;;  %4497 = vmatprep.subr.bf16.mxu0 %v4639_v21  ;;  %v4641_v44 = vld [vmem:[#allocation13 + $0x20] sm:$0xff]   ;;  %v4643_v47 = vld [vmem:[#allocation13 + $0x28] sm:$0xff]  }
 0x1c7   :  { %v1546_v35 = vrot.slane %v3957_v26, 6  ;;  %v1382_v7 = vmax.f32 %v1310_v60, 0.0  ;;  %v3838_v0 = vcombine.low %v2185_v32, %v2188_v1  ;;  %v2189_v51 = vrot.slane %v2187_v5, 4  ;;  %v2091_v49 = vld [vmem:[#allocation2 + $0x3c] sm:$0xc] }
 0x1c8   :  { %v1383_v19 = vmax.f32 %v1313_v25, 0.0  ;;  %v1914_v18 = vsel %vm5001_vm2, %v1912_v39, %v1913_v36  ;;  %v1915_v46 = vrot.slane %v1913_v36, 4  ;;  %v2190_v62 = vrot.slane %v2089_v54, 6  ;;  %v2092_v52 = vld [vmem:[#allocation2 + $0x40] sm:$0xf] }
 0x1c9   :  { %v1547_v40 = vsel %vm5039_vm5, %v1545_v55, %v1546_v35  ;;  %v1548_v6 = vrot.slane %v1546_v35, 4  ;;  %v3958_v10 = vpack.c.bf16 %v1382_v7, %v1382_v7  ;;  %4467 = vmatprep.mubr.bf16.mxu0 %v3838_v0  ;;  %v2193_v11 = vrot.slane %v2090_v15, 6  ;;  %4498 = vmatpush3.bf16.msra.mxu0 %v4639_v21  ;;  %v4634_v5 = vld [vmem:[#allocation2 + $0x1c] sm:$0xff]   ;;  %v2093_v35 = vld [vmem:[#allocation2 + $0x44] sm:$0xf]  ;;  %v4645_v7 = vld [vmem:[#allocation13 + $0x30] sm:$0xff]  }
 0x1ca   :  { %1649 = vst [vmem:[#allocation2 + $0x54] sm:$0xf] %v1547_v40  ;;  %v3959_v58 = vpack.c.bf16 %v1383_v19, %v1383_v19  ;;  %v1917_v12 = vsel %vm5001_vm2, %v1915_v46, %v1916_v2  ;;  %v2191_v48 = vsel %vm5039_vm5, %v2189_v51, %v2190_v62  ;;  %v2192_v27 = vrot.slane %v2190_v62, 4  ;;  %4499 = vmatprep.subr.bf16.mxu0 %v4641_v44  ;;  %v1822_v46 = vld [vmem:[#allocation2 + $0x28] sm:$0xe] }
 0x1cb   :  { %v1549_v30 = vrot.slane %v3958_v10, 6  ;;  %v3813_v43 = vcombine.low %v1914_v18, %v1917_v12  ;;  %v1342_v4 = vadd.f32 %v4437_v14, %v5406_v63  ;;  %v4177_v45 = vadd.f32 %v4176_v8, %v4175_v53  ;;  %v5536_v13 = vpop.f32.mrb[44].mxu0  ;;  %v5538_v50 = vpop.f32.mrb[44].mxu1  ;;  %v1823_v10 = vld [vmem:[#allocation2 + $0x2c] sm:$0xf] }
 0x1cc   :  { %v1552_v28 = vrot.slane %v3959_v58, 6  ;;  %v2194_v41 = vsel %vm5039_vm5, %v2192_v27, %v2193_v11  ;;  %v1334_v32 = vadd.f32 %v1333_v17, %v5400_v61  ;;  %v1345_v21 = vadd.f32 %v4438_v31, %v5409_v56  ;;  %v5544_v55 = vpop.f32.mrb[45].mxu0  ;;  %v5546_v63 = vpop.f32.mrb[45].mxu1  ;;  %v5565_v11 = vld [vmem:[#allocation2 + $0x30] sm:$0xf]  ;;  %v4647_v27 = vld [vmem:[#allocation13 + $0x38] sm:$0xff]  }
 0x1cd   :  { %v1550_v53 = vsel %vm5039_vm5, %v1548_v6, %v1549_v30  ;;  %v1551_v14 = vrot.slane %v1549_v30, 4  ;;  %2643 = vmatprep.mubr.bf16.mxu1 %v3813_v43  ;;  %v3839_v8 = vcombine.low %v2191_v48, %v2194_v41  ;;  %v1390_v26 = vmax.f32 %v1342_v4, 0.0  ;;  %v5550_v60 = vpop.f32.mrb[46].mxu0  ;;  %v5552_v39 = vpop.f32.mrb[46].mxu1  ;;  %4500 = vmatpush3.bf16.msra.mxu0 %v4641_v44 }
 0x1ce   :  { %1650 = vst [vmem:[#allocation2 + $0x58] sm:$0xf] %v1550_v53  ;;  %v1554_v61 = vrot.slane %v1552_v28, 4  ;;  %v1157_v56 = vadd.f32 %v4177_v45, %v5388_v16  ;;  %v1388_v17 = vmax.f32 %v1334_v32, 0.0  ;;  %v1391_v54 = vmax.f32 %v1345_v21, 0.0  ;;  %2644 = vmatmul.mubr.bf16.gmra.mrb[60].mxu1 %v4634_v5  ;;  %v5555_v31 = vpop.f32.mrb[47].mxu0  ;;  %4501 = vmatprep.subr.bf16.mxu0 %v4643_v47 }
 0x1cf   :  { %v5557_v25 = vpop.f32.mrb[47].mxu1  ;;  %v1553_v1 = vsel %vm5039_vm5, %v1551_v14, %v1552_v28  ;;  %4468 = vmatmul.mubr.bf16.gmra.mrb[56].mxu0 %v3839_v8  ;;  %v3966_v36 = vpack.c.bf16 %v1390_v26, %v1390_v26  ;;  %v4180_v2 = vadd.f32 %v4179_v20, %v5522_v23  ;;  %v1337_v15 = vadd.f32 %v1336_v38, %v5403_v24  ;;  %v2094_v5 = vld [vmem:[#allocation2 + $0x48] sm:$0xf] }
 0x1d0   :  { %1651 = vst [vmem:[#allocation2 + $0x5c] sm:$0xf] %v1553_v1  ;;  %1652 = vst [vmem:[#allocation2 + $0x60] sm:$0x3] %v1554_v61  ;;  %v1318_v0 = vadd.f32 %v5493_v29, %v1157_v56  ;;  %v3964_v51 = vpack.c.bf16 %v1388_v17, %v1388_v17  ;;  %v3967_v19 = vpack.c.bf16 %v1391_v54, %v1391_v54  ;;  %v3829_v18 = vrot.slane %v2091_v49, 10 }
 0x1d1   :  { %v1571_v44 = vrot.slane %v3966_v36, 6  ;;  %v1160_v62 = vadd.f32 %v4180_v2, %v5388_v16  ;;  %v1389_v40 = vmax.f32 %v1337_v15, 0.0  ;;  %v2197_v6 = vrot.slane %v2092_v52, 6  ;;  %4502 = vmatpush3.bf16.msra.mxu0 %v4643_v47  ;;  %v2095_v61 = vld [vmem:[#allocation2 + $0x4c] sm:$0x3] }
 0x1d2   :  { %v1384_v23 = vmax.f32 %v1318_v0, 0.0  ;;  %v1566_v20 = vrot.slane %v3964_v51, 6  ;;  %v1574_v24 = vrot.slane %v3967_v19, 6  ;;  %v2200_v38 = vrot.slane %v2093_v35, 6  ;;  %4503 = vmatprep.subr.bf16.mxu0 %v4645_v7 }
 0x1d3   :  { %v1573_v58 = vrot.slane %v1571_v44, 4  ;;  %v1321_v29 = vadd.f32 %v5503_v57, %v1160_v62  ;;  %v3965_v12 = vpack.c.bf16 %v1389_v40, %v1389_v40  ;;  %v2198_v48 = vsel %vm5039_vm5, %v3829_v18, %v2197_v6 }
 0x1d4   :  { %v3960_v30 = vpack.c.bf16 %v1384_v23, %v1384_v23  ;;  %v1567_v43 = vrot.slane %v1566_v20, 4  ;;  %1658 = vst [vmem:[#allocation2 + $0x78] sm:$0xc] %v1566_v20  ;;  %v1576_v4 = vrot.slane %v1574_v24, 4  ;;  %v2199_v45 = vrot.slane %v2197_v6, 4 }
 0x1d5   :  { %v1575_v49 = vsel %vm5039_vm5, %v1573_v58, %v1574_v24  ;;  %v1385_v28 = vmax.f32 %v1321_v29, 0.0  ;;  %v1568_v41 = vrot.slane %v3965_v12, 6  ;;  %v3804_v47 = vrot.slane %v1822_v46, 9  ;;  %4504 = vmatpush3.bf16.msra.mxu0 %v4645_v7  ;;  %v1825_v20 = vld [vmem:[#allocation2 + $0x34] sm:$0xf] }
 0x1d6   :  { %v1555_v32 = vrot.slane %v3960_v30, 6  ;;  %1661 = vst [vmem:[#allocation2 + $0x84] sm:$0xf] %v1575_v49  ;;  %1662 = vst [vmem:[#allocation2 + $0x88] sm:$0x3] %v1576_v4  ;;  %v2201_v57 = vsel %vm5039_vm5, %v2199_v45, %v2200_v38  ;;  %v1920_v21 = vrot.slane %v1823_v10, 5  ;;  %4505 = vmatprep.subr.bf16.mxu0 %v4647_v27  ;;  %v1358_v1 = vadd.f32 %v5538_v50, %v5430_v42 }
 0x1d7   :  { %v1923_v52 = vrot.slane %v5565_v11, 5  ;;  %v3961_v53 = vpack.c.bf16 %v1385_v28, %v1385_v28  ;;  %v1569_v14 = vsel %vm5039_vm5, %v1567_v43, %v1568_v41  ;;  %v1570_v8 = vrot.slane %v1568_v41, 4  ;;  %v4636_v10 = vld [vmem:[#allocation2 + $0x28] sm:$0xff]   ;;  %v1826_v58 = vld [vmem:[#allocation2 + $0x38] sm:$0x1] }
 0x1d8   :  { %v3840_v26 = vcombine.low %v2198_v48, %v2201_v57  ;;  %v1556_v56 = vrot.slane %v1555_v32, 4  ;;  %1653 = vst [vmem:[#allocation2 + $0x64] sm:$0xc] %v1555_v32  ;;  %1659 = vst [vmem:[#allocation2 + $0x7c] sm:$0xf] %v1569_v14  ;;  %v1921_v17 = vsel %vm5001_vm2, %v3804_v47, %v1920_v21  ;;  %v1922_v54 = vrot.slane %v1920_v21, 4 }
 0x1d9   :  { %v1557_v36 = vrot.slane %v3961_v53, 6  ;;  %v1572_v2 = vsel %vm5039_vm5, %v1570_v8, %v1571_v44  ;;  %v2202_v15 = vrot.slane %v2200_v38, 4  ;;  %v2203_v35 = vrot.slane %v2094_v5, 6  ;;  %4506 = vmatpush3.bf16.msra.mxu0 %v4647_v27  ;;  %v2096_v48 = vld [vmem:[#allocation2 + $0x50] sm:$0xc] }
 0x1da   :  { %4471 = vmatprep.mubr.bf16.mxu0 %v3840_v26  ;;  %1660 = vst [vmem:[#allocation2 + $0x80] sm:$0xf] %v1572_v2  ;;  %v1924_v7 = vsel %vm5001_vm2, %v1922_v54, %v1923_v52  ;;  %v1394_v0 = vmax.f32 %v1358_v1, 0.0  ;;  %v2206_v51 = vrot.slane %v2095_v61, 6  ;;  %v4183_v19 = vadd.f32 %v5544_v55, %v5536_v13  ;;  %v2098_v57 = vld [vmem:[#allocation2 + $0x58] sm:$0xf] }
 0x1db   :  { %v1558_v42 = vsel %vm5039_vm5, %v1556_v56, %v1557_v36  ;;  %v1559_v50 = vrot.slane %v1557_v36, 4  ;;  %v3814_v18 = vcombine.low %v1921_v17, %v1924_v7  ;;  %v2204_v46 = vsel %vm5039_vm5, %v2202_v15, %v2203_v35  ;;  %v1829_v5 = vld [vmem:[#allocation2 + $0x44] sm:$0xf]  ;;  %v2099_v26 = vld [vmem:[#allocation2 + $0x5c] sm:$0xf] }
 0x1dc   :  { %1654 = vst [vmem:[#allocation2 + $0x68] sm:$0xf] %v1558_v42  ;;  %v5591_v44 = vpack.c.bf16 %v1394_v0, %v1394_v0  ;;  %v2205_v62 = vrot.slane %v2203_v35, 4  ;;  %v1165_v40 = vadd.f32 %v4183_v19, %v5388_v16  ;;  %v1350_v6 = vadd.f32 %v5546_v63, %v5415_v37  ;;  %v2100_v35 = vld [vmem:[#allocation2 + $0x60] sm:$0x3]  ;;  %v4638_v19 = vld [vmem:[#allocation2 + $0x30] sm:$0xff]  }
 0x1dd   :  { %2651 = vmatprep.mubr.bf16.mxu1 %v3814_v18  ;;  %v1361_v13 = vadd.f32 %v5552_v39, %v5434_v22  ;;  %v4186_v55 = vadd.f32 %v5555_v31, %v5550_v60  ;;  %v1353_v23 = vadd.f32 %v5557_v25, %v5424_v3  ;;  %v1925_v24 = vrot.slane %v1923_v52, 4  ;;  %v1828_v52 = vld [vmem:[#allocation2 + $0x40] sm:$0xf]  ;;  %v1827_v42 = vld [vmem:[#allocation2 + $0x3c] sm:$0xe] }
 0x1de   :  { %v1582_v38 = vrot.slane %v5591_v44, 6  ;;  %v2207_v11 = vsel %vm5039_vm5, %v2205_v62, %v2206_v51  ;;  %v1326_v37 = vadd.f32 %v5489_v34, %v1165_v40  ;;  %v1392_v63 = vmax.f32 %v1350_v6, 0.0  ;;  %2652 = vmatmul.mubr.bf16.gmra.mrb[64].mxu1 %v4636_v10  ;;  %v2097_v34 = vld [vmem:[#allocation2 + $0x54] sm:$0xf]  ;;  %v1830_v62 = vld [vmem:[#allocation2 + $0x48] sm:$0xf] }
 0x1df   :  { %v3841_v29 = vcombine.low %v2204_v46, %v2207_v11  ;;  %v1395_v22 = vmax.f32 %v1361_v13, 0.0  ;;  %v1168_v39 = vadd.f32 %v4186_v55, %v5388_v16  ;;  %v1393_v60 = vmax.f32 %v1353_v23, 0.0  ;;  %v1831_v55 = vld [vmem:[#allocation2 + $0x4c] sm:$0x1]  ;;  %v2101_v11 = vld [vmem:[#allocation2 + $0x64] sm:$0xc] }
 0x1e0   :  { %v1584_v31 = vrot.slane %v1582_v38, 4  ;;  %v1386_v12 = vmax.f32 %v1326_v37, 0.0  ;;  %v3968_v3 = vpack.c.bf16 %v1392_v63, %v1392_v63  ;;  %v1926_v25 = vrot.slane %v1825_v20, 5 }
 0x1e1   :  { %4472 = vmatmul.mubr.bf16.gmra.mrb[60].mxu0 %v3841_v29  ;;  %v3971_v27 = vpack.c.bf16 %v1395_v22, %v1395_v22  ;;  %v1329_v30 = vadd.f32 %v5498_v33, %v1168_v39  ;;  %v3969_v43 = vpack.c.bf16 %v1393_v60, %v1393_v60  ;;  %v1929_v4 = vrot.slane %v1826_v58, 5 }
 0x1e2   :  { %v3962_v45 = vpack.c.bf16 %v1386_v12, %v1386_v12  ;;  %v1577_v49 = vrot.slane %v3968_v3, 6  ;;  %v1927_v28 = vsel %vm5001_vm2, %v1925_v24, %v1926_v25  ;;  %v1928_v41 = vrot.slane %v1926_v25, 4  ;;  %v1833_v12 = vld [vmem:[#allocation2 + $0x54] sm:$0xf] }
 0x1e3   :  { %v1585_v16 = vrot.slane %v3971_v27, 6  ;;  %v1387_v47 = vmax.f32 %v1329_v30, 0.0  ;;  %v1579_v32 = vrot.slane %v3969_v43, 6  ;;  %v3830_v21 = vrot.slane %v2096_v48, 10  ;;  %v2102_v22 = vld [vmem:[#allocation2 + $0x68] sm:$0xf] }
 0x1e4   :  { %v1560_v53 = vrot.slane %v3962_v45, 6  ;;  %v1578_v14 = vrot.slane %v1577_v49, 4  ;;  %1663 = vst [vmem:[#allocation2 + $0x8c] sm:$0xc] %v1577_v49  ;;  %v1930_v33 = vsel %vm5001_vm2, %v1928_v41, %v1929_v4  ;;  %v2210_v8 = vrot.slane %v2097_v34, 6 }
 0x1e5   :  { %v1586_v61 = vsel %vm5039_vm5, %v1584_v31, %v1585_v16  ;;  %v1587_v56 = vrot.slane %v1585_v16, 4  ;;  %v3963_v17 = vpack.c.bf16 %v1387_v47, %v1387_v47  ;;  %v1581_v54 = vrot.slane %v1579_v32, 4  ;;  %v5634_v30 = vld [vmem:[#allocation2 + $0x58] sm:$0xf]  ;;  %v2107_v49 = vld [vmem:[#allocation2 + $0x7c] sm:$0xf] }
 0x1e6   :  { %v1561_v1 = vsel %vm5039_vm5, %v1559_v50, %v1560_v53  ;;  %v1562_v36 = vrot.slane %v1560_v53, 4  ;;  %1666 = vst [vmem:[#allocation2 + $0x98] sm:$0xf] %v1586_v61  ;;  %v1580_v2 = vsel %vm5039_vm5, %v1578_v14, %v1579_v32  ;;  %v3815_v15 = vcombine.low %v1927_v28, %v1930_v33  ;;  %v4640_v28 = vld [vmem:[#allocation2 + $0x3c] sm:$0xff]  }
 0x1e7   :  { %1655 = vst [vmem:[#allocation2 + $0x6c] sm:$0xf] %v1561_v1  ;;  %1667 = vst [vmem:[#allocation2 + $0x9c] sm:$0x3] %v1587_v56  ;;  %v1563_v7 = vrot.slane %v3963_v17, 6  ;;  %v1583_v0 = vsel %vm5039_vm5, %v1581_v54, %v1582_v38  ;;  %v2211_v51 = vsel %vm5039_vm5, %v3830_v21, %v2210_v8  ;;  %v2212_v50 = vrot.slane %v2210_v8, 4 }
 0x1e8   :  { %1664 = vst [vmem:[#allocation2 + $0x90] sm:$0xf] %v1580_v2  ;;  %1665 = vst [vmem:[#allocation2 + $0x94] sm:$0xf] %v1583_v0  ;;  %2659 = vmatprep.mubr.bf16.mxu1 %v3815_v15  ;;  %v2213_v18 = vrot.slane %v2098_v57, 6  ;;  %v1933_v46 = vrot.slane %v1828_v52, 5 }
 0x1e9   :  { %v1936_v44 = vrot.slane %v1829_v5, 5  ;;  %v1564_v40 = vsel %vm5039_vm5, %v1562_v36, %v1563_v7  ;;  %v1565_v6 = vrot.slane %v1563_v7, 4  ;;  %2660 = vmatmul.mubr.bf16.gmra.mrb[68].mxu1 %v4638_v19  ;;  %v2216_v10 = vrot.slane %v2099_v26, 6  ;;  %v2108_v57 = vld [vmem:[#allocation2 + $0x80] sm:$0xf] }
 0x1ea   :  { %v2219_v13 = vrot.slane %v2100_v35, 6  ;;  %1656 = vst [vmem:[#allocation2 + $0x70] sm:$0xf] %v1564_v40  ;;  %v2214_v23 = vsel %vm5039_vm5, %v2212_v50, %v2213_v18  ;;  %v3805_v20 = vrot.slane %v1827_v42, 9  ;;  %v1935_v24 = vrot.slane %v1933_v46, 4 }
 0x1eb   :  { %v2215_v38 = vrot.slane %v2213_v18, 4  ;;  %1657 = vst [vmem:[#allocation2 + $0x74] sm:$0x3] %v1565_v6  ;;  %v3842_v37 = vcombine.low %v2211_v51, %v2214_v23  ;;  %v2218_v63 = vrot.slane %v2216_v10, 4  ;;  %v1938_v58 = vrot.slane %v1936_v44, 4  ;;  %v4642_v23 = vld [vmem:[#allocation2 + $0x44] sm:$0xff]  }
 0x1ec   :  { %v1939_v29 = vrot.slane %v1830_v62, 5  ;;  %v1934_v39 = vsel %vm5001_vm2, %v3805_v20, %v1933_v46  ;;  %v1937_v60 = vsel %vm5001_vm2, %v1935_v24, %v1936_v44  ;;  %v1942_v31 = vrot.slane %v1831_v55, 5  ;;  %v1832_v5 = vld [vmem:[#allocation2 + $0x50] sm:$0xe]  ;;  %v5640_v53 = vld [vmem:[#allocation2 + $0x5c] sm:$0xf] }
 0x1ed   :  { %4475 = vmatprep.mubr.bf16.mxu0 %v3842_v37  ;;  %v3816_v3 = vcombine.low %v1934_v39, %v1937_v60  ;;  %v2217_v25 = vsel %vm5039_vm5, %v2215_v38, %v2216_v10  ;;  %v2220_v48 = vsel %vm5039_vm5, %v2218_v63, %v2219_v13  ;;  %v3831_v34 = vrot.slane %v2101_v11, 10  ;;  %v2106_v26 = vld [vmem:[#allocation2 + $0x78] sm:$0xc]  ;;  %v2109_v7 = vld [vmem:[#allocation2 + $0x84] sm:$0xf] }
 0x1ee   :  { %v1941_v27 = vrot.slane %v1939_v29, 4  ;;  %v3843_v43 = vcombine.low %v2217_v25, %v2220_v48  ;;  %v2103_v4 = vld [vmem:[#allocation2 + $0x6c] sm:$0xf]  ;;  %v2223_v45 = vrot.slane %v2102_v22, 6  ;;  %v1940_v41 = vsel %vm5001_vm2, %v1938_v58, %v1939_v29  ;;  %v5650_v44 = vld [vmem:[#allocation4 + $0x4] sm:$0xf] }
 0x1ef   :  { %2667 = vmatprep.mubr.bf16.mxu1 %v3816_v3  ;;  %v2226_v47 = vrot.slane %v2103_v4, 6  ;;  %v1946_v32 = vrot.slane %v1833_v12, 5  ;;  %v1949_v33 = vrot.slane %v5634_v30, 5  ;;  %v2236_v61 = vrot.slane %v2107_v49, 6  ;;  %v2112_v46 = vld [vmem:[#allocation2 + $0x90] sm:$0xf] }
 0x1f0   :  { %v1943_v16 = vsel %vm5001_vm2, %v1941_v27, %v1942_v31  ;;  %4476 = vmatmul.mubr.bf16.gmra.mrb[64].mxu0 %v3843_v43  ;;  %v2225_v52 = vrot.slane %v2223_v45, 4  ;;  %v2224_v14 = vsel %vm5039_vm5, %v3831_v34, %v2223_v45  ;;  %v2239_v36 = vrot.slane %v2108_v57, 6  ;;  %v1836_v10 = vld [vmem:[#allocation2 + $0x60] sm:$0x1]  ;;  %v2113_v55 = vld [vmem:[#allocation2 + $0x94] sm:$0xf] }
 0x1f1   :  { %v3817_v21 = vcombine.low %v1940_v41, %v1943_v16  ;;  %2668 = vmatmul.mubr.bf16.gmra.mrb[72].mxu1 %v4640_v28  ;;  %v2104_v8 = vld [vmem:[#allocation2 + $0x70] sm:$0xf]  ;;  %v2228_v54 = vrot.slane %v2226_v47, 4  ;;  %v1948_v15 = vrot.slane %v1946_v32, 4  ;;  %v3806_v0 = vrot.slane %v1832_v5, 9 }
 0x1f2   :  { %v2227_v56 = vsel %vm5039_vm5, %v2225_v52, %v2226_v47  ;;  %v2105_v17 = vld [vmem:[#allocation2 + $0x74] sm:$0x3]  ;;  %v2229_v1 = vrot.slane %v2104_v8, 6  ;;  %v2238_v19 = vrot.slane %v2236_v61, 4  ;;  %v3832_v50 = vrot.slane %v2106_v26, 10 }
 0x1f3   :  { %2675 = vmatprep.mubr.bf16.mxu1 %v3817_v21  ;;  %v3844_v2 = vcombine.low %v2224_v14, %v2227_v56  ;;  %v2232_v35 = vrot.slane %v2105_v17, 6  ;;  %v1950_v42 = vsel %vm5001_vm2, %v1948_v15, %v1949_v33  ;;  %v1952_v18 = vrot.slane %v5640_v53, 5  ;;  %v2110_v11 = vld [vmem:[#allocation2 + $0x88] sm:$0x3]  ;;  %v2941_v22 = vld [vmem:[#allocation4] sm:$0xc] }
 0x1f4   :  { %v2231_v51 = vrot.slane %v2229_v1, 4  ;;  %v2230_v62 = vsel %vm5039_vm5, %v2228_v54, %v2229_v1  ;;  %v2240_v6 = vsel %vm5039_vm5, %v2238_v19, %v2239_v36  ;;  %v2242_v13 = vrot.slane %v2109_v7, 6  ;;  %v2943_v39 = vld [vmem:[#allocation4 + $0x8] sm:$0xf]  ;;  %v2111_v12 = vld [vmem:[#allocation2 + $0x8c] sm:$0xc] }
 0x1f5   :  { %4479 = vmatprep.mubr.bf16.mxu0 %v3844_v2  ;;  %v1947_v20 = vsel %vm5001_vm2, %v3806_v0, %v1946_v32  ;;  %v2237_v38 = vsel %vm5039_vm5, %v3832_v50, %v2236_v61  ;;  %v2241_v58 = vrot.slane %v2239_v36, 4  ;;  %v2249_v29 = vrot.slane %v2112_v46, 6  ;;  %v2114_v30 = vld [vmem:[#allocation2 + $0x98] sm:$0xf]  ;;  %v1838_v45 = vld [vmem:[#allocation2 + $0x68] sm:$0xf] }
 0x1f6   :  { %v2233_v40 = vsel %vm5039_vm5, %v2231_v51, %v2232_v35  ;;  %v3818_v37 = vcombine.low %v1947_v20, %v1950_v42  ;;  %v3846_v63 = vcombine.low %v2237_v38, %v2240_v6  ;;  %v1954_v60 = vrot.slane %v1952_v18, 4  ;;  %v1839_v57 = vld [vmem:[#allocation2 + $0x6c] sm:$0xf]  ;;  %v4644_v53 = vld [vmem:[#allocation2 + $0x50] sm:$0xff]   ;;  %v2115_v61 = vld [vmem:[#allocation2 + $0x9c] sm:$0x3] }
 0x1f7   :  { %v3845_v24 = vcombine.low %v2230_v62, %v2233_v40  ;;  %v1955_v31 = vrot.slane %v1836_v10, 5  ;;  %v2252_v3 = vrot.slane %v2113_v55, 6  ;;  %v2244_v25 = vrot.slane %v2242_v13, 4  ;;  %v2944_v5 = vld [vmem:[#allocation4 + $0xc] sm:$0xf] }
 0x1f8   :  { %v2245_v48 = vrot.slane %v2110_v11, 6  ;;  %v2251_v27 = vrot.slane %v2249_v29, 4  ;;  %v3023_v43 = vrot.slane %v5650_v44, 6  ;;  %v1951_v4 = vrot.slane %v1949_v33, 4  ;;  %v2947_v1 = vld [vmem:[#allocation4 + $0x18] sm:$0xf] }
 0x1f9   :  { %2676 = vmatmul.mubr.bf16.gmra.mrb[76].mxu1 %v4642_v23  ;;  %4480 = vmatmul.mubr.bf16.gmra.mrb[68].mxu0 %v3845_v24  ;;  %v2243_v34 = vsel %vm5039_vm5, %v2241_v58, %v2242_v13  ;;  %v3875_v49 = vrot.slane %v2941_v22, 10  ;;  %v1956_v28 = vsel %vm5001_vm2, %v1954_v60, %v1955_v31  ;;  %v3833_v41 = vrot.slane %v2111_v12, 10  ;;  %v1837_v15 = vld [vmem:[#allocation2 + $0x64] sm:$0xe]  ;;  %v1840_v0 = vld [vmem:[#allocation2 + $0x70] sm:$0xf] }
 0x1fa   :  { %2683 = vmatprep.mubr.bf16.mxu1 %v3818_v37  ;;  %4483 = vmatprep.mubr.bf16.mxu0 %v3846_v63  ;;  %v2253_v16 = vsel %vm5039_vm5, %v2251_v27, %v2252_v3  ;;  %v3026_v47 = vrot.slane %v2943_v39, 6  ;;  %v2246_v32 = vsel %vm5039_vm5, %v2244_v25, %v2245_v48  ;;  %v2255_v21 = vrot.slane %v2114_v30, 6  ;;  %v2945_v50 = vld [vmem:[#allocation4 + $0x10] sm:$0x3]  ;;  %v2948_v40 = vld [vmem:[#allocation4 + $0x1c] sm:$0xf] }
 0x1fb   :  { %v3025_v52 = vrot.slane %v3023_v43, 4  ;;  %v1953_v14 = vsel %vm5001_vm2, %v1951_v4, %v1952_v18  ;;  %v3847_v33 = vcombine.low %v2243_v34, %v2246_v32  ;;  %v2250_v8 = vsel %vm5039_vm5, %v3833_v41, %v2249_v29  ;;  %v2946_v18 = vld [vmem:[#allocation4 + $0x14] sm:$0xc]  ;;  %v1841_v20 = vld [vmem:[#allocation2 + $0x74] sm:$0x1]  ;;  %v4646_v37 = vld [vmem:[#allocation2 + $0x58] sm:$0xff]  }
 0x1fc   :  { %v1959_v26 = vrot.slane %v1838_v45, 5  ;;  %v3819_v56 = vcombine.low %v1953_v14, %v1956_v28  ;;  %v3848_v17 = vcombine.low %v2250_v8, %v2253_v16  ;;  %v2254_v54 = vrot.slane %v2252_v3, 4  ;;  %v2949_v39 = vld [vmem:[#allocation4 + $0x20] sm:$0xf]  ;;  %v2952_v31 = vld [vmem:[#allocation4 + $0x2c] sm:$0xf] }
 0x1fd   :  { %v1962_v36 = vrot.slane %v1839_v57, 5  ;;  %v3029_v2 = vrot.slane %v2944_v5, 6  ;;  %v2257_v35 = vrot.slane %v2255_v21, 4  ;;  %v2258_v7 = vrot.slane %v2115_v61, 6  ;;  %v1843_v27 = vld [vmem:[#allocation2 + $0x7c] sm:$0xf] }
 0x1fe   :  { %v3024_v51 = vsel %vm5039_vm5, %v3875_v49, %v3023_v43  ;;  %v3027_v19 = vsel %vm5039_vm5, %v3025_v52, %v3026_v47  ;;  %v1961_v42 = vrot.slane %v1959_v26, 4  ;;  %v3036_v46 = vrot.slane %v2947_v1, 6  ;;  %v2950_v45 = vld [vmem:[#allocation4 + $0x24] sm:$0x3]  ;;  %v2951_v28 = vld [vmem:[#allocation4 + $0x28] sm:$0xc] }
 0x1ff   :  { %v2256_v44 = vsel %vm5039_vm5, %v2254_v54, %v2255_v21  ;;  %v3028_v62 = vrot.slane %v3026_v47, 4  ;;  %v3807_v6 = vrot.slane %v1837_v15, 9  ;;  %v1965_v13 = vrot.slane %v1840_v0, 5  ;;  %v2953_v41 = vld [vmem:[#allocation4 + $0x30] sm:$0xf]  ;;  %v4648_v14 = vld [vmem:[#allocation2 + $0x64] sm:$0xff]  }
 0x200   :  { %v1963_v10 = vsel %vm5001_vm2, %v1961_v42, %v1962_v36  ;;  %v3884_v55 = vcombine.low %v3024_v51, %v3027_v19  ;;  %v2259_v23 = vsel %vm5039_vm5, %v2257_v35, %v2258_v7  ;;  %v3031_v24 = vrot.slane %v3029_v2, 4  ;;  %v1844_v57 = vld [vmem:[#allocation2 + $0x80] sm:$0xf]  ;;  %v1842_v54 = vld [vmem:[#allocation2 + $0x78] sm:$0xe] }
 0x201   :  { %2684 = vmatmul.mubr.bf16.gmra.mrb[80].mxu1 %v4644_v53  ;;  %4484 = vmatmul.mubr.bf16.gmra.mrb[72].mxu0 %v3847_v33  ;;  %v3032_v38 = vrot.slane %v2945_v50, 6  ;;  %v3876_v11 = vrot.slane %v2946_v18, 10  ;;  %v1960_v63 = vsel %vm5001_vm2, %v3807_v6, %v1959_v26  ;;  %v3849_v58 = vcombine.low %v2256_v44, %v2259_v23  ;;  %v2957_v1 = vld [vmem:[#allocation4 + $0x40] sm:$0xf]  ;;  %v2955_v42 = vld [vmem:[#allocation4 + $0x38] sm:$0x3] }
 0x202   :  { %2691 = vmatprep.mubr.bf16.mxu1 %v3819_v56  ;;  %4487 = vmatprep.mubr.bf16.mxu0 %v3848_v17  ;;  %v3038_v29 = vrot.slane %v3036_v46, 4  ;;  %v3039_v22 = vrot.slane %v2948_v40, 6  ;;  %v3820_v60 = vcombine.low %v1960_v63, %v1963_v10  ;;  %v1967_v12 = vrot.slane %v1965_v13, 4  ;;  %v2954_v56 = vld [vmem:[#allocation4 + $0x34] sm:$0xf] }
 0x203   :  { %v1968_v3 = vrot.slane %v1841_v20, 5  ;;  %v3030_v25 = vsel %vm5039_vm5, %v3028_v62, %v3029_v2  ;;  %v3033_v48 = vsel %vm5039_vm5, %v3031_v24, %v3032_v38  ;;  %v3042_v30 = vrot.slane %v2949_v39, 6  ;;  %v1845_v18 = vld [vmem:[#allocation2 + $0x84] sm:$0xf]  ;;  %v1846_v10 = vld [vmem:[#allocation2 + $0x88] sm:$0x1] }
 0x204   :  { %v1964_v43 = vrot.slane %v1962_v36, 4  ;;  %v3037_v4 = vsel %vm5039_vm5, %v3876_v11, %v3036_v46  ;;  %v3040_v34 = vsel %vm5039_vm5, %v3038_v29, %v3039_v22  ;;  %v3049_v49 = vrot.slane %v2952_v31, 6  ;;  %v2956_v46 = vld [vmem:[#allocation4 + $0x3c] sm:$0xc]  ;;  %v2958_v44 = vld [vmem:[#allocation4 + $0x44] sm:$0xf] }
 0x205   :  { %v1969_v16 = vsel %vm5001_vm2, %v1967_v12, %v1968_v3  ;;  %v3885_v47 = vcombine.low %v3030_v25, %v3033_v48  ;;  %v1972_v32 = vrot.slane %v1843_v27, 5  ;;  %v3886_v21 = vcombine.low %v3037_v4, %v3040_v34  ;;  %v2959_v24 = vld [vmem:[#allocation4 + $0x48] sm:$0xf]  ;;  %v4649_v38 = vld [vmem:[#allocation2 + $0x6c] sm:$0xff]  }
 0x206   :  { %v3041_v52 = vrot.slane %v3039_v22, 4  ;;  %v3044_v5 = vrot.slane %v3042_v30, 4  ;;  %v3045_v53 = vrot.slane %v2950_v45, 6  ;;  %v1966_v33 = vsel %vm5001_vm2, %v1964_v43, %v1965_v13  ;;  %v2962_v22 = vld [vmem:[#allocation4 + $0x54] sm:$0xf] }
 0x207   :  { %v3877_v8 = vrot.slane %v2951_v28, 10  ;;  %v3051_v26 = vrot.slane %v3049_v49, 4  ;;  %v3052_v61 = vrot.slane %v2953_v41, 6  ;;  %v3821_v17 = vcombine.low %v1966_v33, %v1969_v16  ;;  %v1848_v3 = vld [vmem:[#allocation2 + $0x90] sm:$0xf] }
 0x208   :  { %v1974_v36 = vrot.slane %v1972_v32, 4  ;;  %v1975_v2 = vrot.slane %v1844_v57, 5  ;;  %v3043_v15 = vsel %vm5039_vm5, %v3041_v52, %v3042_v30  ;;  %v3046_v35 = vsel %vm5039_vm5, %v3044_v5, %v3045_v53  ;;  %v2960_v43 = vld [vmem:[#allocation4 + $0x4c] sm:$0x3]  ;;  %v2961_v34 = vld [vmem:[#allocation4 + $0x50] sm:$0xc] }
 0x209   :  { %2692 = vmatmul.mubr.bf16.gmra.mrb[84].mxu1 %v4646_v37  ;;  %4488 = vmatmul.mubr.bf16.gmra.mrb[76].mxu0 %v3849_v58  ;;  %v3055_v7 = vrot.slane %v2954_v56, 6  ;;  %v3808_v0 = vrot.slane %v1842_v54, 9  ;;  %v3050_v51 = vsel %vm5039_vm5, %v3877_v8, %v3049_v49  ;;  %v3053_v19 = vsel %vm5039_vm5, %v3051_v26, %v3052_v61  ;;  %v2963_v45 = vld [vmem:[#allocation4 + $0x58] sm:$0xf]  ;;  %v1849_v16 = vld [vmem:[#allocation2 + $0x94] sm:$0xf] }
 0x20a   :  { %2699 = vmatprep.mubr.bf16.mxu1 %v3820_v60  ;;  %4507 = vmatprep.mubr.bf16.mxu0 %v3884_v55  ;;  %v3062_v50 = vrot.slane %v2957_v1, 6  ;;  %v1976_v40 = vsel %vm5001_vm2, %v1974_v36, %v1975_v2  ;;  %v3887_v6 = vcombine.low %v3043_v15, %v3046_v35  ;;  %v3888_v13 = vcombine.low %v3050_v51, %v3053_v19  ;;  %v4650_v52 = vld [vmem:[#allocation2 + $0x78] sm:$0xff]   ;;  %v2967_v56 = vld [vmem:[#allocation4 + $0x68] sm:$0xf] }
 0x20b   :  { %v1973_v62 = vsel %vm5001_vm2, %v3808_v0, %v1972_v32  ;;  %v3054_v55 = vrot.slane %v3052_v61, 4  ;;  %v3057_v23 = vrot.slane %v3055_v7, 4  ;;  %v3058_v20 = vrot.slane %v2955_v42, 6  ;;  %v2964_v8 = vld [vmem:[#allocation4 + $0x5c] sm:$0xf] }
 0x20c   :  { %v1978_v11 = vrot.slane %v1845_v18, 5  ;;  %v3878_v37 = vrot.slane %v2956_v46, 10  ;;  %v3064_v63 = vrot.slane %v3062_v50, 4  ;;  %v3065_v58 = vrot.slane %v2958_v44, 6  ;;  %v1847_v61 = vld [vmem:[#allocation2 + $0x8c] sm:$0xe] }
 0x20d   :  { %v3822_v29 = vcombine.low %v1973_v62, %v1976_v40  ;;  %v1977_v39 = vrot.slane %v1975_v2, 4  ;;  %v1981_v60 = vrot.slane %v1846_v10, 5  ;;  %v3056_v31 = vsel %vm5039_vm5, %v3054_v55, %v3055_v7  ;;  %v2965_v0 = vld [vmem:[#allocation4 + $0x60] sm:$0x3]  ;;  %v1850_v19 = vld [vmem:[#allocation2 + $0x98] sm:$0xf] }
 0x20e   :  { %v3059_v12 = vsel %vm5039_vm5, %v3057_v23, %v3058_v20  ;;  %v3068_v25 = vrot.slane %v2959_v24, 6  ;;  %v1980_v48 = vrot.slane %v1978_v11, 4  ;;  %v3063_v27 = vsel %vm5039_vm5, %v3878_v37, %v3062_v50  ;;  %v2966_v42 = vld [vmem:[#allocation4 + $0x64] sm:$0xc]  ;;  %v2968_v50 = vld [vmem:[#allocation4 + $0x6c] sm:$0xf] }
 0x20f   :  { %v3066_v30 = vsel %vm5039_vm5, %v3064_v63, %v3065_v58  ;;  %v3075_v4 = vrot.slane %v2962_v22, 6  ;;  %v1979_v49 = vsel %vm5001_vm2, %v1977_v39, %v1978_v11  ;;  %v3889_v28 = vcombine.low %v3056_v31, %v3059_v12  ;;  %v4651_v62 = vld [vmem:[#allocation2 + $0x80] sm:$0xff]   ;;  %v1851_v40 = vld [vmem:[#allocation2 + $0x9c] sm:$0x1]  ;;  %v2969_v11 = vld [vmem:[#allocation4 + $0x70] sm:$0xf] }
 0x210   :  { %v1985_v41 = vrot.slane %v1848_v3, 5  ;;  %v3067_v32 = vrot.slane %v3065_v58, 4  ;;  %v3070_v57 = vrot.slane %v3068_v25, 4  ;;  %v1982_v5 = vsel %vm5001_vm2, %v1980_v48, %v1981_v60  ;;  %v2972_v63 = vld [vmem:[#allocation4 + $0x7c] sm:$0xf] }
 0x211   :  { %2700 = vmatmul.mubr.bf16.gmra.mrb[88].mxu1 %v4648_v14  ;;  %4508 = vmatmul.mubr.bf16.vlgmr.msra.gmra.mrb[80].mxu0 %v3885_v47  ;;  %v3890_v47 = vcombine.low %v3063_v27, %v3066_v30  ;;  %v3879_v53 = vrot.slane %v2961_v34, 10  ;;  %v3077_v14 = vrot.slane %v3075_v4, 4  ;;  %v3078_v33 = vrot.slane %v2963_v45, 6  ;;  %v2971_v27 = vld [vmem:[#allocation4 + $0x78] sm:$0xc] }
 0x212   :  { %2707 = vmatprep.mubr.bf16.mxu1 %v3821_v17  ;;  %4511 = vmatprep.mubr.bf16.mxu0 %v3886_v21  ;;  %v3071_v21 = vrot.slane %v2960_v43, 6  ;;  %v3823_v26 = vcombine.low %v1979_v49, %v1982_v5  ;;  %v1987_v17 = vrot.slane %v1985_v41, 4  ;;  %v1988_v54 = vrot.slane %v1849_v16, 5  ;;  %v2973_v30 = vld [vmem:[#allocation4 + $0x80] sm:$0xf] }
 0x213   :  { %v3069_v1 = vsel %vm5039_vm5, %v3067_v32, %v3068_v25  ;;  %v3081_v2 = vrot.slane %v2964_v8, 6  ;;  %v3809_v15 = vrot.slane %v1847_v61, 9  ;;  %v3076_v35 = vsel %vm5039_vm5, %v3879_v53, %v3075_v4  ;;  %v2970_v25 = vld [vmem:[#allocation4 + $0x74] sm:$0x3]  ;;  %v2977_v5 = vld [vmem:[#allocation4 + $0x90] sm:$0xf] }
 0x214   :  { %v3072_v36 = vsel %vm5039_vm5, %v3070_v57, %v3071_v21  ;;  %v3079_v7 = vsel %vm5039_vm5, %v3077_v14, %v3078_v33  ;;  %v3088_v51 = vrot.slane %v2967_v56, 6  ;;  %v1989_v46 = vsel %vm5001_vm2, %v1987_v17, %v1988_v54  ;;  %v2974_v21 = vld [vmem:[#allocation4 + $0x84] sm:$0xf]  ;;  %v2976_v56 = vld [vmem:[#allocation4 + $0x8c] sm:$0xc] }
 0x215   :  { %v1986_v18 = vsel %vm5001_vm2, %v3809_v15, %v1985_v41  ;;  %v3891_v44 = vcombine.low %v3069_v1, %v3072_v36  ;;  %v3080_v10 = vrot.slane %v3078_v33, 4  ;;  %v3084_v55 = vrot.slane %v2965_v0, 6  ;;  %v4652_v41 = vld [vmem:[#allocation2 + $0x8c] sm:$0xff]   ;;  %v2978_v17 = vld [vmem:[#allocation4 + $0x94] sm:$0xf] }
 0x216   :  { %v1991_v23 = vrot.slane %v1850_v19, 5  ;;  %v3880_v20 = vrot.slane %v2966_v42, 10  ;;  %v3090_v24 = vrot.slane %v3088_v51, 4  ;;  %v3824_v37 = vcombine.low %v1986_v18, %v1989_v46  ;;  %v2979_v19 = vld [vmem:[#allocation4 + $0x98] sm:$0xf] }
 0x217   :  { %v1990_v58 = vrot.slane %v1988_v54, 4  ;;  %v3082_v22 = vsel %vm5039_vm5, %v3080_v10, %v3081_v2  ;;  %v3094_v60 = vrot.slane %v2969_v11, 6  ;;  %v3101_v48 = vrot.slane %v2972_v63, 6 }
 0x218   :  { %v1993_v31 = vrot.slane %v1991_v23, 4  ;;  %v3089_v12 = vsel %vm5039_vm5, %v3880_v20, %v3088_v51  ;;  %v3104_v57 = vrot.slane %v2973_v30, 6  ;;  %v3107_v33 = vrot.slane %v2974_v21, 6 }
 0x219   :  { %2708 = vmatmul.mubr.bf16.gmra.mrb[92].mxu1 %v4649_v38  ;;  %4512 = vmatmul.mubr.bf16.gmra.mrb[84].mxu0 %v3887_v6  ;;  %v3892_v6 = vcombine.low %v3076_v35, %v3079_v7  ;;  %v3091_v38 = vrot.slane %v2968_v50, 6  ;;  %v1992_v43 = vsel %vm5001_vm2, %v1990_v58, %v1991_v23  ;;  %v3096_v49 = vrot.slane %v3094_v60, 4  ;;  %v4653_v35 = vld [vmem:[#allocation2 + $0x94] sm:$0xff]   ;;  %v5767_v58 = vld [vmem:[#allocation12] ss:$0 sm:$0xff] }
 0x21a   :  { %2715 = vmatprep.mubr.bf16.mxu1 %v3822_v29  ;;  %4515 = vmatprep.mubr.bf16.mxu0 %v3888_v13  ;;  %v3083_v13 = vrot.slane %v3081_v2, 4  ;;  %v1994_v29 = vrot.slane %v1851_v40, 5  ;;  %v3103_v32 = vrot.slane %v3101_v48, 4  ;;  %v3114_v61 = vrot.slane %v2977_v5, 6 }
 0x21b   :  { %v3092_v3 = vsel %vm5039_vm5, %v3090_v24, %v3091_v38  ;;  %v3093_v45 = vrot.slane %v3091_v38, 4  ;;  %v3106_v36 = vrot.slane %v3104_v57, 4  ;;  %v3109_v2 = vrot.slane %v3107_v33, 4 }
 0x21c   :  { %v3085_v39 = vsel %vm5039_vm5, %v3083_v13, %v3084_v55  ;;  %v3894_v34 = vcombine.low %v3089_v12, %v3092_v3  ;;  %v1995_v16 = vsel %vm5001_vm2, %v1993_v31, %v1994_v29  ;;  %v3105_v8 = vsel %vm5039_vm5, %v3103_v32, %v3104_v57 }
 0x21d   :  { %v3893_v4 = vcombine.low %v3082_v22, %v3085_v39  ;;  %v3095_v53 = vsel %vm5039_vm5, %v3093_v45, %v3094_v60  ;;  %v3882_v7 = vrot.slane %v2976_v56, 10  ;;  %v3116_v0 = vrot.slane %v3114_v61, 4 }
 0x21e   :  { %v3117_v51 = vrot.slane %v2978_v17, 6  ;;  %v3108_v42 = vsel %vm5039_vm5, %v3106_v36, %v3107_v33  ;;  %v3120_v18 = vrot.slane %v2979_v19, 6 }
 0x21f   :  { %v3115_v46 = vsel %vm5039_vm5, %v3882_v7, %v3114_v61 }
 0x220   :  { %v3119_v10 = vrot.slane %v3117_v51, 4  ;;  %v3122_v13 = vrot.slane %v3120_v18, 4 }
 0x221   :  { %2716 = vmatmul.mubr.bf16.gmra.mrb[96].mxu1 %v4650_v52  ;;  %4516 = vmatmul.mubr.bf16.gmra.mrb[88].mxu0 %v3889_v28  ;;  %v3097_v28 = vrot.slane %v2970_v25, 6  ;;  %v3825_v52 = vcombine.low %v1992_v43, %v1995_v16 }
 0x222   :  { %2723 = vmatprep.mubr.bf16.mxu1 %v3823_v26  ;;  %4519 = vmatprep.mubr.bf16.mxu0 %v3890_v47  ;;  %v3881_v47 = vrot.slane %v2971_v27, 10  ;;  %v2975_v26 = vld [vmem:[#allocation4 + $0x88] sm:$0x3]  ;;  %v3121_v23 = vsel %vm5039_vm5, %v3119_v10, %v3120_v18 }
 0x223   :  { %v3098_v14 = vsel %vm5039_vm5, %v3096_v49, %v3097_v28  ;;  %v3110_v15 = vrot.slane %v2975_v26, 6 }
 0x224   :  { %v3102_v9 = vsel %vm5039_vm5, %v3881_v47, %v3101_v48  ;;  %v3895_v54 = vcombine.low %v3095_v53, %v3098_v14 }
 0x225   :  { %v3896_v1 = vcombine.low %v3102_v9, %v3105_v8  ;;  %v3111_v50 = vsel %vm5039_vm5, %v3109_v2, %v3110_v15 }
 0x226   :  { %v3897_v40 = vcombine.low %v3108_v42, %v3111_v50 }
 0x229   :  { %2724 = vmatmul.mubr.bf16.gmra.mrb[100].mxu1 %v4651_v62  ;;  %4520 = vmatmul.mubr.bf16.gmra.mrb[92].mxu0 %v3891_v44  ;;  %v3118_v44 = vsel %vm5039_vm5, %v3116_v0, %v3117_v51  ;;  %v2980_v62 = vld [vmem:[#allocation4 + $0x9c] sm:$0x3] }
 0x22a   :  { %2731 = vmatprep.mubr.bf16.mxu1 %v3824_v37  ;;  %4523 = vmatprep.mubr.bf16.mxu0 %v3892_v6  ;;  %v3898_v6 = vcombine.low %v3115_v46, %v3118_v44  ;;  %v3123_v55 = vrot.slane %v2980_v62, 6 }
 0x22c   :  { %v3124_v20 = vsel %vm5039_vm5, %v3122_v13, %v3123_v55 }
 0x22d   :  { %v3899_v24 = vcombine.low %v3121_v23, %v3124_v20 }
 0x231   :  { %2732 = vmatmul.mubr.bf16.gmra.mrb[104].mxu1 %v4652_v41  ;;  %4524 = vmatmul.mubr.bf16.gmra.mrb[96].mxu0 %v3893_v4 }
 0x232   :  { %2739 = vmatprep.mubr.bf16.mxu1 %v3825_v52  ;;  %4527 = vmatprep.mubr.bf16.mxu0 %v3894_v34 }
 0x239   :  { %2740 = vmatmul.mubr.bf16.gmra.mrb[108].mxu1 %v4653_v35  ;;  %4528 = vmatmul.mubr.bf16.gmra.mrb[100].mxu0 %v3895_v54 }
 0x23a   :  { %4531 = vmatprep.mubr.bf16.mxu0 %v3896_v1 }
 0x241   :  { %4532 = vmatmul.mubr.bf16.gmra.mrb[104].mxu0 %v3897_v40 }
 0x242   :  { %4535 = vmatprep.mubr.bf16.mxu0 %v3898_v6 }
 0x249   :  { %4536 = vmatmul.mubr.bf16.gmra.mrb[108].mxu0 %v3899_v24 }
 0x287   :  { %v4251_v38 = vpop.f32.mrb[48].mxu1 }
 0x288   :  { %v4252_v11 = vpop.f32.mrb[49].mxu1 }
 0x289   :  { %v4253_v37 = vadd.f32 %v4252_v11, %v4251_v38  ;;  %v4254_v63 = vpop.f32.mrb[50].mxu1 }
 0x28a   :  { %v4255_v29 = vpop.f32.mrb[51].mxu1 }
 0x28b   :  { %v4256_v22 = vadd.f32 %v4255_v29, %v4254_v63  ;;  %v2622_v39 = vadd.f32 %v4253_v37, %v5767_v58 }
 0x28d   :  { %v2625_v31 = vadd.f32 %v4256_v22, %v5767_v58 }
 0x28f   :  { %v4461_v60 = vpop.f32.mrb[48].mxu0  ;;  %v4257_v12 = vpop.f32.mrb[52].mxu1 }
 0x290   :  { %v2782_v3 = vpop.f32.mrb[49].mxu0  ;;  %v4258_v25 = vpop.f32.mrb[53].mxu1 }
 0x291   :  { %v5771_v59 = vadd.f32 %v2782_v3, %v2622_v39  ;;  %v4462_v48 = vpop.f32.mrb[50].mxu0  ;;  %v4259_v27 = vadd.f32 %v4258_v25, %v4257_v12  ;;  %v4260_v30 = vpop.f32.mrb[54].mxu1 }
 0x292   :  { %v2785_v43 = vpop.f32.mrb[51].mxu0  ;;  %v4261_v4 = vpop.f32.mrb[55].mxu1 }
 0x293   :  { %v5773_v34 = vadd.f32 %v2785_v43, %v2625_v31  ;;  %v2630_v45 = vadd.f32 %v4259_v27, %v5767_v58  ;;  %v4262_v49 = vadd.f32 %v4261_v4, %v4260_v30 }
 0x295   :  { %v5776_v28 = vadd.f32 %v4461_v60, %v2630_v45  ;;  %v2633_v41 = vadd.f32 %v4262_v49, %v5767_v58 }
 0x297   :  { %v5779_v16 = vadd.f32 %v4462_v48, %v2633_v41  ;;  %v4263_v47 = vpop.f32.mrb[56].mxu1 }
 0x298   :  { %v4264_v57 = vpop.f32.mrb[57].mxu1 }
 0x299   :  { %v4465_v32 = vpop.f32.mrb[52].mxu0  ;;  %v4265_v52 = vadd.f32 %v4264_v57, %v4263_v47  ;;  %v4266_v5 = vpop.f32.mrb[58].mxu1 }
 0x29a   :  { %v2798_v21 = vpop.f32.mrb[53].mxu0  ;;  %v4267_v14 = vpop.f32.mrb[59].mxu1 }
 0x29b   :  { %v4466_v53 = vpop.f32.mrb[54].mxu0  ;;  %v2638_v9 = vadd.f32 %v4265_v52, %v5767_v58  ;;  %v4268_v8 = vadd.f32 %v4267_v14, %v4266_v5 }
 0x29c   :  { %v2801_v33 = vpop.f32.mrb[55].mxu0 }
 0x29d   :  { %v5782_v26 = vadd.f32 %v2798_v21, %v2638_v9  ;;  %v2641_v61 = vadd.f32 %v4268_v8, %v5767_v58 }
 0x29f   :  { %v5785_v56 = vadd.f32 %v2801_v33, %v2641_v61 }
 0x2a1   :  { %v4269_v17 = vpop.f32.mrb[60].mxu1 }
 0x2a2   :  { %v4469_v54 = vpop.f32.mrb[56].mxu0  ;;  %v4270_v1 = vpop.f32.mrb[61].mxu1 }
 0x2a3   :  { %v2814_v36 = vpop.f32.mrb[57].mxu0  ;;  %v4271_v2 = vadd.f32 %v4270_v1, %v4269_v17  ;;  %v4272_v15 = vpop.f32.mrb[62].mxu1 }
 0x2a4   :  { %v4470_v35 = vpop.f32.mrb[58].mxu0  ;;  %v4273_v7 = vpop.f32.mrb[63].mxu1 }
 0x2a5   :  { %v2817_v0 = vpop.f32.mrb[59].mxu0  ;;  %v2646_v51 = vadd.f32 %v4271_v2, %v5767_v58  ;;  %v4274_v19 = vadd.f32 %v4273_v7, %v4272_v15 }
 0x2a7   :  { %v5788_v42 = vadd.f32 %v4465_v32, %v2646_v51  ;;  %v2649_v50 = vadd.f32 %v4274_v19, %v5767_v58 }
 0x2a9   :  { %v5791_v18 = vadd.f32 %v4466_v53, %v2649_v50 }
 0x2b1   :  { %v4275_v46 = vpop.f32.mrb[64].mxu1 }
 0x2b2   :  { %v4276_v44 = vpop.f32.mrb[65].mxu1 }
 0x2b3   :  { %v4277_v62 = vadd.f32 %v4276_v44, %v4275_v46  ;;  %v4278_v40 = vpop.f32.mrb[66].mxu1 }
 0x2b4   :  { %v4473_v6 = vpop.f32.mrb[60].mxu0  ;;  %v4279_v10 = vpop.f32.mrb[67].mxu1 }
 0x2b5   :  { %v2830_v13 = vpop.f32.mrb[61].mxu0  ;;  %v2654_v55 = vadd.f32 %v4277_v62, %v5767_v58  ;;  %v4280_v23 = vadd.f32 %v4279_v10, %v4278_v40 }
 0x2b6   :  { %v4474_v20 = vpop.f32.mrb[62].mxu0 }
 0x2b7   :  { %v2833_v24 = vpop.f32.mrb[63].mxu0  ;;  %v5794_v38 = vadd.f32 %v2814_v36, %v2654_v55  ;;  %v2657_v11 = vadd.f32 %v4280_v23, %v5767_v58 }
 0x2b9   :  { %v5797_v37 = vadd.f32 %v2817_v0, %v2657_v11 }
 0x2bc   :  { %v4281_v63 = vpop.f32.mrb[68].mxu1 }
 0x2bd   :  { %v4282_v29 = vpop.f32.mrb[69].mxu1 }
 0x2be   :  { %v4283_v22 = vadd.f32 %v4282_v29, %v4281_v63  ;;  %v4284_v39 = vpop.f32.mrb[70].mxu1 }
 0x2bf   :  { %v4285_v60 = vpop.f32.mrb[71].mxu1 }
 0x2c0   :  { %v2662_v31 = vadd.f32 %v4283_v22, %v5767_v58  ;;  %v4286_v12 = vadd.f32 %v4285_v60, %v4284_v39 }
 0x2c2   :  { %v5800_v3 = vadd.f32 %v4469_v54, %v2662_v31  ;;  %v2665_v25 = vadd.f32 %v4286_v12, %v5767_v58 }
 0x2c3   :  { %v4477_v48 = vpop.f32.mrb[64].mxu0 }
 0x2c4   :  { %v5803_v27 = vadd.f32 %v4470_v35, %v2665_v25  ;;  %v2846_v30 = vpop.f32.mrb[65].mxu0  ;;  %v4287_v43 = vpop.f32.mrb[72].mxu1 }
 0x2c5   :  { %v4478_v4 = vpop.f32.mrb[66].mxu0  ;;  %v4288_v45 = vpop.f32.mrb[73].mxu1 }
 0x2c6   :  { %v2849_v49 = vpop.f32.mrb[67].mxu0  ;;  %v4289_v41 = vadd.f32 %v4288_v45, %v4287_v43  ;;  %v4290_v47 = vpop.f32.mrb[74].mxu1 }
 0x2c7   :  { %v4291_v32 = vpop.f32.mrb[75].mxu1 }
 0x2c8   :  { %v2670_v57 = vadd.f32 %v4289_v41, %v5767_v58  ;;  %v4292_v21 = vadd.f32 %v4291_v32, %v4290_v47  ;;  %v5847_v41 = vld [vmem:[#allocation15] ss:$0 sm:$0xff] }
 0x2ca   :  { %v5806_v52 = vadd.f32 %v2830_v13, %v2670_v57  ;;  %v2673_v5 = vadd.f32 %v4292_v21, %v5767_v58 }
 0x2cc   :  { %v5809_v53 = vadd.f32 %v2833_v24, %v2673_v5  ;;  %v4293_v14 = vpop.f32.mrb[76].mxu1  ;;  %v5811_v33 = vpop.f32.mrb[68].mxu0  ;;  %v2911_v5 = vmax.f32 %v5776_v28, 0.0 }
 0x2cd   :  { %v4294_v9 = vpop.f32.mrb[77].mxu1  ;;  %v2862_v8 = vpop.f32.mrb[69].mxu0 }
 0x2ce   :  { %v4295_v61 = vadd.f32 %v4294_v9, %v4293_v14  ;;  %v4296_v17 = vpop.f32.mrb[78].mxu1  ;;  %v5813_v54 = vpop.f32.mrb[70].mxu0 }
 0x2cf   :  { %v4297_v1 = vpop.f32.mrb[79].mxu1  ;;  %v2865_v36 = vpop.f32.mrb[71].mxu0 }
 0x2d0   :  { %v2678_v2 = vadd.f32 %v4295_v61, %v5767_v58  ;;  %v4298_v15 = vadd.f32 %v4297_v1, %v4296_v17  ;;  %v2909_v61 = vmax.f32 %v5771_v59, 0.0 }
 0x2d2   :  { %v5816_v35 = vadd.f32 %v4473_v6, %v2678_v2  ;;  %v2681_v7 = vadd.f32 %v4298_v15, %v5767_v58  ;;  %v2910_v15 = vmax.f32 %v5773_v34, 0.0 }
 0x2d4   :  { %v5819_v0 = vadd.f32 %v4474_v20, %v2681_v7  ;;  %v4299_v51 = vpop.f32.mrb[80].mxu1  ;;  %v5821_v19 = vpop.f32.mrb[72].mxu0 }
 0x2d5   :  { %v4300_v50 = vpop.f32.mrb[81].mxu1  ;;  %v5823_v46 = vpop.f32.mrb[73].mxu0 }
 0x2d6   :  { %v4301_v44 = vadd.f32 %v4300_v50, %v4299_v51  ;;  %v4302_v62 = vpop.f32.mrb[82].mxu1  ;;  %v5825_v40 = vpop.f32.mrb[74].mxu0  ;;  %v2912_v51 = vmax.f32 %v5779_v16, 0.0 }
 0x2d7   :  { %v4303_v10 = vpop.f32.mrb[83].mxu1  ;;  %v5827_v13 = vpop.f32.mrb[75].mxu0 }
 0x2d8   :  { %v2686_v6 = vadd.f32 %v4301_v44, %v5767_v58  ;;  %v4304_v55 = vadd.f32 %v4303_v10, %v4302_v62 }
 0x2da   :  { %v5830_v23 = vadd.f32 %v2846_v30, %v2686_v6  ;;  %v2689_v20 = vadd.f32 %v4304_v55, %v5767_v58 }
 0x2dc   :  { %v5833_v24 = vadd.f32 %v2849_v49, %v2689_v20  ;;  %v4305_v11 = vpop.f32.mrb[84].mxu1  ;;  %v5835_v63 = vpop.f32.mrb[76].mxu0 }
 0x2dd   :  { %v4306_v29 = vpop.f32.mrb[85].mxu1  ;;  %v5837_v22 = vpop.f32.mrb[77].mxu0 }
 0x2de   :  { %v4307_v39 = vadd.f32 %v4306_v29, %v4305_v11  ;;  %v4308_v60 = vpop.f32.mrb[86].mxu1  ;;  %v5839_v31 = vpop.f32.mrb[78].mxu0 }
 0x2df   :  { %v4309_v12 = vpop.f32.mrb[87].mxu1  ;;  %v5841_v25 = vpop.f32.mrb[79].mxu0 }
 0x2e0   :  { %v2694_v30 = vadd.f32 %v4307_v39, %v5767_v58  ;;  %v4310_v43 = vadd.f32 %v4309_v12, %v4308_v60 }
 0x2e2   :  { %v5844_v45 = vadd.f32 %v4477_v48, %v2694_v30  ;;  %v2697_v49 = vadd.f32 %v4310_v43, %v5767_v58 }
 0x2e4   :  { %v5849_v47 = vadd.f32 %v4478_v4, %v2697_v49  ;;  %v4311_v32 = vpop.f32.mrb[88].mxu1  ;;  %v4509_v57 = vpop.f32.mrb[80].mxu0 }
 0x2e5   :  { %v4312_v21 = vpop.f32.mrb[89].mxu1  ;;  %v3303_v14 = vadd.f32 %v4509_v57, %v5847_v41  ;;  %v3294_v9 = vpop.f32.mrb[81].mxu0 }
 0x2e6   :  { %v4313_v17 = vadd.f32 %v4312_v21, %v4311_v32  ;;  %v4314_v1 = vpop.f32.mrb[90].mxu1  ;;  %v3295_v48 = vadd.f32 %v5847_v41, %v3294_v9  ;;  %v4510_v2 = vpop.f32.mrb[82].mxu0  ;;  %v2915_v32 = vmax.f32 %v5788_v42, 0.0  ;;  %v2913_v9 = vmax.f32 %v5782_v26, 0.0 }
 0x2e7   :  { %v4315_v7 = vpop.f32.mrb[91].mxu1  ;;  %v3423_v4 = vadd.f32 %v3303_v14, %v2911_v5  ;;  %v3306_v50 = vadd.f32 %v4510_v2, %v5847_v41  ;;  %v3297_v44 = vpop.f32.mrb[83].mxu0  ;;  %v2914_v42 = vmax.f32 %v5785_v56, 0.0 }
 0x2e8   :  { %v2702_v28 = vadd.f32 %v4313_v17, %v5767_v58  ;;  %v4316_v62 = vadd.f32 %v4315_v7, %v4314_v1  ;;  %v3421_v10 = vadd.f32 %v3295_v48, %v2909_v61  ;;  %v3298_v59 = vadd.f32 %v5847_v41, %v3297_v44 }
 0x2e9   :  { %v3424_v6 = vadd.f32 %v3306_v50, %v2912_v51  ;;  %v3455_v34 = vmax.f32 %v3423_v4, 0.0  ;;  %v2916_v48 = vmax.f32 %v5791_v18, 0.0 }
 0x2ea   :  { %v5860_v55 = vadd.f32 %v2862_v8, %v2702_v28  ;;  %v2705_v20 = vadd.f32 %v4316_v62, %v5767_v58  ;;  %v3422_v11 = vadd.f32 %v3298_v59, %v2910_v15  ;;  %v3453_v16 = vmax.f32 %v3421_v10, 0.0 }
 0x2eb   :  { %v3456_v29 = vmax.f32 %v3424_v6, 0.0 }
 0x2ec   :  { %v5863_v39 = vadd.f32 %v2865_v36, %v2705_v20  ;;  %v3454_v60 = vmax.f32 %v3422_v11, 0.0  ;;  %v4317_v12 = vpop.f32.mrb[92].mxu1  ;;  %v4513_v30 = vpop.f32.mrb[84].mxu0 }
 0x2ed   :  { %v4012_v43 = vpack.c.bf16 %v3456_v29, %v3455_v34  ;;  %v4318_v49 = vpop.f32.mrb[93].mxu1  ;;  %v3319_v57 = vadd.f32 %v4513_v30, %v5847_v41  ;;  %v3310_v21 = vpop.f32.mrb[85].mxu0 }
 0x2ee   :  { %v4007_v8 = vpack.c.bf16 %v3454_v60, %v3453_v16  ;;  %v4319_v5 = vadd.f32 %v4318_v49, %v4317_v12  ;;  %v4320_v14 = vpop.f32.mrb[94].mxu1  ;;  %v3311_v61 = vadd.f32 %v5847_v41, %v3310_v21  ;;  %v4514_v36 = vpop.f32.mrb[86].mxu0  ;;  %v2919_v16 = vmax.f32 %v5800_v3, 0.0 }
 0x2ef   :  { %4084 = vst [vmem:[#allocation16 + $0x8] sm:$0xff] %v4012_v43   ;;  %v4321_v17 = vpop.f32.mrb[95].mxu1  ;;  %v3427_v1 = vadd.f32 %v3319_v57, %v2915_v32  ;;  %v3322_v2 = vadd.f32 %v4514_v36, %v5847_v41  ;;  %v3313_v15 = vpop.f32.mrb[87].mxu0  ;;  %v2917_v49 = vmax.f32 %v5794_v38, 0.0  ;;  %v2918_v3 = vmax.f32 %v5797_v37, 0.0 }
 0x2f0   :  { %4008 = vst [vmem:[#allocation16] sm:$0xff] %v4007_v8   ;;  %v2710_v7 = vadd.f32 %v4319_v5, %v5767_v58  ;;  %v4322_v4 = vadd.f32 %v4321_v17, %v4320_v14  ;;  %v3425_v51 = vadd.f32 %v3311_v61, %v2913_v9  ;;  %v3314_v26 = vadd.f32 %v5847_v41, %v3313_v15 }
 0x2f1   :  { %v3428_v50 = vadd.f32 %v3322_v2, %v2916_v48  ;;  %v3459_v18 = vmax.f32 %v3427_v1, 0.0  ;;  %v2920_v8 = vmax.f32 %v5803_v27, 0.0 }
 0x2f2   :  { %v5875_v44 = vadd.f32 %v5811_v33, %v2710_v7  ;;  %v2713_v28 = vadd.f32 %v4322_v4, %v5767_v58  ;;  %v3426_v62 = vadd.f32 %v3314_v26, %v2914_v42  ;;  %v3457_v56 = vmax.f32 %v3425_v51, 0.0 }
 0x2f3   :  { %v3460_v10 = vmax.f32 %v3428_v50, 0.0 }
 0x2f4   :  { %v5879_v59 = vadd.f32 %v5813_v54, %v2713_v28  ;;  %v3458_v6 = vmax.f32 %v3426_v62, 0.0  ;;  %v4323_v20 = vpop.f32.mrb[96].mxu1  ;;  %v4517_v11 = vpop.f32.mrb[88].mxu0  ;;  %v2923_v28 = vmax.f32 %v5816_v35, 0.0  ;;  %v2922_v35 = vmax.f32 %v5809_v53, 0.0 }
 0x2f5   :  { %v4022_v34 = vpack.c.bf16 %v3460_v10, %v3459_v18  ;;  %v4324_v29 = vpop.f32.mrb[97].mxu1  ;;  %v3335_v60 = vadd.f32 %v4517_v11, %v5847_v41  ;;  %v3326_v33 = vpop.f32.mrb[89].mxu0 }
 0x2f6   :  { %v4017_v12 = vpack.c.bf16 %v3458_v6, %v3457_v56  ;;  %v4325_v30 = vadd.f32 %v4324_v29, %v4323_v20  ;;  %v4326_v43 = vpop.f32.mrb[98].mxu1  ;;  %v3327_v32 = vadd.f32 %v5847_v41, %v3326_v33  ;;  %v4518_v54 = vpop.f32.mrb[90].mxu0  ;;  %v2921_v6 = vmax.f32 %v5806_v52, 0.0 }
 0x2f7   :  { %4086 = vst [vmem:[#allocation16 + $0x18] sm:$0xff] %v4022_v34   ;;  %v4327_v57 = vpop.f32.mrb[99].mxu1  ;;  %v3431_v21 = vadd.f32 %v3335_v60, %v2919_v16  ;;  %v3338_v5 = vadd.f32 %v4518_v54, %v5847_v41  ;;  %v3329_v14 = vpop.f32.mrb[91].mxu0  ;;  %v2924_v29 = vmax.f32 %v5819_v0, 0.0 }
 0x2f8   :  { %4085 = vst [vmem:[#allocation16 + $0x10] sm:$0xff] %v4017_v12   ;;  %v2718_v9 = vadd.f32 %v4325_v30, %v5767_v58  ;;  %v4328_v61 = vadd.f32 %v4327_v57, %v4326_v43  ;;  %v3429_v36 = vadd.f32 %v3327_v32, %v2917_v49  ;;  %v3330_v38 = vadd.f32 %v5847_v41, %v3329_v14 }
 0x2f9   :  { %v3432_v17 = vadd.f32 %v3338_v5, %v2920_v8  ;;  %v3463_v27 = vmax.f32 %v3431_v21, 0.0 }
 0x2fa   :  { %v5891_v1 = vadd.f32 %v5823_v46, %v2718_v9  ;;  %v2721_v48 = vadd.f32 %v4328_v61, %v5767_v58  ;;  %v3430_v2 = vadd.f32 %v3330_v38, %v2918_v3  ;;  %v3461_v37 = vmax.f32 %v3429_v36, 0.0 }
 0x2fb   :  { %v3464_v42 = vmax.f32 %v3432_v17, 0.0  ;;  %v2927_v61 = vmax.f32 %v5844_v45, 0.0  ;;  %v2926_v45 = vmax.f32 %v5833_v24, 0.0 }
 0x2fc   :  { %v5895_v15 = vadd.f32 %v5827_v13, %v2721_v48  ;;  %v3462_v7 = vmax.f32 %v3430_v2, 0.0  ;;  %v4329_v4 = vpop.f32.mrb[100].mxu1  ;;  %v4521_v51 = vpop.f32.mrb[92].mxu0  ;;  %v2925_v2 = vmax.f32 %v5830_v23, 0.0 }
 0x2fd   :  { %v4032_v26 = vpack.c.bf16 %v3464_v42, %v3463_v27  ;;  %v4330_v50 = vpop.f32.mrb[101].mxu1  ;;  %v3351_v62 = vadd.f32 %v4521_v51, %v5847_v41  ;;  %v3342_v46 = vpop.f32.mrb[93].mxu0 }
 0x2fe   :  { %v4027_v18 = vpack.c.bf16 %v3462_v7, %v3461_v37  ;;  %v4331_v10 = vadd.f32 %v4330_v50, %v4329_v4  ;;  %v4332_v56 = vpop.f32.mrb[102].mxu1  ;;  %v3343_v20 = vadd.f32 %v5847_v41, %v3342_v46  ;;  %v4522_v13 = vpop.f32.mrb[94].mxu0  ;;  %v2928_v7 = vmax.f32 %v5849_v47, 0.0 }
 0x2ff   :  { %4088 = vst [vmem:[#allocation16 + $0x28] sm:$0xff] %v4032_v26   ;;  %v4333_v11 = vpop.f32.mrb[103].mxu1  ;;  %v3435_v34 = vadd.f32 %v3351_v62, %v2923_v28  ;;  %v3354_v16 = vadd.f32 %v4522_v13, %v5847_v41  ;;  %v3345_v60 = vpop.f32.mrb[95].mxu0 }
 0x300   :  { %4087 = vst [vmem:[#allocation16 + $0x20] sm:$0xff] %v4027_v18   ;;  %v2726_v33 = vadd.f32 %v4331_v10, %v5767_v58  ;;  %v4334_v12 = vadd.f32 %v4333_v11, %v4332_v56  ;;  %v3433_v30 = vadd.f32 %v3343_v20, %v2921_v6  ;;  %v3346_v52 = vadd.f32 %v5847_v41, %v3345_v60 }
 0x301   :  { %v3436_v43 = vadd.f32 %v3354_v16, %v2924_v29  ;;  %v3467_v0 = vmax.f32 %v3435_v34, 0.0  ;;  %v2931_v16 = vmax.f32 %v5875_v44, 0.0  ;;  %v2930_v44 = vmax.f32 %v5863_v39, 0.0 }
 0x302   :  { %v5907_v49 = vadd.f32 %v5821_v19, %v2726_v33  ;;  %v2729_v32 = vadd.f32 %v4334_v12, %v5767_v58  ;;  %v3434_v54 = vadd.f32 %v3346_v52, %v2922_v35  ;;  %v3465_v53 = vmax.f32 %v3433_v30, 0.0 }
 0x303   :  { %v3468_v57 = vmax.f32 %v3436_v43, 0.0  ;;  %v2929_v30 = vmax.f32 %v5860_v55, 0.0 }
 0x304   :  { %v5911_v21 = vadd.f32 %v5825_v40, %v2729_v32  ;;  %v3466_v8 = vmax.f32 %v3434_v54, 0.0  ;;  %v4335_v5 = vpop.f32.mrb[104].mxu1  ;;  %v4525_v3 = vpop.f32.mrb[96].mxu0  ;;  %v2932_v54 = vmax.f32 %v5879_v59, 0.0 }
 0x305   :  { %v4042_v14 = vpack.c.bf16 %v3468_v57, %v3467_v0  ;;  %v4336_v9 = vpop.f32.mrb[105].mxu1  ;;  %v3367_v36 = vadd.f32 %v4525_v3, %v5847_v41  ;;  %v3358_v19 = vpop.f32.mrb[97].mxu0 }
 0x306   :  { %v4037_v38 = vpack.c.bf16 %v3466_v8, %v3465_v53  ;;  %v4337_v17 = vadd.f32 %v4336_v9, %v4335_v5  ;;  %v4338_v48 = vpop.f32.mrb[106].mxu1  ;;  %v3359_v27 = vadd.f32 %v5847_v41, %v3358_v19  ;;  %v4526_v40 = vpop.f32.mrb[98].mxu0 }
 0x307   :  { %4090 = vst [vmem:[#allocation16 + $0x38] sm:$0xff] %v4042_v14   ;;  %v4339_v42 = vpop.f32.mrb[107].mxu1  ;;  %v3439_v37 = vadd.f32 %v3367_v36, %v2927_v61  ;;  %v3370_v4 = vadd.f32 %v4526_v40, %v5847_v41  ;;  %v3361_v51 = vpop.f32.mrb[99].mxu0 }
 0x308   :  { %4089 = vst [vmem:[#allocation16 + $0x30] sm:$0xff] %v4037_v38   ;;  %v2734_v26 = vadd.f32 %v4337_v17, %v5767_v58  ;;  %v4340_v50 = vadd.f32 %v4339_v42, %v4338_v48  ;;  %v3437_v28 = vadd.f32 %v3359_v27, %v2925_v2  ;;  %v3362_v23 = vadd.f32 %v5847_v41, %v3361_v51 }
 0x309   :  { %v3440_v62 = vadd.f32 %v3370_v4, %v2928_v7  ;;  %v3471_v47 = vmax.f32 %v3439_v37, 0.0  ;;  %v2935_v2 = vmax.f32 %v5907_v49, 0.0  ;;  %v2933_v37 = vmax.f32 %v5891_v1, 0.0 }
 0x30a   :  { %v5923_v46 = vadd.f32 %v5837_v22, %v2734_v26  ;;  %v2737_v18 = vadd.f32 %v4340_v50, %v5767_v58  ;;  %v3438_v10 = vadd.f32 %v3362_v23, %v2926_v45  ;;  %v3469_v24 = vmax.f32 %v3437_v28, 0.0 }
 0x30b   :  { %v3472_v56 = vmax.f32 %v3440_v62, 0.0  ;;  %v2936_v4 = vmax.f32 %v5911_v21, 0.0  ;;  %v2934_v49 = vmax.f32 %v5895_v15, 0.0 }
 0x30c   :  { %v5927_v6 = vadd.f32 %v5841_v25, %v2737_v18  ;;  %v3470_v20 = vmax.f32 %v3438_v10, 0.0  ;;  %v4341_v13 = vpop.f32.mrb[108].mxu1  ;;  %v4529_v11 = vpop.f32.mrb[100].mxu0 }
 0x30d   :  { %v4052_v34 = vpack.c.bf16 %v3472_v56, %v3471_v47  ;;  %v4342_v29 = vpop.f32.mrb[109].mxu1  ;;  %v3383_v35 = vadd.f32 %v4529_v11, %v5847_v41  ;;  %v3374_v22 = vpop.f32.mrb[101].mxu0 }
 0x30e   :  { %v4047_v60 = vpack.c.bf16 %v3470_v20, %v3469_v24  ;;  %v4343_v33 = vadd.f32 %v4342_v29, %v4341_v13  ;;  %v4344_v12 = vpop.f32.mrb[110].mxu1  ;;  %v3375_v52 = vadd.f32 %v5847_v41, %v3374_v22  ;;  %v4530_v25 = vpop.f32.mrb[102].mxu0  ;;  %v2937_v13 = vmax.f32 %v5923_v46, 0.0 }
 0x30f   :  { %4092 = vst [vmem:[#allocation16 + $0x48] sm:$0xff] %v4052_v34   ;;  %v4345_v43 = vpop.f32.mrb[111].mxu1  ;;  %v3443_v32 = vadd.f32 %v3383_v35, %v2931_v16  ;;  %v3386_v0 = vadd.f32 %v4530_v25, %v5847_v41  ;;  %v3377_v57 = vpop.f32.mrb[103].mxu0 }
 0x310   :  { %4091 = vst [vmem:[#allocation16 + $0x40] sm:$0xff] %v4047_v60   ;;  %v2742_v53 = vadd.f32 %v4343_v33, %v5767_v58  ;;  %v4346_v8 = vadd.f32 %v4345_v43, %v4344_v12  ;;  %v3441_v5 = vadd.f32 %v3375_v52, %v2929_v30  ;;  %v3378_v55 = vadd.f32 %v5847_v41, %v3377_v57 }
 0x311   :  { %v3444_v3 = vadd.f32 %v3386_v0, %v2932_v54  ;;  %v3475_v36 = vmax.f32 %v3443_v32, 0.0  ;;  %v2938_v60 = vmax.f32 %v5927_v6, 0.0 }
 0x312   :  { %v2903_v14 = vadd.f32 %v5835_v63, %v2742_v53  ;;  %v2745_v9 = vadd.f32 %v4346_v8, %v5767_v58  ;;  %v3442_v61 = vadd.f32 %v3378_v55, %v2930_v44  ;;  %v3473_v38 = vmax.f32 %v3441_v5, 0.0 }
 0x313   :  { %v3476_v59 = vmax.f32 %v3444_v3, 0.0 }
 0x314   :  { %v2906_v19 = vadd.f32 %v5839_v31, %v2745_v9  ;;  %v3474_v39 = vmax.f32 %v3442_v61, 0.0  ;;  %v4533_v17 = vpop.f32.mrb[104].mxu0  ;;  %v2939_v56 = vmax.f32 %v2903_v14, 0.0 }
 0x315   :  { %v4062_v48 = vpack.c.bf16 %v3476_v59, %v3475_v36  ;;  %v3399_v27 = vadd.f32 %v4533_v17, %v5847_v41  ;;  %v3390_v40 = vpop.f32.mrb[105].mxu0 }
 0x316   :  { %v4057_v42 = vpack.c.bf16 %v3474_v39, %v3473_v38  ;;  %v3391_v63 = vadd.f32 %v5847_v41, %v3390_v40  ;;  %v4534_v58 = vpop.f32.mrb[106].mxu0  ;;  %v2940_v29 = vmax.f32 %v2906_v19, 0.0 }
 0x317   :  { %4094 = vst [vmem:[#allocation16 + $0x58] sm:$0xff] %v4062_v48   ;;  %v3447_v7 = vadd.f32 %v3399_v27, %v2935_v2  ;;  %v3402_v31 = vadd.f32 %v4534_v58, %v5847_v41  ;;  %v3393_v45 = vpop.f32.mrb[107].mxu0 }
 0x318   :  { %4093 = vst [vmem:[#allocation16 + $0x50] sm:$0xff] %v4057_v42   ;;  %v3445_v51 = vadd.f32 %v3391_v63, %v2933_v37  ;;  %v3394_v26 = vadd.f32 %v5847_v41, %v3393_v45 }
 0x319   :  { %v3448_v50 = vadd.f32 %v3402_v31, %v2936_v4  ;;  %v3479_v23 = vmax.f32 %v3447_v7, 0.0 }
 0x31a   :  { %v3446_v28 = vadd.f32 %v3394_v26, %v2934_v49  ;;  %v3477_v62 = vmax.f32 %v3445_v51, 0.0 }
 0x31b   :  { %v3480_v1 = vmax.f32 %v3448_v50, 0.0 }
 0x31c   :  { %v3478_v18 = vmax.f32 %v3446_v28, 0.0  ;;  %v4537_v10 = vpop.f32.mrb[108].mxu0 }
 0x31d   :  { %v4072_v47 = vpack.c.bf16 %v3480_v1, %v3479_v23  ;;  %v3415_v21 = vadd.f32 %v4537_v10, %v5847_v41  ;;  %v3406_v24 = vpop.f32.mrb[109].mxu0 }
 0x31e   :  { %v4067_v20 = vpack.c.bf16 %v3478_v18, %v3477_v62  ;;  %v3407_v11 = vadd.f32 %v5847_v41, %v3406_v24  ;;  %v4538_v15 = vpop.f32.mrb[110].mxu0 }
 0x31f   :  { %4096 = vst [vmem:[#allocation16 + $0x68] sm:$0xff] %v4072_v47   ;;  %v3451_v34 = vadd.f32 %v3415_v21, %v2939_v56  ;;  %v3418_v16 = vadd.f32 %v4538_v15, %v5847_v41  ;;  %v3409_v35 = vpop.f32.mrb[111].mxu0 }
 0x320   :  { %4095 = vst [vmem:[#allocation16 + $0x60] sm:$0xff] %v4067_v20   ;;  %v3449_v22 = vadd.f32 %v3407_v11, %v2937_v13  ;;  %v3410_v33 = vadd.f32 %v5847_v41, %v3409_v35 }
 0x321   :  { %v3452_v12 = vadd.f32 %v3418_v16, %v2940_v29  ;;  %v3483_v52 = vmax.f32 %v3451_v34, 0.0 }
 0x322   :  { %v3450_v30 = vadd.f32 %v3410_v33, %v2938_v60  ;;  %v3481_v46 = vmax.f32 %v3449_v22, 0.0 }
 0x323   :  { %v3484_v25 = vmax.f32 %v3452_v12, 0.0 }
 0x324   :  { %v3482_v43 = vmax.f32 %v3450_v30, 0.0 }
 0x325   :  { %v4082_v32 = vpack.c.bf16 %v3484_v25, %v3483_v52 }
 0x326   :  { %v4077_v54 = vpack.c.bf16 %v3482_v43, %v3481_v46 }
 0x327   :  { %4098 = vst [vmem:[#allocation16 + $0x78] sm:$0xff] %v4082_v32  }
 0x328   :  { %4097 = vst [vmem:[#allocation16 + $0x70] sm:$0xff] %v4077_v54  }
 0x329   :  { %4819 = shalt.err (!%p4816_p4)
}
 0x32a   :  { %s4820_s19 = scalar_lea.hbm %s5977_s7, 2048 }
 0x32b   :  { %p4821_p5 = scmp.ne.s32.totalorder %s5977_s7, %s4820_s19  ;;  %p4824_p6 = scmp.lt.u32.totalorder %s4820_s19, %s5977_s7 }
 0x32d   :  { %p4826_p7 = pnand %p4824_p6, %p4821_p5 }
 0x32f   :  { %4829 = shalt.err (!%p4826_p7)
}
 0x330   :  { %3656 = dma.vmem_to_hbm [thread:$0]  %s3651_s30, 2048, %s5977_s7, [#allocation6], %s4842_s13, %s4842_s13, %s4843_s14  }
 0x331   :  { %4838 = dma.done.wait [#allocation6], 2048  }
 0x332   :  { %4839 = vsyncadd [#allocation6], 4294965248 }
 0x333   :  { %3660 = vsyncpa [#allocation5], 1 }
 0x334   :  { %3661 = vsyncpa [#allocation8], 1 }
 0x335   :  { %3662 = vsyncpa [#allocation11], 1 }
 0x336   :  { %3663 = vsyncpa [#allocation14], 1 }
 0x337   :  { %3664 = vsyncpa [#allocation6], 1 }

</bundles_post_ra>
